<compile_context>
chip_gen: v6e
topology: v6e:2x2x1
jax: 0.10.0
libtpu: 0.0.40
codegen_flags: <defaults>
</compile_context>

<pallas_src>
import numpy as np

import jax
import jax.numpy as jnp
from jax.experimental import pallas as pl
from jax.experimental.pallas import tpu as pltpu

OUT_HW = 112        # ArcFace input resolution
EMB_DIM = 512       # ArcFace embedding dimension
EMB_TILE_N = 256    # E-axis tile: 2 tiles -> each v7x TensorCore streams half the weight


# ----------------------------------------------------------------------------
# 1. Fused bilinear resize (align_corners=True): one pallas_call, grid over N*C.
# ----------------------------------------------------------------------------
def _bilinear_matrix_np(in_size: int, out_size: int) -> np.ndarray:
    """Host-side interpolation matrix W s.t. out = W @ in (align_corners=True)."""
    if in_size == 1:
        return np.ones((out_size, 1), np.float32)
    scale = (in_size - 1) / (out_size - 1)
    src = np.arange(out_size, dtype=np.float64) * scale
    lo = np.clip(np.floor(src).astype(np.int64), 0, in_size - 2)
    frac = (src - lo).astype(np.float32)
    w = np.zeros((out_size, in_size), np.float32)
    rows = np.arange(out_size)
    w[rows, lo] += 1.0 - frac
    w[rows, lo + 1] += frac
    return w


def _resize_kernel(img_ref, wy_ref, wxt_ref, o_ref):
    x = img_ref[0]                                                    # (H, W) f32
    tmp = jnp.dot(x, wxt_ref[...], preferred_element_type=jnp.float32)   # (H, 112)
    out = jnp.dot(wy_ref[...], tmp, preferred_element_type=jnp.float32)  # (112, 112)
    # 112-lane store is slightly masked (vst.msk) but the write volume is only
    # ~25 KB/step; keeping the natural (112,112) shape avoids a risky in-kernel
    # relayout, and the downstream flatten to (2B, C*112*112) is a free bitcast.
    o_ref[0] = out.astype(o_ref.dtype)


def resize_flatten_112_bf16(img: jnp.ndarray) -> jnp.ndarray:
    """img: (N, C, H, W) f32 -> (N, C*112*112) bf16, bilinear, align_corners=True."""
    n, c, h, w = img.shape
    nc = n * c
    wy = jnp.asarray(_bilinear_matrix_np(h, OUT_HW))            # (112, H)
    wxt = jnp.asarray(_bilinear_matrix_np(w, OUT_HW).T)         # (W, 112) pre-transposed

    img_f = img.reshape(nc, h, w).astype(jnp.float32)

    resized = pl.pallas_call(
        _resize_kernel,
        out_shape=jax.ShapeDtypeStruct((nc, OUT_HW, OUT_HW), jnp.bfloat16),
        grid_spec=pltpu.PrefetchScalarGridSpec(
            num_scalar_prefetch=0,
            grid=(nc,),
            in_specs=[
                pl.BlockSpec((1, h, w), lambda i: (i, 0, 0)),
                pl.BlockSpec((OUT_HW, h), lambda i: (0, 0)),
                pl.BlockSpec((w, OUT_HW), lambda i: (0, 0)),
            ],
            out_specs=pl.BlockSpec((1, OUT_HW, OUT_HW), lambda i: (i, 0, 0)),
        ),
        compiler_params=pltpu.CompilerParams(
            dimension_semantics=("parallel",)),
    )(img_f, wy, wxt)

    # Row-major metadata reshape only (no HBM pass): feeds the embed directly.
    return resized.reshape(n, c * OUT_HW * OUT_HW)


# ----------------------------------------------------------------------------
# 2. Synthetic ArcFace head: flattened bf16 activations -> 512-d embedding.
#    Weight is prepared ONCE at init: bf16 + blocked (E//NT, K, NT) layout so
#    every (tk, NT) DMA block is fully contiguous in HBM.
# ----------------------------------------------------------------------------
def prepare_arcface_weight(w_embed: jnp.ndarray, nt: int = EMB_TILE_N) -> jnp.ndarray:
    """(K, E) f32 -> (E//nt, K, nt) bf16, done once OUTSIDE the jitted loss."""
    k, e = w_embed.shape
    assert e % nt == 0
    w = w_embed.astype(jnp.bfloat16).reshape(k, e // nt, nt)
    return jnp.transpose(w, (1, 0, 2))                           # (E//nt, K, nt)


def _embed_kernel(x_ref, w_ref, o_ref, acc_ref):
    @pl.when(pl.program_id(1) == 0)
    def _():
        acc_ref[...] = jnp.zeros_like(acc_ref)

    acc_ref[...] += jnp.dot(x_ref[...], w_ref[0],
                            preferred_element_type=jnp.float32)

    @pl.when(pl.program_id(1) == pl.num_programs(1) - 1)
    def _():
        o_ref[...] = acc_ref[...]


def _pick_tk(k: int) -> int:
    """Largest multiple of 128 dividing K, capped per-generation so the bf16
    weight double-buffer stays inside the default scoped VMEM."""
    assert k % 128 == 0, "embedding K must be a multiple of 128"
    kind = jax.devices()[0].device_kind.lower()
    big_vmem = ("v6" in kind) or ("v7" in kind) or ("7x" in kind)
    max_tk = 12544 if big_vmem else 6272          # v6e/v7x: 32 MiB scoped; v5e: 16 MiB
    best = 128
    for cand in range(128, min(k, max_tk) + 1, 128):
        if k % cand == 0:
            best = cand
    return best


def arcface_embed(x_bf16: jnp.ndarray, w_blocked: jnp.ndarray) -> jnp.ndarray:
    """x_bf16: (M, K) bf16, w_blocked: (E//nt, K, nt) bf16 -> (M, E) f32."""
    m, k = x_bf16.shape
    nb, kw, nt = w_blocked.shape
    assert k == kw
    e = nb * nt
    if x_bf16.dtype != jnp.bfloat16:
        x_bf16 = x_bf16.astype(jnp.bfloat16)
    tk = _pick_tk(k)

    cost = pl.CostEstimate(
        flops=2 * m * k * e,
        transcendentals=0,
        bytes_accessed=2 * k * e + 2 * m * k + 4 * m * e,
    )

    # TODO(synk): on v7x an fp8(e4m3)+per-column-scale weight path would halve
    # the dominant weight stream again; left out to keep f32-reference accuracy.
    return pl.pallas_call(
        _embed_kernel,
        out_shape=jax.ShapeDtypeStruct((m, e), jnp.float32),
        grid_spec=pltpu.PrefetchScalarGridSpec(
            num_scalar_prefetch=0,
            grid=(nb, k // tk),                     # (parallel E tiles, reduction K)
            in_specs=[
                pl.BlockSpec((m, tk), lambda n, kk: (0, kk)),
                pl.BlockSpec((1, tk, nt), lambda n, kk: (n, kk, 0)),
            ],
            out_specs=pl.BlockSpec((m, nt), lambda n, kk: (0, n)),
            scratch_shapes=[pltpu.VMEM((m, nt), jnp.float32)],
        ),
        compiler_params=pltpu.CompilerParams(
            dimension_semantics=("parallel", "arbitrary")),
        cost_estimate=cost,
    )(x_bf16, w_blocked)


# ----------------------------------------------------------------------------
# IDLoss.forward
# ----------------------------------------------------------------------------
@jax.jit
def id_loss(img_true: jnp.ndarray, img_pred: jnp.ndarray,
            w_blocked: jnp.ndarray) -> jnp.ndarray:
    b = img_true.shape[0]

    # Resize both images in one fused kernel (stacked along the batch axis);
    # output is already bf16 and flattened for the embedding head.
    imgs = jnp.concatenate([img_true, img_pred], axis=0)        # (2B, C, H, W)
    x_flat = resize_flatten_112_bf16(imgs)                      # (2B, C*112*112) bf16

    # One embedding call for true+pred: bf16 weights streamed from HBM once.
    feats = arcface_embed(x_flat, w_blocked)                    # (2B, 512) f32
    f_true, f_pred = feats[:b], feats[b:]

    # Final scalar reduction in plain JAX (a pallas_call costs more than ~4 KB
    # of math).  Clamp each norm like torch.nn.functional.cosine_similarity.
    eps = jnp.float32(1e-8)
    dot = jnp.sum(f_true * f_pred, axis=1)
    n_t = jnp.maximum(jnp.sqrt(jnp.sum(f_true * f_true, axis=1)), eps)
    n_p = jnp.maximum(jnp.sqrt(jnp.sum(f_pred * f_pred, axis=1)), eps)
    cos = dot / (n_t * n_p)
    return jnp.mean(1.0 - cos)


if __name__ == "__main__":
    B, C, H, W = 2, 3, 16, 16
    key = jax.random.PRNGKey(0)
    k_true, k_pred, k_w = jax.random.split(key, 3)

    img_true = jax.random.normal(k_true, (B, C, H, W), jnp.float32)
    img_pred = jax.random.normal(k_pred, (B, C, H, W), jnp.float32)

    # Deterministic stand-in weights for the ArcFace embedding head.
    w_embed = jax.random.normal(k_w, (C * OUT_HW * OUT_HW, EMB_DIM),
                                jnp.float32) * 0.02
    # One-time init-side prep (bf16 + contiguous blocked layout): no per-call
    # f32->bf16 convert pass over the 73 MB weight inside the jit.
    w_blocked = prepare_arcface_weight(w_embed)
    jax.block_until_ready(w_blocked)

    loss = id_loss(img_true, img_pred, w_blocked)
    jax.block_until_ready(loss)
    assert loss.shape == () and jnp.isfinite(loss)
    print("KERNEL_OK")
</pallas_src>

<mosaic_0001>
module attributes {stable_mosaic.version = 11 : i64} {
  func.func @_embed_kernel(%arg0: i32, %arg1: i32, %arg2: memref<4x6272xbf16, #tpu.memory_space<vmem>>, %arg3: memref<1x6272x256xbf16, #tpu.memory_space<vmem>>, %arg4: memref<4x256xf32, #tpu.memory_space<vmem>>, %arg5: memref<4x256xf32, #tpu.memory_space<vmem>>) attributes {dimension_semantics = [#tpu.dimension_semantics<parallel>, #tpu.dimension_semantics<arbitrary>], iteration_bounds = array<i64: 2, 6>, scalar_prefetch = 0 : i64, scratch_operands = 1 : i64, tpu.core_type = #tpu.core_type<tc>, window_params = [{transform_indices = @transform_0, window_bounds = array<i64: 4, 6272>}, {transform_indices = @transform_1, window_bounds = array<i64: 1, 6272, 256>}, {transform_indices = @transform_2, window_bounds = array<i64: 4, 256>}]} {
    %c0_i32 = arith.constant 0 : i32
    %0 = arith.cmpi eq, %arg1, %c0_i32 : i32
    %1 = arith.extui %0 : i1 to i32
    %c0_i32_0 = arith.constant 0 : i32
    %2 = arith.cmpi ne, %1, %c0_i32_0 : i32
    scf.if %2 {
      %cst_10 = arith.constant 0.000000e+00 : f32
      %13 = vector.broadcast %cst_10 : f32 to vector<4x256xf32>
      %c0_11 = arith.constant 0 : index
      %c0_12 = arith.constant 0 : index
      %14 = vector.load %arg5[%c0_11, %c0_12] : memref<4x256xf32, #tpu.memory_space<vmem>>, vector<4x256xf32>
      tpu.vector_store %arg5[%c0_11, %c0_12], %13 {strides = array<i32>} : memref<4x256xf32, #tpu.memory_space<vmem>>, vector<4x256xf32>,
    } else {
    }
    %c0 = arith.constant 0 : index
    %c0_1 = arith.constant 0 : index
    %3 = vector.load %arg5[%c0, %c0_1] : memref<4x256xf32, #tpu.memory_space<vmem>>, vector<4x256xf32>
    %c0_2 = arith.constant 0 : index
    %c0_3 = arith.constant 0 : index
    %4 = vector.load %arg2[%c0_2, %c0_3] : memref<4x6272xbf16, #tpu.memory_space<vmem>>, vector<4x6272xbf16>
    %c0_4 = arith.constant 0 : index
    %c0_5 = arith.constant 0 : index
    %c0_6 = arith.constant 0 : index
    %5 = vector.load %arg3[%c0_4, %c0_5, %c0_6] : memref<1x6272x256xbf16, #tpu.memory_space<vmem>>, vector<1x6272x256xbf16>
    %6 = vector.shape_cast %5 : vector<1x6272x256xbf16> to vector<6272x256xbf16>
    %cst = arith.constant dense<0.000000e+00> : vector<4x256xf32>
    %7 = tpu.matmul %4, %6, %cst {dimension_numbers = #tpu.dot_dimension_numbers<[1], [0], [0], [1], [0, 0, 1, 1], [], []>} : vector<4x6272xbf16>, vector<6272x256xbf16>, vector<4x256xf32> -> vector<4x256xf32>
    %8 = arith.addf %3, %7 : vector<4x256xf32>
    %c0_7 = arith.constant 0 : index
    %c0_8 = arith.constant 0 : index
    %9 = vector.load %arg5[%c0_7, %c0_8] : memref<4x256xf32, #tpu.memory_space<vmem>>, vector<4x256xf32>
    tpu.vector_store %arg5[%c0_7, %c0_8], %8 {strides = array<i32>} : memref<4x256xf32, #tpu.memory_space<vmem>>, vector<4x256xf32>,
    %c5_i32 = arith.constant 5 : i32
    %10 = arith.cmpi eq, %arg1, %c5_i32 : i32
    %11 = arith.extui %10 : i1 to i32
    %c0_i32_9 = arith.constant 0 : i32
    %12 = arith.cmpi ne, %11, %c0_i32_9 : i32
    scf.if %12 {
      %c0_10 = arith.constant 0 : index
      %c0_11 = arith.constant 0 : index
      %13 = vector.load %arg5[%c0_10, %c0_11] : memref<4x256xf32, #tpu.memory_space<vmem>>, vector<4x256xf32>
      %c0_12 = arith.constant 0 : index
      %c0_13 = arith.constant 0 : index
      %14 = vector.load %arg4[%c0_12, %c0_13] : memref<4x256xf32, #tpu.memory_space<vmem>>, vector<4x256xf32>
      tpu.vector_store %arg4[%c0_12, %c0_13], %13 {strides = array<i32>} : memref<4x256xf32, #tpu.memory_space<vmem>>, vector<4x256xf32>,
    } else {
    }
    return
  }
  func.func @transform_0(%arg0: i32, %arg1: i32) -> (i32, i32) {
    %c0_i32 = arith.constant 0 : i32
    %c0_i32_0 = arith.constant 0 : i32
    return %c0_i32, %arg1 : i32, i32
  }
  func.func @transform_1(%arg0: i32, %arg1: i32) -> (i32, i32, i32) {
    %c0_i32 = arith.constant 0 : i32
    %c0_i32_0 = arith.constant 0 : i32
    return %arg0, %arg1, %c0_i32 : i32, i32, i32
  }
  func.func @transform_2(%arg0: i32, %arg1: i32) -> (i32, i32) {
    %c0_i32 = arith.constant 0 : i32
    %c0_i32_0 = arith.constant 0 : i32
    return %c0_i32, %arg0 : i32, i32
  }
}

module attributes {stable_mosaic.version = 11 : i64} {
  func.func @_resize_kernel(%arg0: i32, %arg1: memref<1x16x16xf32, #tpu.memory_space<vmem>>, %arg2: memref<112x16xf32, #tpu.memory_space<vmem>>, %arg3: memref<16x112xf32, #tpu.memory_space<vmem>>, %arg4: memref<1x112x112xbf16, #tpu.memory_space<vmem>>) attributes {dimension_semantics = [#tpu.dimension_semantics<parallel>], iteration_bounds = array<i64: 12>, scalar_prefetch = 0 : i64, scratch_operands = 0 : i64, tpu.core_type = #tpu.core_type<tc>, window_params = [{transform_indices = @transform_0, window_bounds = array<i64: 1, 16, 16>}, {pipeline_mode = #tpu.pipeline_mode<synchronous>, transform_indices = @transform_1, window_bounds = array<i64: 112, 16>}, {pipeline_mode = #tpu.pipeline_mode<synchronous>, transform_indices = @transform_2, window_bounds = array<i64: 16, 112>}, {transform_indices = @transform_3, window_bounds = array<i64: 1, 112, 112>}]} {
    %c0 = arith.constant 0 : index
    %c0_0 = arith.constant 0 : index
    %c0_1 = arith.constant 0 : index
    %0 = vector.load %arg1[%c0, %c0_0, %c0_1] : memref<1x16x16xf32, #tpu.memory_space<vmem>>, vector<1x16x16xf32>
    %1 = vector.shape_cast %0 : vector<1x16x16xf32> to vector<16x16xf32>
    %c0_2 = arith.constant 0 : index
    %c0_3 = arith.constant 0 : index
    %2 = vector.load %arg3[%c0_2, %c0_3] : memref<16x112xf32, #tpu.memory_space<vmem>>, vector<16x112xf32>
    %cst = arith.constant dense<0.000000e+00> : vector<16x112xf32>
    %3 = tpu.matmul %1, %2, %cst {dimension_numbers = #tpu.dot_dimension_numbers<[1], [0], [0], [1], [0, 0, 1, 1], [], []>} : vector<16x16xf32>, vector<16x112xf32>, vector<16x112xf32> -> vector<16x112xf32>
    %c0_4 = arith.constant 0 : index
    %c0_5 = arith.constant 0 : index
    %4 = vector.load %arg2[%c0_4, %c0_5] : memref<112x16xf32, #tpu.memory_space<vmem>>, vector<112x16xf32>
    %cst_6 = arith.constant dense<0.000000e+00> : vector<112x112xf32>
    %5 = tpu.matmul %4, %3, %cst_6 {dimension_numbers = #tpu.dot_dimension_numbers<[1], [0], [0], [1], [0, 0, 1, 1], [], []>} : vector<112x16xf32>, vector<16x112xf32>, vector<112x112xf32> -> vector<112x112xf32>
    %6 = arith.truncf %5 : vector<112x112xf32> to vector<112x112xbf16>
    %c0_7 = arith.constant 0 : index
    %c0_8 = arith.constant 0 : index
    %c0_9 = arith.constant 0 : index
    %7 = vector.load %arg4[%c0_7, %c0_8, %c0_9] : memref<1x112x112xbf16, #tpu.memory_space<vmem>>, vector<1x112x112xbf16>
    %8 = vector.shape_cast %7 : vector<1x112x112xbf16> to vector<112x112xbf16>
    %9 = vector.shape_cast %6 : vector<112x112xbf16> to vector<1x112x112xbf16>
    tpu.vector_store %arg4[%c0_7, %c0_8, %c0_9], %9 {strides = array<i32>} : memref<1x112x112xbf16, #tpu.memory_space<vmem>>, vector<1x112x112xbf16>,
    return
  }
  func.func @transform_0(%arg0: i32) -> (i32, i32, i32) {
    %c0_i32 = arith.constant 0 : i32
    %c0_i32_0 = arith.constant 0 : i32
    %c0_i32_1 = arith.constant 0 : i32
    return %arg0, %c0_i32, %c0_i32_0 : i32, i32, i32
  }
  func.func @transform_1(%arg0: i32) -> (i32, i32) {
    %c0_i32 = arith.constant 0 : i32
    %c0_i32_0 = arith.constant 0 : i32
    %c0_i32_1 = arith.constant 0 : i32
    return %c0_i32, %c0_i32_0 : i32, i32
  }
  func.func @transform_2(%arg0: i32) -> (i32, i32) {
    %c0_i32 = arith.constant 0 : i32
    %c0_i32_0 = arith.constant 0 : i32
    %c0_i32_1 = arith.constant 0 : i32
    return %c0_i32, %c0_i32_0 : i32, i32
  }
  func.func @transform_3(%arg0: i32) -> (i32, i32, i32) {
    %c0_i32 = arith.constant 0 : i32
    %c0_i32_0 = arith.constant 0 : i32
    %c0_i32_1 = arith.constant 0 : i32
    return %arg0, %c0_i32, %c0_i32_0 : i32, i32, i32
  }
}

</mosaic_0001>

<bundles_post_ra>
// kernel: id_loss.2
= control target key start
LH: loop header
LB: loop body
LE: loop exit
PB: predicated region body
PF: predicated region fallthrough
CT: control target
= control target key end

     0   :  { %8 = vsyncpa [#allocation3], 0  ;;  %s977_s0 = inlined_call_operand.vmem [shape: f32[12,16,16], index: 0, kind: input, shape index: {}]   ;;  %s978_s1 = inlined_call_operand.hbm [shape: f32[112,16], index: 1, kind: input, shape index: {}]   ;;  %s979_s2 = inlined_call_operand.hbm [shape: f32[16,112], index: 2, kind: input, shape index: {}]   ;;  %s980_s3 = inlined_call_operand.vmem [shape: bf16[12,112,112], index: 3, kind: output, shape index: {}]  }
   0x1   :  { %9 = vsyncpa [#allocation5], 0  ;;  %s865_s12 = smov 0  }
   0x2 LB: > { %s871_s13 = sadd.s32 4294967295, %s839_s12   ;;  %p628_p0 = scmp.ge.s32.totalorder %s839_s12, 1  ;;  %s839_s12 = sphi %s865_s12, %s15_s12  }
   0x3   : > { %p114_p1 = scmp.lt.s32.totalorder %s839_s12, 13  ;;  %s841_s14 = smov [#allocation2]  }
   0x4   : > { %s126_s15 = sshll.u32 %s841_s14, 4  ;;  %p757_p3 = scmp.eq.s32.totalorder %s871_s13, 0  ;;  %s127_s15 = int_to_ptr.vmem [resolvable:$true] %s126_s15 }
   0x5   : > { %p875_p2 = pnand %p628_p0, %p114_p1  ;;  %s842_s17 = smov [#allocation4]  }
   0x6   : > { %s139_s18 = sshll.u32 %s842_s17, 4  ;;  %s784_s20 = scalar_lea.vmem %s127_s15, 1792  ;;  %s140_s18 = int_to_ptr.vmem [resolvable:$true] %s139_s18 }
   0x7   : > { %p750_p4 = pneg %p875_p2  ;;  %p785_p7 = scmp.ne.s32.totalorder %s127_s15, %s784_s20 }
   0x8   : > { %p792_p10 = scmp.lt.s32.totalorder %s127_s15, %s127_s15  ;;  %p793_p11 = scmp.lt.s32.totalorder %s784_s20, %s784_s20 }
   0x9   : > { %p884_p5 = pnand %p757_p3, %p750_p4 }
   0xa   : > { %p794_p12 = por %p793_p11, %p792_p10 }
   0xb   : > { %p775_p6 = pneg %p884_p5 }
   0xd   : > { %p787_p8 = pnand %p785_p7, %p775_p6 }
   0xf   : > { %p788_p9 = pneg %p787_p8 }
  0x11   : > { %p795_p13 = pnand %p794_p12, %p788_p9 }
  0x13   : > { %798 = shalt.err (!%p795_p13)
}
  0x14   : > { %s843_s21 = smov 128   ;;  %s844_s22 = smov 8  }
  0x15   : > { %753 = dma.hbm_to_vmem [thread:$0]  (!%p884_p5), %s978_s1, 1792, %s127_s15, [#allocation3], %s843_s21, %s843_s21, %s844_s22  }
  0x16   : > { %s810_s25 = scalar_lea.vmem %s140_s18, 256  ;;  %p818_p7 = scmp.lt.s32.totalorder %s140_s18, %s140_s18 }
  0x17   : > { %p811_p0 = scmp.ne.s32.totalorder %s140_s18, %s810_s25  ;;  %p819_p8 = scmp.lt.s32.totalorder %s810_s25, %s810_s25 }
  0x19   : > { %p813_p1 = pnand %p811_p0, %p775_p6  ;;  %p820_p10 = por %p819_p8, %p818_p7 }
  0x1b   : > { %p814_p4 = pneg %p813_p1 }
  0x1d   : > { %p821_p9 = pnand %p820_p10, %p814_p4 }
  0x1f   : > { %824 = shalt.err (!%p821_p9)
}
  0x20   : > { %756 = dma.hbm_to_vmem [thread:$0]  (!%p884_p5), %s979_s2, 256, %s140_s18, [#allocation5], %s843_s21, %s843_s21, %s844_s22  }
  0x21   : > { %163 = sbr.rel (%p875_p2) target bundleno = 455 (0x1c7), region = 32 }
  0x26   : > { %830 = dma.done.wait (%p757_p3), [#allocation3], 1792  }
  0x27   : > { %832 = vsyncadd (%p757_p3), [#allocation3], 4294965504 }
  0x28   : > { %834 = dma.done.wait (%p757_p3), [#allocation5], 256  }
  0x29   : > { %836 = vsyncadd (%p757_p3), [#allocation5], 4294967040  ;;  %p191_p6 = scmp.lt.s32.totalorder %s871_s13, 11  ;;  %vm205_vm0 = vcmask 130048   ;;  %v204_v0 = vld [vmem:[#allocation4 + $0x8] sm:$0xff]  ;;  %v203_v1 = vld [vmem:[#allocation4] sm:$0xff] }
  0x2a   : > { %705 = vmatprep.subr.mxu0 %v204_v0  ;;  %v293_v4 = vld [vmem:[#allocation2 + $0x30] sm:$0xff]  ;;  %v287_v5 = vld [vmem:[#allocation2] sm:$0xff]  ;;  %v294_v8 = vld [vmem:[#allocation2 + $0x38] sm:$0xff]  ;;  %vm534_vm1 = vcmask 912384  }
  0x2b   : > { %s984_s13 = smov (!%p191_p6, %s871_s13), 11  ;;  %706 = vmatpush3.msra.mxu0 %v204_v0  ;;  %725 = vmatprep.mubr.msk.f32.mxu1 %vm205_vm0, %v293_v4  ;;  %v288_v9 = vld [vmem:[#allocation2 + $0x8] sm:$0xff]  ;;  %v295_v10 = vld [vmem:[#allocation2 + $0x40] sm:$0xff]  ;;  %v289_v11 = vld [vmem:[#allocation2 + $0x10] sm:$0xff] }
  0x2c   : > { %s670_s28 = sshll.u32 %s984_s13, 4  ;;  %707 = vmatprep.subr.mxu0 %v203_v1  ;;  %v296_v12 = vld [vmem:[#allocation2 + $0x48] sm:$0xff]  ;;  %v290_v13 = vld [vmem:[#allocation2 + $0x18] sm:$0xff]  ;;  %v297_v14 = vld [vmem:[#allocation2 + $0x50] sm:$0xff]  ;;  %s741_s5 = smul.u32 56, %s984_s13 }
  0x2d   : > { %s195_s4 = scalar_lea.vmem %s977_s0, %s670_s28  ;;  %708 = vmatpush3.msra.mxu0 %v203_v1  ;;  %v291_v15 = vld [vmem:[#allocation2 + $0x20] sm:$0xff]  ;;  %v298_v16 = vld [vmem:[#allocation2 + $0x58] sm:$0xff]  ;;  %v292_v17 = vld [vmem:[#allocation2 + $0x28] sm:$0xff] }
  0x2e   : > { %v201_v2 = vld [vmem:[%s195_s4] sm:$0xff]  ;;  %v202_v3 = vld [vmem:[%s195_s4 + $0x8] sm:$0xff]  ;;  %s944_s8 = scalar_lea.vmem %s980_s3, %s741_s5 }
  0x2f   : > { %709 = vmatprep.mubr.msk.f32.mxu0 %vm205_vm0, %v201_v2  ;;  %v299_v18 = vld [vmem:[#allocation2 + $0x60] sm:$0xff]  ;;  %v300_v19 = vld [vmem:[#allocation2 + $0x68] sm:$0xff] }
  0x30   : > { %710 = vmatmul.mubr.msk.f32.vlgmr.msra.gmra.mxu0 %vm205_vm0, %v202_v3 }
  0x31   : > { %716 = vmatprep.mubr.msk.f32.mxu0 %vm205_vm0, %v287_v5 }
  0xf0   : > { %v711_v6 = vpop.f32.mrf.mxu0 }
  0xf1   : > { %712 = vmatprep.subr.mxu0 %v711_v6  ;;  %737 = vmatprep.subr.mxu1 %v711_v6 }
  0xf2   : > { %v278_v7 = vpop.f32.mrf.mxu0  ;;  %713 = vmatpush3.msra.mxu0 %v711_v6  ;;  %739 = vmatpush3.msra.mxu1 %v711_v6 }
  0xf3   : > { %714 = vmatprep.subr.mxu0 %v278_v7  ;;  %738 = vmatprep.subr.mxu1 %v278_v7 }
  0xf4   : > { %715 = vmatpush3.msra.mxu0 %v278_v7  ;;  %740 = vmatpush3.msra.mxu1 %v278_v7 }
  0xf5   : > { %726 = vmatmul.mubr.msk.f32.vlgmr.msra.gmra.mxu1 %vm205_vm0, %v294_v8  ;;  %717 = vmatmul.mubr.msk.f32.vlgmr.msra.gmra.mxu0 %vm205_vm0, %v288_v9 }
  0xf6   : > { %728 = vmatprep.mubr.msk.f32.mxu1 %vm205_vm0, %v295_v10  ;;  %719 = vmatprep.mubr.msk.f32.mxu0 %vm205_vm0, %v289_v11 }
  0xf9   : > { %729 = vmatmul.mubr.msk.f32.gmra.mxu1 %vm205_vm0, %v296_v12  ;;  %720 = vmatmul.mubr.msk.f32.gmra.mxu0 %vm205_vm0, %v290_v13 }
  0xfa   : > { %731 = vmatprep.mubr.msk.f32.mxu1 %vm205_vm0, %v297_v14  ;;  %722 = vmatprep.mubr.msk.f32.mxu0 %vm205_vm0, %v291_v15 }
  0xfd   : > { %732 = vmatmul.mubr.msk.f32.gmra.mxu1 %vm205_vm0, %v298_v16  ;;  %723 = vmatmul.mubr.msk.f32.gmra.mxu0 %vm205_vm0, %v292_v17 }
  0xfe   : > { %734 = vmatprep.mubr.msk.f32.mxu1 %vm205_vm0, %v299_v18 }
 0x101   : > { %735 = vmatmul.mubr.msk.f32.gmra.mxu1 %vm205_vm0, %v300_v19 }
 0x1b5   : > { %v727_v20 = vpop.f32.mrf.mxu1  ;;  %v718_v21 = vpop.f32.mrf.mxu0 }
 0x1b6   : > { %v678_v22 = vpack.c.bf16 %v727_v20, %v727_v20  ;;  %v672_v23 = vpack.c.bf16 %v718_v21, %v718_v21 }
 0x1b7   : > { %v439_v24 = vpop.f32.mrf.mxu1  ;;  %v409_v25 = vpop.f32.mrf.mxu0 }
 0x1b8   : > { %542 = vst.msk [vmem:[%s944_s8 + $0x1c] sm:$0xf] %vm534_vm1, %v678_v22  ;;  %536 = vst.msk [vmem:[%s944_s8 + $0x4] sm:$0xf] %vm534_vm1, %v672_v23  ;;  %v677_v26 = vpack.c.bf16 %v439_v24, %v439_v24  ;;  %v671_v27 = vpack.c.bf16 %v409_v25, %v409_v25 }
 0x1b9   : > { %v730_v28 = vpop.f32.mrf.mxu1  ;;  %v721_v29 = vpop.f32.mrf.mxu0 }
 0x1ba   : > { %541 = vst.msk [vmem:[%s944_s8 + $0x18] sm:$0xf] %vm534_vm1, %v677_v26  ;;  %535 = vst.msk [vmem:[%s944_s8] sm:$0xf] %vm534_vm1, %v671_v27  ;;  %v680_v30 = vpack.c.bf16 %v730_v28, %v730_v28  ;;  %v674_v31 = vpack.c.bf16 %v721_v29, %v721_v29 }
 0x1bb   : > { %v449_v32 = vpop.f32.mrf.mxu1  ;;  %v419_v33 = vpop.f32.mrf.mxu0 }
 0x1bc   : > { %544 = vst.msk [vmem:[%s944_s8 + $0x24] sm:$0xf] %vm534_vm1, %v680_v30  ;;  %538 = vst.msk [vmem:[%s944_s8 + $0xc] sm:$0xf] %vm534_vm1, %v674_v31  ;;  %v679_v34 = vpack.c.bf16 %v449_v32, %v449_v32  ;;  %v673_v35 = vpack.c.bf16 %v419_v33, %v419_v33 }
 0x1bd   : > { %v733_v36 = vpop.f32.mrf.mxu1  ;;  %v724_v37 = vpop.f32.mrf.mxu0 }
 0x1be   : > { %543 = vst.msk [vmem:[%s944_s8 + $0x20] sm:$0xf] %vm534_vm1, %v679_v34  ;;  %537 = vst.msk [vmem:[%s944_s8 + $0x8] sm:$0xf] %vm534_vm1, %v673_v35  ;;  %v682_v38 = vpack.c.bf16 %v733_v36, %v733_v36  ;;  %v676_v39 = vpack.c.bf16 %v724_v37, %v724_v37 }
 0x1bf   : > { %v459_v40 = vpop.f32.mrf.mxu1  ;;  %v429_v41 = vpop.f32.mrf.mxu0 }
 0x1c0   : > { %546 = vst.msk [vmem:[%s944_s8 + $0x2c] sm:$0xf] %vm534_vm1, %v682_v38  ;;  %540 = vst.msk [vmem:[%s944_s8 + $0x14] sm:$0xf] %vm534_vm1, %v676_v39  ;;  %v681_v42 = vpack.c.bf16 %v459_v40, %v459_v40  ;;  %v675_v43 = vpack.c.bf16 %v429_v41, %v429_v41 }
 0x1c1   : > { %v736_v44 = vpop.f32.mrf.mxu1 }
 0x1c2   : > { %545 = vst.msk [vmem:[%s944_s8 + $0x28] sm:$0xf] %vm534_vm1, %v681_v42  ;;  %539 = vst.msk [vmem:[%s944_s8 + $0x10] sm:$0xf] %vm534_vm1, %v675_v43  ;;  %v684_v45 = vpack.c.bf16 %v736_v44, %v736_v44 }
 0x1c3   : > { %v469_v46 = vpop.f32.mrf.mxu1 }
 0x1c4   : > { %548 = vst.msk [vmem:[%s944_s8 + $0x34] sm:$0xf] %vm534_vm1, %v684_v45  ;;  %v683_v47 = vpack.c.bf16 %v469_v46, %v469_v46 }
 0x1c6   : > { %547 = vst.msk [vmem:[%s944_s8 + $0x30] sm:$0xf] %vm534_vm1, %v683_v47 }
 0x1c7 PF: > { %s15_s12 = sadd.s32 1, %s839_s12  }
 0x1c8   : > { %p12_p2 = scmp.ge.s32.totalorder %s15_s12, 14  }
 0x1ca   :  { %14 = sbr.rel (!%p12_p2) target bundleno = 2 (0x2), region = 71 }
 0x1cf   :  { %570 = vsyncpa [#allocation3], 1 }
 0x1d0   :  { %572 = vsyncpa [#allocation3 + $0x1], 1 }
 0x1d1   :  { %573 = vsyncpa [#allocation5], 1 }

// kernel: id_loss.3
= control target key start
LH: loop header
LB: loop body
LE: loop exit
PB: predicated region body
PF: predicated region fallthrough
CT: control target
= control target key end

     0   :  { %7 = vsyncpa [#allocation4], 0  ;;  %s9625_s0 = inlined_call_operand.vmem [shape: bf16[4,37632], index: 0, kind: input, shape index: {}]   ;;  %s9626_s1 = inlined_call_operand.hbm [shape: bf16[2,37632,256], index: 1, kind: input, shape index: {}]   ;;  %s9627_s2 = inlined_call_operand.vmem [shape: f32[4,512], index: 2, kind: output, shape index: {}]  }
   0x1   :  { %9 = vsyncpa [#allocation4 + $0x1], 0  ;;  %s8517_s9 = smov 0   ;;  %s8519_s10 = smov 0  }
   0x2   :  { %s8521_s11 = smov 0   ;;  %s8523_s12 = smov 0  }
   0x3   :  { %s8525_s13 = smov 0   ;;  %s8527_s14 = smov 0  }
   0x4   :  { %s8529_s15 = smov 0   ;;  %s8531_s16 = smov 0  }
   0x5 LB: > { %s6333_s17 = sadd.s32 4294967295, %s8494_s16   ;;  %s24_s18 = sadd.s32 1, %s8486_s14  ;;  %s8494_s16 = sphi %s8531_s16, %s15_s16   ;;  %s8490_s15 = sphi %s8529_s15, %s9636_s15   ;;  %s8486_s14 = sphi %s8527_s14, %s9635_s14   ;;  %s8482_s13 = sphi %s8525_s13, %s9634_s13   ;;  %s8478_s12 = sphi %s8523_s12, %s9633_s12   ;;  %s8474_s11 = sphi %s8521_s11, %s9632_s11   ;;  %s8470_s10 = sphi %s8519_s10, %s9631_s10   ;;  %s8466_s9 = sphi %s8517_s9, %s9630_s9  }
   0x6   : > { %p25_p0 = scmp.ge.s32.totalorder %s24_s18, 6  ;;  %s27_s19 = sadd.s32 1, %s8490_s15 }
   0x7   : > { %s62_s20 = sadd.s32 1, %s8474_s11  ;;  %p69_p1 = scmp.ne.s32.totalorder %s8474_s11, %s8470_s10 }
   0x8   : > { %s9638_s18 = smov (%p25_p0, %s24_s18), 0  ;;  %s9640_s19 = smov (!%p25_p0, %s27_s19), %s8490_s15 }
   0x9   : > { %s58_s21 = ssub.s32 %s8486_s14, %s9638_s18  ;;  %p70_p2 = scmp.eq.s32.totalorder %s8494_s16, 0 }
   0xa   : > { %p29_p3 = scmp.ge.s32.totalorder %s9640_s19, 2  ;;  %p75_p4 = scmp.ne.s32.totalorder %s8470_s10, %s8466_s9 }
   0xb   : > { %p71_p5 = por %p70_p2, %p69_p1  ;;  %p76_p6 = scmp.eq.s32.totalorder %s6333_s17, 0 }
   0xc   : > { %s9642_s19 = smov (%p29_p3, %s9640_s19), 0  ;;  %p7142_p8 = scmp.lt.s32.totalorder %s8494_s16, 12 }
   0xd   : > { %p8570_p7 = por %p76_p6, %p75_p4  ;;  %s57_s23 = ssub.s32 %s8490_s15, %s9642_s19 }
   0xe   : > { %s59_s24 = sor.u32 %s58_s21, %s57_s23  ;;  %s134_s25 = sand.u32 1, %s8474_s11  }
   0xf   : > { %p60_p9 = scmp.eq.s32.totalorder %s59_s24, 0  ;;  %s7133_s26 = smul.u32 6272, %s134_s25 }
  0x10   : > { %p8578_p10 = pnand %p7142_p8, %p71_p5  ;;  %s7132_s29 = smul.u32 1568, %s8486_s14 }
  0x11   : > { %s8583_s28 = scalar_select %p60_p9, %s8474_s11, %s62_s20  }
  0x12   : > { %s7134_s30 = smul.u32 9408, %s8490_s15  ;;  %s138_s3 = scalar_lea.vmem [#allocation3], %s7133_s26 }
  0x13   : > { %s148_s4 = sshll.u32 %s138_s3, 4  ;;  %p6339_p11 = scmp.ge.s32.totalorder %s8494_s16, 1  ;;  %s149_s4 = int_to_ptr.vmem [resolvable:$true] %s148_s4 }
  0x14   : > { %s145_s5 = sadd.s32 %s7134_s30, %s7132_s29  ;;  %s135_s17 = scalar_lea.sflag [#allocation4], %s134_s25 }
  0x15   : > { %s6338_s6 = sshll.u32 %s145_s5, 6  ;;  %p8402_p12 = pneg %p8578_p10 }
  0x16   : > { %s147_s9 = scalar_lea.hbm %s9626_s1, %s6338_s6  ;;  %s8413_s21 = scalar_lea.vmem %s149_s4, 100352 }
  0x17   : > { %p8414_p13 = scmp.ne.s32.totalorder %s149_s4, %s8413_s21  ;;  %s8496_s20 = smov [#allocation3]  }
  0x18   : > { %s8418_s23 = sshll.u32 %s8496_s20, 4  ;;  %s8419_s23 = int_to_ptr.vmem [resolvable:$false] %s8418_s23 }
  0x19   : > { %p8416_p0 = pnand %p8414_p13, %p8402_p12  ;;  %s8420_s24 = scalar_lea.vmem %s8419_s23, 200704 }
  0x1a   : > { %p8421_p2 = scmp.lt.s32.totalorder %s149_s4, %s8419_s23  ;;  %p8422_p3 = scmp.lt.s32.totalorder %s8420_s24, %s8413_s21 }
  0x1b   : > { %p8417_p1 = pneg %p8416_p0 }
  0x1c   : > { %p8423_p4 = por %p8422_p3, %p8421_p2 }
  0x1e   : > { %p8424_p5 = pnand %p8423_p4, %p8417_p1 }
  0x20   : > { %8427 = shalt.err (!%p8424_p5)
}
  0x21   : > { %s8497_s26 = smov 128   ;;  %s8498_s25 = smov 8  }
  0x22   : > { %7141 = dma.hbm_to_vmem [thread:$0]  (!%p8578_p10), %s147_s9, 100352, %s149_s4, %s135_s17, %s8497_s26, %s8497_s26, %s8498_s25  }
  0x23   : > { %p156_p6 = scmp.lt.s32.totalorder %s8494_s16, 13 }
  0x25   : > { %p157_p8 = pnand %p6339_p11, %p156_p6 }
  0x26   : > { %s162_s29 = sand.u32 (!%p157_p8), 1, %s8470_s10  }
  0x27   : > { %160 = sbr.rel (%p157_p8) target bundleno = 1066 (0x42a), region = 28  ;;  %s163_s3 = scalar_lea.sflag (!%p157_p8), [#allocation4], %s162_s29 }
  0x28   : > { %s7135_s30 = smul.u32 (!%p157_p8), 6272, %s162_s29 }
  0x2a   : > { %s8599_s5 = scalar_lea.vmem (!%p157_p8), [#allocation3], %s7135_s30 }
  0x2c   : > { %8461 = dma.done.wait (%p8570_p7), %s163_s3, 100352  }
  0x2d   : > { %8463 = vsyncadd (%p8570_p7), %s163_s3, 4294866944  ;;  %s192_s27 = smul.u32 49, %s8478_s12  ;;  %s6341_s4 = sshll.u32 %s8482_s13, 1 }
  0x2e   : > { %p200_p9 = scmp.lt.s32.totalorder %s6341_s4, 3  ;;  %p6343_p7 = scmp.ne.s32.totalorder %s8478_s12, 0 }
  0x2f   : > { %p193_p10 = scmp.lt.s32.totalorder %s192_s27, 293 }
  0x30   : > { %s9644_s4 = smov (!%p200_p9, %s6341_s4), 3  ;;  %209 = sbr.rel (%p6343_p7) target bundleno = 55 (0x37), region = 36 }
  0x31   : > { %s9646_s27 = smov (!%p193_p10, %s192_s27), 293  ;;  %s6342_s6 = sshll.u32 %s9644_s4, 2 }
  0x32   : > { %s6340_s7 = sshll.u32 %s9646_s27, 1  ;;  %s8610_s17 = scalar_lea.vmem %s9627_s2, %s6342_s6 }
  0x33   : > { %s8615_s22 = scalar_lea.vmem %s9625_s0, %s6340_s7 }
  0x35   : > { %v8499_v0 = vmov 0.0  }
  0x36   : > { %210 = vst [vmem:[#allocation2] sm:$0xff] %v8499_v0 }
  0x37 PF: > { %v7212_v1 = vld [vmem:[%s8599_s5 + $0x74] ss:$8 sps:$4 sm:$0xff]   ;;  %v7216_v3 = vld [vmem:[%s8599_s5 + $0x70] ss:$8 sps:$4 sm:$0xff]   ;;  %v7218_v5 = vld [vmem:[%s8599_s5 + $0x64] ss:$8 sps:$4 sm:$0xff]   ;;  %v1026_v39 = vlaneseq }
  0x38   : > { %v7214_v2 = vld [vmem:[%s8599_s5 + $0x174] ss:$8 sps:$4 sm:$0xff]   ;;  %5202 = vmatprep.subr.bf16.mxu0 %v7212_v1  ;;  %v7217_v4 = vld [vmem:[%s8599_s5 + $0x170] ss:$8 sps:$4 sm:$0xff]   ;;  %v7220_v6 = vld [vmem:[%s8599_s5 + $0x164] ss:$8 sps:$4 sm:$0xff]  }
  0x39   : > { %5243 = vmatprep.subr.bf16.mxu1 %v7214_v2  ;;  %5203 = vmatpush1.bf16.msra.mxu0 %v7216_v3  ;;  %v7222_v7 = vld [vmem:[%s8599_s5 + $0x60] ss:$8 sps:$4 sm:$0xff]   ;;  %v7224_v9 = vld [vmem:[%s8599_s5 + $0x54] ss:$8 sps:$4 sm:$0xff]   ;;  %v7228_v11 = vld [vmem:[%s8599_s5 + $0x50] ss:$8 sps:$4 sm:$0xff]  }
  0x3a   : > { %5244 = vmatpush1.bf16.msra.mxu1 %v7217_v4  ;;  %5204 = vmatprep.subr.bf16.mxu0 %v7218_v5  ;;  %v7223_v8 = vld [vmem:[%s8599_s5 + $0x160] ss:$8 sps:$4 sm:$0xff]   ;;  %v7226_v10 = vld [vmem:[%s8599_s5 + $0x154] ss:$8 sps:$4 sm:$0xff]   ;;  %v7229_v12 = vld [vmem:[%s8599_s5 + $0x150] ss:$8 sps:$4 sm:$0xff]  }
  0x3b   : > { %5245 = vmatprep.subr.bf16.mxu1 %v7220_v6  ;;  %v7230_v13 = vld [vmem:[%s8599_s5 + $0x44] ss:$8 sps:$4 sm:$0xff]   ;;  %v7234_v15 = vld [vmem:[%s8599_s5 + $0x40] ss:$8 sps:$4 sm:$0xff]   ;;  %v7236_v17 = vld [vmem:[%s8599_s5 + $0x34] ss:$8 sps:$4 sm:$0xff]  }
  0x3c   : > { %v7232_v14 = vld [vmem:[%s8599_s5 + $0x144] ss:$8 sps:$4 sm:$0xff]   ;;  %v7235_v16 = vld [vmem:[%s8599_s5 + $0x140] ss:$8 sps:$4 sm:$0xff]   ;;  %v7238_v18 = vld [vmem:[%s8599_s5 + $0x134] ss:$8 sps:$4 sm:$0xff]  }
  0x3d   : > { %5205 = vmatpush1.bf16.msra.mxu0 %v7222_v7  ;;  %v7240_v19 = vld [vmem:[%s8599_s5 + $0x30] ss:$8 sps:$4 sm:$0xff]   ;;  %v7242_v21 = vld [vmem:[%s8599_s5 + $0x24] ss:$8 sps:$4 sm:$0xff]   ;;  %v7246_v23 = vld [vmem:[%s8599_s5 + $0x20] ss:$8 sps:$4 sm:$0xff]  }
  0x3e   : > { %5246 = vmatpush1.bf16.msra.mxu1 %v7223_v8  ;;  %5206 = vmatprep.subr.bf16.mxu0 %v7224_v9  ;;  %v7241_v20 = vld [vmem:[%s8599_s5 + $0x130] ss:$8 sps:$4 sm:$0xff]   ;;  %v7244_v22 = vld [vmem:[%s8599_s5 + $0x124] ss:$8 sps:$4 sm:$0xff]   ;;  %v7247_v24 = vld [vmem:[%s8599_s5 + $0x120] ss:$8 sps:$4 sm:$0xff]  }
  0x3f   : > { %5247 = vmatprep.subr.bf16.mxu1 %v7226_v10  ;;  %v7248_v25 = vld [vmem:[%s8599_s5 + $0x14] ss:$8 sps:$4 sm:$0xff]   ;;  %v7252_v27 = vld [vmem:[%s8599_s5 + $0x10] ss:$8 sps:$4 sm:$0xff]   ;;  %v7254_v29 = vld [vmem:[%s8599_s5 + $0x4] ss:$8 sps:$4 sm:$0xff]  }
  0x40   : > { %v7250_v26 = vld [vmem:[%s8599_s5 + $0x114] ss:$8 sps:$4 sm:$0xff]   ;;  %v7253_v28 = vld [vmem:[%s8599_s5 + $0x110] ss:$8 sps:$4 sm:$0xff]   ;;  %v7256_v30 = vld [vmem:[%s8599_s5 + $0x104] ss:$8 sps:$4 sm:$0xff]  }
  0x41   : > { %5207 = vmatpush1.bf16.msra.mxu0 %v7228_v11  ;;  %v7258_v31 = vld [vmem:[%s8599_s5] ss:$8 sps:$4 sm:$0xff]   ;;  %v7260_v33 = vld [vmem:[%s8599_s5 + $0xf4] ss:$8 sps:$4 sm:$0xff]   ;;  %v7264_v35 = vld [vmem:[%s8599_s5 + $0xf0] ss:$8 sps:$4 sm:$0xff]  }
  0x42   : > { %5248 = vmatpush1.bf16.msra.mxu1 %v7229_v12  ;;  %5208 = vmatprep.subr.bf16.mxu0 %v7230_v13  ;;  %v7259_v32 = vld [vmem:[%s8599_s5 + $0x100] ss:$8 sps:$4 sm:$0xff]   ;;  %v7262_v34 = vld [vmem:[%s8599_s5 + $0x1f4] ss:$8 sps:$4 sm:$0xff]   ;;  %v7265_v36 = vld [vmem:[%s8599_s5 + $0x1f0] ss:$8 sps:$4 sm:$0xff]  }
  0x43   : > { %5249 = vmatprep.subr.bf16.mxu1 %v7232_v14  ;;  %v8500_v37 = vmov 1983009808   ;;  %v7266_v40 = vld [vmem:[%s8599_s5 + $0xe4] ss:$8 sps:$4 sm:$0xff]   ;;  %v7270_v42 = vld [vmem:[%s8599_s5 + $0xe0] ss:$8 sps:$4 sm:$0xff]  }
  0x44   : > { %v1024_v38 = vunpack.c.l.s4 %v8500_v37  ;;  %v7268_v41 = vld [vmem:[%s8599_s5 + $0x1e4] ss:$8 sps:$4 sm:$0xff]   ;;  %v1027_v44 = vshrl.u32 %v1026_v39, 7  ;;  %v7271_v45 = vld [vmem:[%s8599_s5 + $0x1e0] ss:$8 sps:$4 sm:$0xff]   ;;  %v212_v53 = vld [vmem:[%s8615_s22] sm:$0xff] }
  0x45   : > { %5209 = vmatpush1.bf16.msra.mxu0 %v7234_v15  ;;  %v7272_v46 = vld [vmem:[%s8599_s5 + $0xd4] ss:$8 sps:$4 sm:$0xff]   ;;  %v7276_v48 = vld [vmem:[%s8599_s5 + $0xd0] ss:$8 sps:$4 sm:$0xff]   ;;  %v7278_v51 = vld [vmem:[%s8599_s5 + $0xc4] ss:$8 sps:$4 sm:$0xff]   ;;  %v1022_v56 = vcombine.high %v212_v53, %v212_v53 }
  0x46   : > { %5250 = vmatpush1.bf16.msra.mxu1 %v7235_v16  ;;  %5210 = vmatprep.subr.bf16.mxu0 %v7236_v17  ;;  %v1025_v43 = vunpack.c.0.s8 %v1024_v38  ;;  %v7274_v47 = vld [vmem:[%s8599_s5 + $0x1d4] ss:$8 sps:$4 sm:$0xff]   ;;  %v7277_v49 = vld [vmem:[%s8599_s5 + $0x1d0] ss:$8 sps:$4 sm:$0xff]   ;;  %v7280_v52 = vld [vmem:[%s8599_s5 + $0x1c4] ss:$8 sps:$4 sm:$0xff]  }
  0x47   : > { %5251 = vmatprep.subr.bf16.mxu1 %v7238_v18  ;;  %v7282_v54 = vld [vmem:[%s8599_s5 + $0xc0] ss:$8 sps:$4 sm:$0xff]   ;;  %v7284_v58 = vld [vmem:[%s8599_s5 + $0xb4] ss:$8 sps:$4 sm:$0xff]   ;;  %v7288_v62 = vld [vmem:[%s8599_s5 + $0xb0] ss:$8 sps:$4 sm:$0xff]  }
  0x48   : > { %v8662_v50 = vsub.s32 %v1025_v43, %v1027_v44  ;;  %v7283_v57 = vld [vmem:[%s8599_s5 + $0x1c0] ss:$8 sps:$4 sm:$0xff]   ;;  %v7286_v59 = vld [vmem:[%s8599_s5 + $0x1b4] ss:$8 sps:$4 sm:$0xff]   ;;  %v7289_v0 = vld [vmem:[%s8599_s5 + $0x1b0] ss:$8 sps:$4 sm:$0xff]  }
  0x49   : > { %5211 = vmatpush1.bf16.msra.mxu0 %v7240_v19  ;;  %v7290_v1 = vld [vmem:[%s8599_s5 + $0xa4] ss:$8 sps:$4 sm:$0xff]   ;;  %v7294_v3 = vld [vmem:[%s8599_s5 + $0xa0] ss:$8 sps:$4 sm:$0xff]   ;;  %v7296_v5 = vld [vmem:[%s8599_s5 + $0x94] ss:$8 sps:$4 sm:$0xff]  }
  0x4a   : > { %5252 = vmatpush1.bf16.msra.mxu1 %v7241_v20  ;;  %5212 = vmatprep.subr.bf16.mxu0 %v7242_v21  ;;  %v1029_v55 = vrot.slane %v212_v53, %v8662_v50  ;;  %v1036_v61 = vrot.slane %v1022_v56, %v8662_v50  ;;  %v7292_v2 = vld [vmem:[%s8599_s5 + $0x1a4] ss:$8 sps:$4 sm:$0xff]   ;;  %v7295_v4 = vld [vmem:[%s8599_s5 + $0x1a0] ss:$8 sps:$4 sm:$0xff]   ;;  %v7298_v6 = vld [vmem:[%s8599_s5 + $0x194] ss:$8 sps:$4 sm:$0xff]  }
  0x4b   : > { %5253 = vmatprep.subr.bf16.mxu1 %v7244_v22  ;;  %v7300_v7 = vld [vmem:[%s8599_s5 + $0x90] ss:$8 sps:$4 sm:$0xff]   ;;  %v7302_v9 = vld [vmem:[%s8599_s5 + $0x84] ss:$8 sps:$4 sm:$0xff]   ;;  %v7306_v11 = vld [vmem:[%s8599_s5 + $0x80] ss:$8 sps:$4 sm:$0xff]  }
  0x4c   : > { %v1037_v60 = vcombine.high %v1029_v55, %v1029_v55  ;;  %v1038_v63 = vcombine.high %v1036_v61, %v1036_v61  ;;  %v7301_v8 = vld [vmem:[%s8599_s5 + $0x190] ss:$8 sps:$4 sm:$0xff]   ;;  %v7304_v10 = vld [vmem:[%s8599_s5 + $0x184] ss:$8 sps:$4 sm:$0xff]   ;;  %v7307_v12 = vld [vmem:[%s8599_s5 + $0x180] ss:$8 sps:$4 sm:$0xff]  }
  0x4d   : > { %5213 = vmatpush1.bf16.msra.mxu0 %v7246_v23  ;;  %v7311_v13 = vld [vmem:[%s8599_s5 + $0x274] ss:$8 sps:$4 sm:$0xff]   ;;  %v7309_v15 = vld [vmem:[%s8599_s5 + $0x270] ss:$8 sps:$4 sm:$0xff]   ;;  %v7317_v17 = vld [vmem:[%s8599_s5 + $0x264] ss:$8 sps:$4 sm:$0xff]  }
  0x4e   : > { %5254 = vmatpush1.bf16.msra.mxu1 %v7247_v24  ;;  %5214 = vmatprep.subr.bf16.mxu0 %v7248_v25  ;;  %v7314_v14 = vld [vmem:[%s8599_s5 + $0x374] ss:$8 sps:$4 sm:$0xff]   ;;  %v7312_v16 = vld [vmem:[%s8599_s5 + $0x370] ss:$8 sps:$4 sm:$0xff]   ;;  %v7320_v18 = vld [vmem:[%s8599_s5 + $0x364] ss:$8 sps:$4 sm:$0xff]  }
  0x4f   : > { %5255 = vmatprep.subr.bf16.mxu1 %v7250_v26  ;;  %5234 = vmatprep.mubr.bf16.mxu0 %v1037_v60  ;;  %v7315_v19 = vld [vmem:[%s8599_s5 + $0x260] ss:$8 sps:$4 sm:$0xff]   ;;  %v7323_v21 = vld [vmem:[%s8599_s5 + $0x254] ss:$8 sps:$4 sm:$0xff]   ;;  %v7321_v23 = vld [vmem:[%s8599_s5 + $0x250] ss:$8 sps:$4 sm:$0xff]  }
  0x50   : > { %5275 = vmatprep.mubr.bf16.mxu1 %v1038_v63  ;;  %v7318_v20 = vld [vmem:[%s8599_s5 + $0x360] ss:$8 sps:$4 sm:$0xff]   ;;  %v7326_v22 = vld [vmem:[%s8599_s5 + $0x354] ss:$8 sps:$4 sm:$0xff]   ;;  %v7324_v24 = vld [vmem:[%s8599_s5 + $0x350] ss:$8 sps:$4 sm:$0xff]  }
  0x51   : > { %5215 = vmatpush1.bf16.msra.mxu0 %v7252_v27  ;;  %v7329_v25 = vld [vmem:[%s8599_s5 + $0x244] ss:$8 sps:$4 sm:$0xff]   ;;  %v7327_v27 = vld [vmem:[%s8599_s5 + $0x240] ss:$8 sps:$4 sm:$0xff]   ;;  %v7347_v37 = vld [vmem:[%s8599_s5 + $0x214] ss:$8 sps:$4 sm:$0xff]  }
  0x52   : > { %5256 = vmatpush1.bf16.msra.mxu1 %v7253_v28  ;;  %5216 = vmatprep.subr.bf16.mxu0 %v7254_v29  ;;  %v7332_v26 = vld [vmem:[%s8599_s5 + $0x344] ss:$8 sps:$4 sm:$0xff]   ;;  %v7330_v28 = vld [vmem:[%s8599_s5 + $0x340] ss:$8 sps:$4 sm:$0xff]   ;;  %v7335_v29 = vld [vmem:[%s8599_s5 + $0x234] ss:$8 sps:$4 sm:$0xff]  }
  0x53   : > { %5257 = vmatprep.subr.bf16.mxu1 %v7256_v30  ;;  %v7338_v30 = vld [vmem:[%s8599_s5 + $0x334] ss:$8 sps:$4 sm:$0xff]   ;;  %v213_v39 = vld [vmem:[%s8615_s22 + $0x8] sm:$0xff]  ;;  %v7348_v43 = vld [vmem:[%s8599_s5 + $0x310] ss:$8 sps:$4 sm:$0xff]   ;;  %p7129_p11 = scmp.ne.s32.totalorder %s8478_s12, 5 }
  0x54   : > { %v7350_v38 = vld [vmem:[%s8599_s5 + $0x314] ss:$8 sps:$4 sm:$0xff]   ;;  %v7365_v56 = vld [vmem:[%s8599_s5 + $0x2e4] ss:$8 sps:$4 sm:$0xff]   ;;  %v7372_v63 = vld [vmem:[%s8599_s5 + $0x3d0] ss:$8 sps:$4 sm:$0xff]  }
  0x55   : > { %5217 = vmatpush1.bf16.msra.mxu0 %v7258_v31  ;;  %v7333_v31 = vld [vmem:[%s8599_s5 + $0x230] ss:$8 sps:$4 sm:$0xff]   ;;  %v7362_v53 = vld [vmem:[%s8599_s5 + $0x3f4] ss:$8 sps:$4 sm:$0xff]  }
  0x56   : > { %5258 = vmatpush1.bf16.msra.mxu1 %v7259_v32  ;;  %5218 = vmatprep.subr.bf16.mxu0 %v7260_v33  ;;  %v7336_v32 = vld [vmem:[%s8599_s5 + $0x330] ss:$8 sps:$4 sm:$0xff]   ;;  %v7341_v33 = vld [vmem:[%s8599_s5 + $0x224] ss:$8 sps:$4 sm:$0xff]   ;;  %v7371_v60 = vld [vmem:[%s8599_s5 + $0x2d4] ss:$8 sps:$4 sm:$0xff]  }
  0x57   : > { %5259 = vmatprep.subr.bf16.mxu1 %v7262_v34  ;;  %v7344_v34 = vld [vmem:[%s8599_s5 + $0x324] ss:$8 sps:$4 sm:$0xff]  }
  0x59   : > { %5219 = vmatpush2.bf16.msra.mxu0 %v7264_v35  ;;  %v7339_v35 = vld [vmem:[%s8599_s5 + $0x220] ss:$8 sps:$4 sm:$0xff]  }
  0x5a   : > { %5260 = vmatpush2.bf16.msra.mxu1 %v7265_v36  ;;  %5220 = vmatprep.subr.bf16.mxu0 %v7266_v40  ;;  %v7342_v36 = vld [vmem:[%s8599_s5 + $0x320] ss:$8 sps:$4 sm:$0xff]   ;;  %v8715_v40 = vrot.slane %v213_v39, %v8662_v50 }
  0x5b   : > { %5261 = vmatprep.subr.bf16.mxu1 %v7268_v41  ;;  %v1039_v41 = vcombine.high %v213_v39, %v213_v39  ;;  %v7429_v39 = vld [vmem:[%s8599_s5 + $0x544] ss:$8 sps:$4 sm:$0xff]  }
  0x5c   : > { %v1054_v44 = vcombine.high %v8715_v40, %v8715_v40 }
  0x5d   : > { %5221 = vmatpush2.bf16.msra.mxu0 %v7270_v42  ;;  %v7345_v42 = vld [vmem:[%s8599_s5 + $0x210] ss:$8 sps:$4 sm:$0xff]  }
  0x5e   : > { %5262 = vmatpush2.bf16.msra.mxu1 %v7271_v45  ;;  %5222 = vmatprep.subr.bf16.mxu0 %v7272_v46  ;;  %v8722_v45 = vrot.slane %v1039_v41, %v8662_v50  ;;  %v7353_v46 = vld [vmem:[%s8599_s5 + $0x204] ss:$8 sps:$4 sm:$0xff]   ;;  %v7427_v41 = vld [vmem:[%s8599_s5 + $0x540] ss:$8 sps:$4 sm:$0xff]  }
  0x5f   : > { %5263 = vmatprep.subr.bf16.mxu1 %v7274_v47  ;;  %v7356_v47 = vld [vmem:[%s8599_s5 + $0x304] ss:$8 sps:$4 sm:$0xff]  }
  0x61   : > { %5223 = vmatpush2.bf16.msra.mxu0 %v7276_v48  ;;  %v1055_v48 = vcombine.high %v8722_v45, %v8722_v45 }
  0x62   : > { %5264 = vmatpush2.bf16.msra.mxu1 %v7277_v49  ;;  %5224 = vmatprep.subr.bf16.mxu0 %v7278_v51  ;;  %v7351_v49 = vld [vmem:[%s8599_s5 + $0x200] ss:$8 sps:$4 sm:$0xff]  }
  0x63   : > { %5265 = vmatprep.subr.bf16.mxu1 %v7280_v52  ;;  %v7354_v51 = vld [vmem:[%s8599_s5 + $0x300] ss:$8 sps:$4 sm:$0xff]   ;;  %v7359_v52 = vld [vmem:[%s8599_s5 + $0x2f4] ss:$8 sps:$4 sm:$0xff]  }
  0x65   : > { %5225 = vmatpush2.bf16.msra.mxu0 %v7282_v54  ;;  %v7357_v54 = vld [vmem:[%s8599_s5 + $0x2f0] ss:$8 sps:$4 sm:$0xff]  }
  0x66   : > { %5266 = vmatpush2.bf16.msra.mxu1 %v7283_v57  ;;  %5226 = vmatprep.subr.bf16.mxu0 %v7284_v58  ;;  %v7368_v57 = vld [vmem:[%s8599_s5 + $0x3e4] ss:$8 sps:$4 sm:$0xff]   ;;  %v7363_v58 = vld [vmem:[%s8599_s5 + $0x2e0] ss:$8 sps:$4 sm:$0xff]  }
  0x67   : > { %5267 = vmatprep.subr.bf16.mxu1 %v7286_v59  ;;  %v7366_v59 = vld [vmem:[%s8599_s5 + $0x3e0] ss:$8 sps:$4 sm:$0xff]  }
  0x69   : > { %5227 = vmatpush2.bf16.msra.mxu0 %v7288_v62  ;;  %v7369_v62 = vld [vmem:[%s8599_s5 + $0x2d0] ss:$8 sps:$4 sm:$0xff]  }
  0x6a   : > { %5268 = vmatpush2.bf16.msra.mxu1 %v7289_v0  ;;  %5228 = vmatprep.subr.bf16.mxu0 %v7290_v1  ;;  %v7377_v0 = vld [vmem:[%s8599_s5 + $0x2c4] ss:$8 sps:$4 sm:$0xff]  }
  0x6b   : > { %5269 = vmatprep.subr.bf16.mxu1 %v7292_v2  ;;  %v7380_v1 = vld [vmem:[%s8599_s5 + $0x3c4] ss:$8 sps:$4 sm:$0xff]   ;;  %v7375_v2 = vld [vmem:[%s8599_s5 + $0x2c0] ss:$8 sps:$4 sm:$0xff]  }
  0x6d   : > { %5229 = vmatpush2.bf16.msra.mxu0 %v7294_v3  ;;  %v7378_v3 = vld [vmem:[%s8599_s5 + $0x3c0] ss:$8 sps:$4 sm:$0xff]  }
  0x6e   : > { %5270 = vmatpush2.bf16.msra.mxu1 %v7295_v4  ;;  %5230 = vmatprep.subr.bf16.mxu0 %v7296_v5  ;;  %v7383_v4 = vld [vmem:[%s8599_s5 + $0x2b4] ss:$8 sps:$4 sm:$0xff]  }
  0x6f   : > { %5271 = vmatprep.subr.bf16.mxu1 %v7298_v6  ;;  %v7386_v5 = vld [vmem:[%s8599_s5 + $0x3b4] ss:$8 sps:$4 sm:$0xff]   ;;  %v7381_v6 = vld [vmem:[%s8599_s5 + $0x2b0] ss:$8 sps:$4 sm:$0xff]  }
  0x71   : > { %5231 = vmatpush2.bf16.msra.mxu0 %v7300_v7  ;;  %v7384_v7 = vld [vmem:[%s8599_s5 + $0x3b0] ss:$8 sps:$4 sm:$0xff]  }
  0x72   : > { %5272 = vmatpush2.bf16.msra.mxu1 %v7301_v8  ;;  %5232 = vmatprep.subr.bf16.mxu0 %v7302_v9  ;;  %v7389_v8 = vld [vmem:[%s8599_s5 + $0x2a4] ss:$8 sps:$4 sm:$0xff]  }
  0x73   : > { %5273 = vmatprep.subr.bf16.mxu1 %v7304_v10  ;;  %v7392_v9 = vld [vmem:[%s8599_s5 + $0x3a4] ss:$8 sps:$4 sm:$0xff]   ;;  %v7387_v10 = vld [vmem:[%s8599_s5 + $0x2a0] ss:$8 sps:$4 sm:$0xff]  }
  0x75   : > { %5233 = vmatpush2.bf16.msra.mxu0 %v7306_v11  ;;  %v7390_v11 = vld [vmem:[%s8599_s5 + $0x3a0] ss:$8 sps:$4 sm:$0xff]  }
  0x76   : > { %5274 = vmatpush2.bf16.msra.mxu1 %v7307_v12  ;;  %5284 = vmatprep.subr.bf16.mxu0 %v7311_v13  ;;  %v7395_v12 = vld [vmem:[%s8599_s5 + $0x294] ss:$8 sps:$4 sm:$0xff]  }
  0x77   : > { %5325 = vmatprep.subr.bf16.mxu1 %v7314_v14  ;;  %v7398_v13 = vld [vmem:[%s8599_s5 + $0x394] ss:$8 sps:$4 sm:$0xff]   ;;  %v7393_v14 = vld [vmem:[%s8599_s5 + $0x290] ss:$8 sps:$4 sm:$0xff]  }
  0x78   : > { %5235 = vmatmul.mubr.bf16.vlgmr.msra.gmra.mxu0 %v1029_v55  ;;  %v7360_v55 = vld [vmem:[%s8599_s5 + $0x3f0] ss:$8 sps:$4 sm:$0xff]  }
  0x79   : > { %5276 = vmatmul.mubr.bf16.vlgmr.msra.gmra.mxu1 %v1036_v61  ;;  %5285 = vmatpush1.bf16.msra.mxu0 %v7309_v15  ;;  %v7374_v61 = vld [vmem:[%s8599_s5 + $0x3d4] ss:$8 sps:$4 sm:$0xff]   ;;  %v7396_v15 = vld [vmem:[%s8599_s5 + $0x390] ss:$8 sps:$4 sm:$0xff]  }
  0x7a   : > { %5326 = vmatpush1.bf16.msra.mxu1 %v7312_v16  ;;  %5286 = vmatprep.subr.bf16.mxu0 %v7317_v17  ;;  %v7401_v16 = vld [vmem:[%s8599_s5 + $0x284] ss:$8 sps:$4 sm:$0xff]  }
  0x7b   : > { %5327 = vmatprep.subr.bf16.mxu1 %v7320_v18  ;;  %5316 = vmatprep.mubr.bf16.mxu0 %v1054_v44  ;;  %v7404_v17 = vld [vmem:[%s8599_s5 + $0x384] ss:$8 sps:$4 sm:$0xff]   ;;  %v7399_v18 = vld [vmem:[%s8599_s5 + $0x280] ss:$8 sps:$4 sm:$0xff]   ;;  %v7430_v44 = vld [vmem:[%s8599_s5 + $0x430] ss:$8 sps:$4 sm:$0xff]  }
  0x7c   : > { %5357 = vmatprep.mubr.bf16.mxu1 %v1055_v48  ;;  %v7436_v48 = vld [vmem:[%s8599_s5 + $0x420] ss:$8 sps:$4 sm:$0xff]  }
  0x7d   : > { %5287 = vmatpush1.bf16.msra.mxu0 %v7315_v19  ;;  %v7402_v19 = vld [vmem:[%s8599_s5 + $0x380] ss:$8 sps:$4 sm:$0xff]  }
  0x7e   : > { %5328 = vmatpush1.bf16.msra.mxu1 %v7318_v20  ;;  %5288 = vmatprep.subr.bf16.mxu0 %v7323_v21  ;;  %v7407_v20 = vld [vmem:[%s8599_s5 + $0x474] ss:$8 sps:$4 sm:$0xff]  }
  0x7f   : > { %5329 = vmatprep.subr.bf16.mxu1 %v7326_v22  ;;  %v7411_v21 = vld [vmem:[%s8599_s5 + $0x574] ss:$8 sps:$4 sm:$0xff]   ;;  %v7405_v22 = vld [vmem:[%s8599_s5 + $0x470] ss:$8 sps:$4 sm:$0xff]  }
  0x81   : > { %5289 = vmatpush1.bf16.msra.mxu0 %v7321_v23  ;;  %v7409_v23 = vld [vmem:[%s8599_s5 + $0x570] ss:$8 sps:$4 sm:$0xff]  }
  0x82   : > { %5330 = vmatpush1.bf16.msra.mxu1 %v7324_v24  ;;  %5290 = vmatprep.subr.bf16.mxu0 %v7329_v25  ;;  %v7414_v24 = vld [vmem:[%s8599_s5 + $0x464] ss:$8 sps:$4 sm:$0xff]  }
  0x83   : > { %5331 = vmatprep.subr.bf16.mxu1 %v7332_v26  ;;  %v214_v25 = vld [vmem:[%s8615_s22 + $0x10] sm:$0xff] }
  0x84   : > { %v7417_v26 = vld [vmem:[%s8599_s5 + $0x564] ss:$8 sps:$4 sm:$0xff]  }
  0x85   : > { %5291 = vmatpush1.bf16.msra.mxu0 %v7327_v27  ;;  %v8770_v27 = vrot.slane %v214_v25, %v8662_v50 }
  0x86   : > { %5332 = vmatpush1.bf16.msra.mxu1 %v7330_v28  ;;  %5292 = vmatprep.subr.bf16.mxu0 %v7335_v29  ;;  %v1056_v28 = vcombine.high %v214_v25, %v214_v25  ;;  %v7412_v29 = vld [vmem:[%s8599_s5 + $0x460] ss:$8 sps:$4 sm:$0xff]   ;;  %v7501_v25 = vld [vmem:[%s8599_s5 + $0x584] ss:$8 sps:$4 sm:$0xff]  }
  0x87   : > { %5333 = vmatprep.subr.bf16.mxu1 %v7338_v30  ;;  %v1071_v30 = vcombine.high %v8770_v27, %v8770_v27 }
  0x89   : > { %5293 = vmatpush1.bf16.msra.mxu0 %v7333_v31  ;;  %v8778_v31 = vrot.slane %v1056_v28, %v8662_v50  ;;  %v7496_v28 = vld [vmem:[%s8599_s5 + $0x480] ss:$8 sps:$4 sm:$0xff]  }
  0x8a   : > { %5334 = vmatpush1.bf16.msra.mxu1 %v7336_v32  ;;  %5294 = vmatprep.subr.bf16.mxu0 %v7341_v33  ;;  %v7415_v32 = vld [vmem:[%s8599_s5 + $0x560] ss:$8 sps:$4 sm:$0xff]   ;;  %v7420_v33 = vld [vmem:[%s8599_s5 + $0x454] ss:$8 sps:$4 sm:$0xff]  }
  0x8b   : > { %5335 = vmatprep.subr.bf16.mxu1 %v7344_v34  ;;  %v7423_v34 = vld [vmem:[%s8599_s5 + $0x554] ss:$8 sps:$4 sm:$0xff]  }
  0x8d   : > { %5295 = vmatpush1.bf16.msra.mxu0 %v7339_v35  ;;  %v1072_v35 = vcombine.high %v8778_v31, %v8778_v31 }
  0x8e   : > { %5336 = vmatpush1.bf16.msra.mxu1 %v7342_v36  ;;  %5296 = vmatprep.subr.bf16.mxu0 %v7347_v37  ;;  %v7418_v36 = vld [vmem:[%s8599_s5 + $0x450] ss:$8 sps:$4 sm:$0xff]  }
  0x8f   : > { %5337 = vmatprep.subr.bf16.mxu1 %v7350_v38  ;;  %v7421_v37 = vld [vmem:[%s8599_s5 + $0x550] ss:$8 sps:$4 sm:$0xff]   ;;  %v7426_v38 = vld [vmem:[%s8599_s5 + $0x444] ss:$8 sps:$4 sm:$0xff]  }
  0x91   : > { %5297 = vmatpush1.bf16.msra.mxu0 %v7345_v42  ;;  %v7432_v42 = vld [vmem:[%s8599_s5 + $0x434] ss:$8 sps:$4 sm:$0xff]  }
  0x92   : > { %5338 = vmatpush1.bf16.msra.mxu1 %v7348_v43  ;;  %5298 = vmatprep.subr.bf16.mxu0 %v7353_v46  ;;  %v7435_v43 = vld [vmem:[%s8599_s5 + $0x534] ss:$8 sps:$4 sm:$0xff]   ;;  %v7438_v46 = vld [vmem:[%s8599_s5 + $0x424] ss:$8 sps:$4 sm:$0xff]  }
  0x93   : > { %5339 = vmatprep.subr.bf16.mxu1 %v7356_v47  ;;  %v7441_v47 = vld [vmem:[%s8599_s5 + $0x524] ss:$8 sps:$4 sm:$0xff]  }
  0x95   : > { %5299 = vmatpush1.bf16.msra.mxu0 %v7351_v49  ;;  %v7439_v49 = vld [vmem:[%s8599_s5 + $0x520] ss:$8 sps:$4 sm:$0xff]  }
  0x96   : > { %5340 = vmatpush1.bf16.msra.mxu1 %v7354_v51  ;;  %5300 = vmatprep.subr.bf16.mxu0 %v7359_v52  ;;  %v7444_v51 = vld [vmem:[%s8599_s5 + $0x414] ss:$8 sps:$4 sm:$0xff]  }
  0x97   : > { %5341 = vmatprep.subr.bf16.mxu1 %v7362_v53  ;;  %v7447_v52 = vld [vmem:[%s8599_s5 + $0x514] ss:$8 sps:$4 sm:$0xff]   ;;  %v7442_v53 = vld [vmem:[%s8599_s5 + $0x410] ss:$8 sps:$4 sm:$0xff]  }
  0x99   : > { %5301 = vmatpush2.bf16.msra.mxu0 %v7357_v54  ;;  %v7445_v54 = vld [vmem:[%s8599_s5 + $0x510] ss:$8 sps:$4 sm:$0xff]  }
  0x9a   : > { %5342 = vmatpush2.bf16.msra.mxu1 %v7360_v55  ;;  %5302 = vmatprep.subr.bf16.mxu0 %v7365_v56  ;;  %v7450_v55 = vld [vmem:[%s8599_s5 + $0x404] ss:$8 sps:$4 sm:$0xff]  }
  0x9b   : > { %5343 = vmatprep.subr.bf16.mxu1 %v7368_v57  ;;  %v7453_v56 = vld [vmem:[%s8599_s5 + $0x504] ss:$8 sps:$4 sm:$0xff]   ;;  %v7448_v57 = vld [vmem:[%s8599_s5 + $0x400] ss:$8 sps:$4 sm:$0xff]  }
  0x9d   : > { %5303 = vmatpush2.bf16.msra.mxu0 %v7363_v58  ;;  %v7451_v58 = vld [vmem:[%s8599_s5 + $0x500] ss:$8 sps:$4 sm:$0xff]  }
  0x9e   : > { %5344 = vmatpush2.bf16.msra.mxu1 %v7366_v59  ;;  %5304 = vmatprep.subr.bf16.mxu0 %v7371_v60  ;;  %v7456_v59 = vld [vmem:[%s8599_s5 + $0x4f4] ss:$8 sps:$4 sm:$0xff]  }
  0x9f   : > { %5345 = vmatprep.subr.bf16.mxu1 %v7374_v61  ;;  %v7459_v60 = vld [vmem:[%s8599_s5 + $0x5f4] ss:$8 sps:$4 sm:$0xff]   ;;  %v7454_v61 = vld [vmem:[%s8599_s5 + $0x4f0] ss:$8 sps:$4 sm:$0xff]  }
  0xa1   : > { %5305 = vmatpush2.bf16.msra.mxu0 %v7369_v62  ;;  %v7457_v62 = vld [vmem:[%s8599_s5 + $0x5f0] ss:$8 sps:$4 sm:$0xff]  }
  0xa2   : > { %5346 = vmatpush2.bf16.msra.mxu1 %v7372_v63  ;;  %5306 = vmatprep.subr.bf16.mxu0 %v7377_v0  ;;  %v7462_v63 = vld [vmem:[%s8599_s5 + $0x4e4] ss:$8 sps:$4 sm:$0xff]  }
  0xa3   : > { %5347 = vmatprep.subr.bf16.mxu1 %v7380_v1  ;;  %v7465_v0 = vld [vmem:[%s8599_s5 + $0x5e4] ss:$8 sps:$4 sm:$0xff]   ;;  %v7460_v1 = vld [vmem:[%s8599_s5 + $0x4e0] ss:$8 sps:$4 sm:$0xff]  }
  0xa5   : > { %5307 = vmatpush2.bf16.msra.mxu0 %v7375_v2  ;;  %v7463_v2 = vld [vmem:[%s8599_s5 + $0x5e0] ss:$8 sps:$4 sm:$0xff]  }
  0xa6   : > { %5348 = vmatpush2.bf16.msra.mxu1 %v7378_v3  ;;  %5308 = vmatprep.subr.bf16.mxu0 %v7383_v4  ;;  %v7468_v3 = vld [vmem:[%s8599_s5 + $0x4d4] ss:$8 sps:$4 sm:$0xff]  }
  0xa7   : > { %5349 = vmatprep.subr.bf16.mxu1 %v7386_v5  ;;  %v7471_v4 = vld [vmem:[%s8599_s5 + $0x5d4] ss:$8 sps:$4 sm:$0xff]   ;;  %v7466_v5 = vld [vmem:[%s8599_s5 + $0x4d0] ss:$8 sps:$4 sm:$0xff]  }
  0xa9   : > { %5309 = vmatpush2.bf16.msra.mxu0 %v7381_v6  ;;  %v7469_v6 = vld [vmem:[%s8599_s5 + $0x5d0] ss:$8 sps:$4 sm:$0xff]  }
  0xaa   : > { %5350 = vmatpush2.bf16.msra.mxu1 %v7384_v7  ;;  %5310 = vmatprep.subr.bf16.mxu0 %v7389_v8  ;;  %v7474_v7 = vld [vmem:[%s8599_s5 + $0x4c4] ss:$8 sps:$4 sm:$0xff]  }
  0xab   : > { %5351 = vmatprep.subr.bf16.mxu1 %v7392_v9  ;;  %v7477_v8 = vld [vmem:[%s8599_s5 + $0x5c4] ss:$8 sps:$4 sm:$0xff]   ;;  %v7472_v9 = vld [vmem:[%s8599_s5 + $0x4c0] ss:$8 sps:$4 sm:$0xff]  }
  0xad   : > { %5311 = vmatpush2.bf16.msra.mxu0 %v7387_v10  ;;  %v7475_v10 = vld [vmem:[%s8599_s5 + $0x5c0] ss:$8 sps:$4 sm:$0xff]  }
  0xae   : > { %5352 = vmatpush2.bf16.msra.mxu1 %v7390_v11  ;;  %5312 = vmatprep.subr.bf16.mxu0 %v7395_v12  ;;  %v7480_v11 = vld [vmem:[%s8599_s5 + $0x4b4] ss:$8 sps:$4 sm:$0xff]  }
  0xaf   : > { %5353 = vmatprep.subr.bf16.mxu1 %v7398_v13  ;;  %v7483_v12 = vld [vmem:[%s8599_s5 + $0x5b4] ss:$8 sps:$4 sm:$0xff]   ;;  %v7478_v13 = vld [vmem:[%s8599_s5 + $0x4b0] ss:$8 sps:$4 sm:$0xff]  }
  0xb1   : > { %5313 = vmatpush2.bf16.msra.mxu0 %v7393_v14  ;;  %v7481_v14 = vld [vmem:[%s8599_s5 + $0x5b0] ss:$8 sps:$4 sm:$0xff]  }
  0xb2   : > { %5354 = vmatpush2.bf16.msra.mxu1 %v7396_v15  ;;  %5314 = vmatprep.subr.bf16.mxu0 %v7401_v16  ;;  %v7486_v15 = vld [vmem:[%s8599_s5 + $0x4a4] ss:$8 sps:$4 sm:$0xff]  }
  0xb3   : > { %5355 = vmatprep.subr.bf16.mxu1 %v7404_v17  ;;  %v7489_v16 = vld [vmem:[%s8599_s5 + $0x5a4] ss:$8 sps:$4 sm:$0xff]   ;;  %v7484_v17 = vld [vmem:[%s8599_s5 + $0x4a0] ss:$8 sps:$4 sm:$0xff]  }
  0xb5   : > { %5315 = vmatpush2.bf16.msra.mxu0 %v7399_v18  ;;  %v7487_v18 = vld [vmem:[%s8599_s5 + $0x5a0] ss:$8 sps:$4 sm:$0xff]  }
  0xb6   : > { %5356 = vmatpush2.bf16.msra.mxu1 %v7402_v19  ;;  %5366 = vmatprep.subr.bf16.mxu0 %v7407_v20  ;;  %v7492_v19 = vld [vmem:[%s8599_s5 + $0x494] ss:$8 sps:$4 sm:$0xff]  }
  0xb7   : > { %5407 = vmatprep.subr.bf16.mxu1 %v7411_v21  ;;  %v7495_v20 = vld [vmem:[%s8599_s5 + $0x594] ss:$8 sps:$4 sm:$0xff]   ;;  %v7490_v21 = vld [vmem:[%s8599_s5 + $0x490] ss:$8 sps:$4 sm:$0xff]  }
  0xb8   : > { %5317 = vmatmul.mubr.bf16.vlgmr.msra.gmra.mxu0 %v8715_v40  ;;  %v7424_v40 = vld [vmem:[%s8599_s5 + $0x440] ss:$8 sps:$4 sm:$0xff]  }
  0xb9   : > { %5358 = vmatmul.mubr.bf16.vlgmr.msra.gmra.mxu1 %v8722_v45  ;;  %5367 = vmatpush1.bf16.msra.mxu0 %v7405_v22  ;;  %v7433_v45 = vld [vmem:[%s8599_s5 + $0x530] ss:$8 sps:$4 sm:$0xff]  }
  0xba   : > { %5408 = vmatpush1.bf16.msra.mxu1 %v7409_v23  ;;  %5368 = vmatprep.subr.bf16.mxu0 %v7414_v24  ;;  %v7493_v22 = vld [vmem:[%s8599_s5 + $0x590] ss:$8 sps:$4 sm:$0xff]   ;;  %v7498_v24 = vld [vmem:[%s8599_s5 + $0x484] ss:$8 sps:$4 sm:$0xff]  }
  0xbb   : > { %5409 = vmatprep.subr.bf16.mxu1 %v7417_v26  ;;  %5398 = vmatprep.mubr.bf16.mxu0 %v1071_v30  ;;  %v215_v23 = vld [vmem:[%s8615_s22 + $0x18] sm:$0xff] }
  0xbc   : > { %5439 = vmatprep.mubr.bf16.mxu1 %v1072_v35  ;;  %v1073_v26 = vcombine.high %v215_v23, %v215_v23  ;;  %v7504_v30 = vld [vmem:[%s8599_s5 + $0x674] ss:$8 sps:$4 sm:$0xff]   ;;  %v7502_v35 = vld [vmem:[%s8599_s5 + $0x670] ss:$8 sps:$4 sm:$0xff]  }
  0xbd   : > { %5369 = vmatpush1.bf16.msra.mxu0 %v7412_v29  ;;  %v7499_v29 = vld [vmem:[%s8599_s5 + $0x580] ss:$8 sps:$4 sm:$0xff]  }
  0xbe   : > { %5410 = vmatpush1.bf16.msra.mxu1 %v7415_v32  ;;  %5370 = vmatprep.subr.bf16.mxu0 %v7420_v33  ;;  %v7508_v32 = vld [vmem:[%s8599_s5 + $0x774] ss:$8 sps:$4 sm:$0xff]   ;;  %v8843_v33 = vrot.slane %v215_v23, %v8662_v50  ;;  %v7586_v23 = vld [vmem:[%s8599_s5 + $0x7a4] ss:$8 sps:$4 sm:$0xff]  }
  0xbf   : > { %5411 = vmatprep.subr.bf16.mxu1 %v7423_v34  ;;  %v8846_v34 = vrot.slane %v1073_v26, %v8662_v50  ;;  %v7589_v26 = vld [vmem:[%s8599_s5 + $0x694] ss:$8 sps:$4 sm:$0xff]  }
  0xc1   : > { %5371 = vmatpush1.bf16.msra.mxu0 %v7418_v36  ;;  %v7506_v36 = vld [vmem:[%s8599_s5 + $0x770] ss:$8 sps:$4 sm:$0xff]  }
  0xc2   : > { %5412 = vmatpush1.bf16.msra.mxu1 %v7421_v37  ;;  %5372 = vmatprep.subr.bf16.mxu0 %v7426_v38  ;;  %v7511_v37 = vld [vmem:[%s8599_s5 + $0x664] ss:$8 sps:$4 sm:$0xff]  }
  0xc3   : > { %5413 = vmatprep.subr.bf16.mxu1 %v7429_v39  ;;  %v7514_v38 = vld [vmem:[%s8599_s5 + $0x764] ss:$8 sps:$4 sm:$0xff]   ;;  %v1088_v39 = vcombine.high %v8843_v33, %v8843_v33 }
  0xc5   : > { %5373 = vmatpush1.bf16.msra.mxu0 %v7424_v40  ;;  %v1089_v40 = vcombine.high %v8846_v34, %v8846_v34 }
  0xc6   : > { %5414 = vmatpush1.bf16.msra.mxu1 %v7427_v41  ;;  %5374 = vmatprep.subr.bf16.mxu0 %v7432_v42  ;;  %v7509_v41 = vld [vmem:[%s8599_s5 + $0x660] ss:$8 sps:$4 sm:$0xff]  }
  0xc7   : > { %5415 = vmatprep.subr.bf16.mxu1 %v7435_v43  ;;  %v7512_v42 = vld [vmem:[%s8599_s5 + $0x760] ss:$8 sps:$4 sm:$0xff]   ;;  %v7517_v43 = vld [vmem:[%s8599_s5 + $0x654] ss:$8 sps:$4 sm:$0xff]  }
  0xc9   : > { %5375 = vmatpush1.bf16.msra.mxu0 %v7430_v44  ;;  %v7520_v44 = vld [vmem:[%s8599_s5 + $0x754] ss:$8 sps:$4 sm:$0xff]  }
  0xca   : > { %5416 = vmatpush1.bf16.msra.mxu1 %v7433_v45  ;;  %5376 = vmatprep.subr.bf16.mxu0 %v7438_v46  ;;  %v7515_v45 = vld [vmem:[%s8599_s5 + $0x650] ss:$8 sps:$4 sm:$0xff]   ;;  %v7526_v46 = vld [vmem:[%s8599_s5 + $0x744] ss:$8 sps:$4 sm:$0xff]  }
  0xcb   : > { %5417 = vmatprep.subr.bf16.mxu1 %v7441_v47  ;;  %v7521_v47 = vld [vmem:[%s8599_s5 + $0x640] ss:$8 sps:$4 sm:$0xff]  }
  0xcd   : > { %5377 = vmatpush1.bf16.msra.mxu0 %v7436_v48  ;;  %v7524_v48 = vld [vmem:[%s8599_s5 + $0x740] ss:$8 sps:$4 sm:$0xff]  }
  0xce   : > { %5418 = vmatpush1.bf16.msra.mxu1 %v7439_v49  ;;  %5378 = vmatprep.subr.bf16.mxu0 %v7444_v51  ;;  %v7529_v49 = vld [vmem:[%s8599_s5 + $0x634] ss:$8 sps:$4 sm:$0xff]  }
  0xcf   : > { %5419 = vmatprep.subr.bf16.mxu1 %v7447_v52  ;;  %v7532_v51 = vld [vmem:[%s8599_s5 + $0x734] ss:$8 sps:$4 sm:$0xff]   ;;  %v7527_v52 = vld [vmem:[%s8599_s5 + $0x630] ss:$8 sps:$4 sm:$0xff]  }
  0xd1   : > { %5379 = vmatpush1.bf16.msra.mxu0 %v7442_v53  ;;  %v7530_v53 = vld [vmem:[%s8599_s5 + $0x730] ss:$8 sps:$4 sm:$0xff]  }
  0xd2   : > { %5420 = vmatpush1.bf16.msra.mxu1 %v7445_v54  ;;  %5380 = vmatprep.subr.bf16.mxu0 %v7450_v55  ;;  %v7535_v54 = vld [vmem:[%s8599_s5 + $0x624] ss:$8 sps:$4 sm:$0xff]  }
  0xd3   : > { %5421 = vmatprep.subr.bf16.mxu1 %v7453_v56  ;;  %v7538_v55 = vld [vmem:[%s8599_s5 + $0x724] ss:$8 sps:$4 sm:$0xff]   ;;  %v7533_v56 = vld [vmem:[%s8599_s5 + $0x620] ss:$8 sps:$4 sm:$0xff]  }
  0xd5   : > { %5381 = vmatpush1.bf16.msra.mxu0 %v7448_v57  ;;  %v7536_v57 = vld [vmem:[%s8599_s5 + $0x720] ss:$8 sps:$4 sm:$0xff]  }
  0xd6   : > { %5422 = vmatpush1.bf16.msra.mxu1 %v7451_v58  ;;  %5382 = vmatprep.subr.bf16.mxu0 %v7456_v59  ;;  %v7541_v58 = vld [vmem:[%s8599_s5 + $0x614] ss:$8 sps:$4 sm:$0xff]  }
  0xd7   : > { %5423 = vmatprep.subr.bf16.mxu1 %v7459_v60  ;;  %v7544_v59 = vld [vmem:[%s8599_s5 + $0x714] ss:$8 sps:$4 sm:$0xff]   ;;  %v7539_v60 = vld [vmem:[%s8599_s5 + $0x610] ss:$8 sps:$4 sm:$0xff]  }
  0xd9   : > { %5383 = vmatpush2.bf16.msra.mxu0 %v7454_v61  ;;  %v7542_v61 = vld [vmem:[%s8599_s5 + $0x710] ss:$8 sps:$4 sm:$0xff]  }
  0xda   : > { %5424 = vmatpush2.bf16.msra.mxu1 %v7457_v62  ;;  %5384 = vmatprep.subr.bf16.mxu0 %v7462_v63  ;;  %v7547_v62 = vld [vmem:[%s8599_s5 + $0x604] ss:$8 sps:$4 sm:$0xff]  }
  0xdb   : > { %5425 = vmatprep.subr.bf16.mxu1 %v7465_v0  ;;  %v7550_v63 = vld [vmem:[%s8599_s5 + $0x704] ss:$8 sps:$4 sm:$0xff]   ;;  %v7545_v0 = vld [vmem:[%s8599_s5 + $0x600] ss:$8 sps:$4 sm:$0xff]  }
  0xdd   : > { %5385 = vmatpush2.bf16.msra.mxu0 %v7460_v1  ;;  %v7548_v1 = vld [vmem:[%s8599_s5 + $0x700] ss:$8 sps:$4 sm:$0xff]  }
  0xde   : > { %5426 = vmatpush2.bf16.msra.mxu1 %v7463_v2  ;;  %5386 = vmatprep.subr.bf16.mxu0 %v7468_v3  ;;  %v7553_v2 = vld [vmem:[%s8599_s5 + $0x6f4] ss:$8 sps:$4 sm:$0xff]  }
  0xdf   : > { %5427 = vmatprep.subr.bf16.mxu1 %v7471_v4  ;;  %v7556_v3 = vld [vmem:[%s8599_s5 + $0x7f4] ss:$8 sps:$4 sm:$0xff]   ;;  %v7551_v4 = vld [vmem:[%s8599_s5 + $0x6f0] ss:$8 sps:$4 sm:$0xff]  }
  0xe1   : > { %5387 = vmatpush2.bf16.msra.mxu0 %v7466_v5  ;;  %v7554_v5 = vld [vmem:[%s8599_s5 + $0x7f0] ss:$8 sps:$4 sm:$0xff]  }
  0xe2   : > { %5428 = vmatpush2.bf16.msra.mxu1 %v7469_v6  ;;  %5388 = vmatprep.subr.bf16.mxu0 %v7474_v7  ;;  %v7559_v6 = vld [vmem:[%s8599_s5 + $0x6e4] ss:$8 sps:$4 sm:$0xff]  }
  0xe3   : > { %5429 = vmatprep.subr.bf16.mxu1 %v7477_v8  ;;  %v7562_v7 = vld [vmem:[%s8599_s5 + $0x7e4] ss:$8 sps:$4 sm:$0xff]   ;;  %v7557_v8 = vld [vmem:[%s8599_s5 + $0x6e0] ss:$8 sps:$4 sm:$0xff]  }
  0xe5   : > { %5389 = vmatpush2.bf16.msra.mxu0 %v7472_v9  ;;  %v7560_v9 = vld [vmem:[%s8599_s5 + $0x7e0] ss:$8 sps:$4 sm:$0xff]  }
  0xe6   : > { %5430 = vmatpush2.bf16.msra.mxu1 %v7475_v10  ;;  %5390 = vmatprep.subr.bf16.mxu0 %v7480_v11  ;;  %v7565_v10 = vld [vmem:[%s8599_s5 + $0x6d4] ss:$8 sps:$4 sm:$0xff]  }
  0xe7   : > { %5431 = vmatprep.subr.bf16.mxu1 %v7483_v12  ;;  %v7568_v11 = vld [vmem:[%s8599_s5 + $0x7d4] ss:$8 sps:$4 sm:$0xff]   ;;  %v7563_v12 = vld [vmem:[%s8599_s5 + $0x6d0] ss:$8 sps:$4 sm:$0xff]  }
  0xe9   : > { %5391 = vmatpush2.bf16.msra.mxu0 %v7478_v13  ;;  %v7566_v13 = vld [vmem:[%s8599_s5 + $0x7d0] ss:$8 sps:$4 sm:$0xff]  }
  0xea   : > { %5432 = vmatpush2.bf16.msra.mxu1 %v7481_v14  ;;  %5392 = vmatprep.subr.bf16.mxu0 %v7486_v15  ;;  %v7571_v14 = vld [vmem:[%s8599_s5 + $0x6c4] ss:$8 sps:$4 sm:$0xff]  }
  0xeb   : > { %5433 = vmatprep.subr.bf16.mxu1 %v7489_v16  ;;  %v7574_v15 = vld [vmem:[%s8599_s5 + $0x7c4] ss:$8 sps:$4 sm:$0xff]   ;;  %v7569_v16 = vld [vmem:[%s8599_s5 + $0x6c0] ss:$8 sps:$4 sm:$0xff]  }
  0xed   : > { %5393 = vmatpush2.bf16.msra.mxu0 %v7484_v17  ;;  %v7572_v17 = vld [vmem:[%s8599_s5 + $0x7c0] ss:$8 sps:$4 sm:$0xff]  }
  0xee   : > { %5434 = vmatpush2.bf16.msra.mxu1 %v7487_v18  ;;  %5394 = vmatprep.subr.bf16.mxu0 %v7492_v19  ;;  %v7577_v18 = vld [vmem:[%s8599_s5 + $0x6b4] ss:$8 sps:$4 sm:$0xff]  }
  0xef   : > { %5435 = vmatprep.subr.bf16.mxu1 %v7495_v20  ;;  %v7580_v19 = vld [vmem:[%s8599_s5 + $0x7b4] ss:$8 sps:$4 sm:$0xff]   ;;  %v7575_v20 = vld [vmem:[%s8599_s5 + $0x6b0] ss:$8 sps:$4 sm:$0xff]  }
  0xf1   : > { %5395 = vmatpush2.bf16.msra.mxu0 %v7490_v21  ;;  %v7578_v21 = vld [vmem:[%s8599_s5 + $0x7b0] ss:$8 sps:$4 sm:$0xff]  }
  0xf2   : > { %5436 = vmatpush2.bf16.msra.mxu1 %v7493_v22  ;;  %5396 = vmatprep.subr.bf16.mxu0 %v7498_v24  ;;  %v7583_v22 = vld [vmem:[%s8599_s5 + $0x6a4] ss:$8 sps:$4 sm:$0xff]   ;;  %v7581_v24 = vld [vmem:[%s8599_s5 + $0x6a0] ss:$8 sps:$4 sm:$0xff]  }
  0xf3   : > { %5437 = vmatprep.subr.bf16.mxu1 %v7501_v25  ;;  %v7584_v25 = vld [vmem:[%s8599_s5 + $0x7a0] ss:$8 sps:$4 sm:$0xff]  }
  0xf5   : > { %5397 = vmatpush2.bf16.msra.mxu0 %v7496_v28  ;;  %v7592_v28 = vld [vmem:[%s8599_s5 + $0x794] ss:$8 sps:$4 sm:$0xff]  }
  0xf6   : > { %5438 = vmatpush2.bf16.msra.mxu1 %v7499_v29  ;;  %5448 = vmatprep.subr.bf16.mxu0 %v7504_v30  ;;  %v7587_v29 = vld [vmem:[%s8599_s5 + $0x690] ss:$8 sps:$4 sm:$0xff]  }
  0xf7   : > { %5489 = vmatprep.subr.bf16.mxu1 %v7508_v32  ;;  %v216_v30 = vld [vmem:[%s8615_s22 + $0x20] sm:$0xff] }
  0xf8   : > { %5399 = vmatmul.mubr.bf16.vlgmr.msra.gmra.mxu0 %v8770_v27  ;;  %v7518_v27 = vld [vmem:[%s8599_s5 + $0x750] ss:$8 sps:$4 sm:$0xff]  }
  0xf9   : > { %5440 = vmatmul.mubr.bf16.vlgmr.msra.gmra.mxu1 %v8778_v31  ;;  %5449 = vmatpush1.bf16.msra.mxu0 %v7502_v35  ;;  %v7523_v31 = vld [vmem:[%s8599_s5 + $0x644] ss:$8 sps:$4 sm:$0xff]   ;;  %v7590_v32 = vld [vmem:[%s8599_s5 + $0x790] ss:$8 sps:$4 sm:$0xff]  }
  0xfa   : > { %5490 = vmatpush1.bf16.msra.mxu1 %v7506_v36  ;;  %5450 = vmatprep.subr.bf16.mxu0 %v7511_v37  ;;  %v7595_v35 = vld [vmem:[%s8599_s5 + $0x684] ss:$8 sps:$4 sm:$0xff]   ;;  %v1090_v37 = vcombine.high %v216_v30, %v216_v30 }
  0xfb   : > { %5491 = vmatprep.subr.bf16.mxu1 %v7514_v38  ;;  %5480 = vmatprep.mubr.bf16.mxu0 %v1088_v39  ;;  %v7598_v36 = vld [vmem:[%s8599_s5 + $0x784] ss:$8 sps:$4 sm:$0xff]   ;;  %v7593_v38 = vld [vmem:[%s8599_s5 + $0x680] ss:$8 sps:$4 sm:$0xff]  }
  0xfc   : > { %5521 = vmatprep.mubr.bf16.mxu1 %v1089_v40  ;;  %v7596_v39 = vld [vmem:[%s8599_s5 + $0x780] ss:$8 sps:$4 sm:$0xff]   ;;  %v7601_v40 = vld [vmem:[%s8599_s5 + $0x874] ss:$8 sps:$4 sm:$0xff]  }
  0xfd   : > { %5451 = vmatpush1.bf16.msra.mxu0 %v7509_v41  ;;  %v7605_v41 = vld [vmem:[%s8599_s5 + $0x974] ss:$8 sps:$4 sm:$0xff]  }
  0xfe   : > { %5492 = vmatpush1.bf16.msra.mxu1 %v7512_v42  ;;  %5452 = vmatprep.subr.bf16.mxu0 %v7517_v43  ;;  %v8920_v42 = vrot.slane %v216_v30, %v8662_v50  ;;  %v8923_v43 = vrot.slane %v1090_v37, %v8662_v50  ;;  %v7660_v30 = vld [vmem:[%s8599_s5 + $0x8d0] ss:$8 sps:$4 sm:$0xff]   ;;  %v7666_v37 = vld [vmem:[%s8599_s5 + $0x8c0] ss:$8 sps:$4 sm:$0xff]  }
  0xff   : > { %5493 = vmatprep.subr.bf16.mxu1 %v7520_v44  ;;  %v7599_v44 = vld [vmem:[%s8599_s5 + $0x870] ss:$8 sps:$4 sm:$0xff]  }
 0x101   : > { %5453 = vmatpush1.bf16.msra.mxu0 %v7515_v45  ;;  %v7603_v45 = vld [vmem:[%s8599_s5 + $0x970] ss:$8 sps:$4 sm:$0xff]  }
 0x102   : > { %5494 = vmatpush1.bf16.msra.mxu1 %v7518_v27  ;;  %5454 = vmatprep.subr.bf16.mxu0 %v7523_v31  ;;  %v7608_v27 = vld [vmem:[%s8599_s5 + $0x864] ss:$8 sps:$4 sm:$0xff]  }
 0x103   : > { %5495 = vmatprep.subr.bf16.mxu1 %v7526_v46  ;;  %v7611_v31 = vld [vmem:[%s8599_s5 + $0x964] ss:$8 sps:$4 sm:$0xff]   ;;  %v1105_v46 = vcombine.high %v8920_v42, %v8920_v42 }
 0x105   : > { %5455 = vmatpush1.bf16.msra.mxu0 %v7521_v47  ;;  %v1106_v47 = vcombine.high %v8923_v43, %v8923_v43 }
 0x106   : > { %5496 = vmatpush1.bf16.msra.mxu1 %v7524_v48  ;;  %5456 = vmatprep.subr.bf16.mxu0 %v7529_v49 }
 0x107   : > { %5497 = vmatprep.subr.bf16.mxu1 %v7532_v51  ;;  %v7606_v51 = vld [vmem:[%s8599_s5 + $0x860] ss:$8 sps:$4 sm:$0xff]  }
 0x109   : > { %5457 = vmatpush1.bf16.msra.mxu0 %v7527_v52 }
 0x10a   : > { %5498 = vmatpush1.bf16.msra.mxu1 %v7530_v53  ;;  %5458 = vmatprep.subr.bf16.mxu0 %v7535_v54  ;;  %v7609_v53 = vld [vmem:[%s8599_s5 + $0x960] ss:$8 sps:$4 sm:$0xff]   ;;  %v7614_v54 = vld [vmem:[%s8599_s5 + $0x854] ss:$8 sps:$4 sm:$0xff]  }
 0x10b   : > { %5499 = vmatprep.subr.bf16.mxu1 %v7538_v55 }
 0x10d   : > { %5459 = vmatpush1.bf16.msra.mxu0 %v7533_v56 }
 0x10e   : > { %5500 = vmatpush1.bf16.msra.mxu1 %v7536_v57  ;;  %5460 = vmatprep.subr.bf16.mxu0 %v7541_v58  ;;  %v7617_v57 = vld [vmem:[%s8599_s5 + $0x954] ss:$8 sps:$4 sm:$0xff]   ;;  %v7612_v58 = vld [vmem:[%s8599_s5 + $0x850] ss:$8 sps:$4 sm:$0xff]  }
 0x10f   : > { %5501 = vmatprep.subr.bf16.mxu1 %v7544_v59 }
 0x111   : > { %5461 = vmatpush1.bf16.msra.mxu0 %v7539_v60  ;;  %v7615_v60 = vld [vmem:[%s8599_s5 + $0x950] ss:$8 sps:$4 sm:$0xff]  }
 0x112   : > { %5502 = vmatpush1.bf16.msra.mxu1 %v7542_v61  ;;  %5462 = vmatprep.subr.bf16.mxu0 %v7547_v62  ;;  %v7620_v62 = vld [vmem:[%s8599_s5 + $0x844] ss:$8 sps:$4 sm:$0xff]  }
 0x113   : > { %5503 = vmatprep.subr.bf16.mxu1 %v7550_v63  ;;  %v7623_v63 = vld [vmem:[%s8599_s5 + $0x944] ss:$8 sps:$4 sm:$0xff]  }
 0x115   : > { %5463 = vmatpush1.bf16.msra.mxu0 %v7545_v0 }
 0x116   : > { %5504 = vmatpush1.bf16.msra.mxu1 %v7548_v1  ;;  %5464 = vmatprep.subr.bf16.mxu0 %v7553_v2  ;;  %v7618_v1 = vld [vmem:[%s8599_s5 + $0x840] ss:$8 sps:$4 sm:$0xff]  }
 0x117   : > { %5505 = vmatprep.subr.bf16.mxu1 %v7556_v3  ;;  %v7621_v2 = vld [vmem:[%s8599_s5 + $0x940] ss:$8 sps:$4 sm:$0xff]   ;;  %v7626_v3 = vld [vmem:[%s8599_s5 + $0x834] ss:$8 sps:$4 sm:$0xff]  }
 0x119   : > { %5465 = vmatpush2.bf16.msra.mxu0 %v7551_v4  ;;  %v7629_v4 = vld [vmem:[%s8599_s5 + $0x934] ss:$8 sps:$4 sm:$0xff]  }
 0x11a   : > { %5506 = vmatpush2.bf16.msra.mxu1 %v7554_v5  ;;  %5466 = vmatprep.subr.bf16.mxu0 %v7559_v6  ;;  %v7624_v5 = vld [vmem:[%s8599_s5 + $0x830] ss:$8 sps:$4 sm:$0xff]  }
 0x11b   : > { %5507 = vmatprep.subr.bf16.mxu1 %v7562_v7  ;;  %v7627_v6 = vld [vmem:[%s8599_s5 + $0x930] ss:$8 sps:$4 sm:$0xff]   ;;  %v7632_v7 = vld [vmem:[%s8599_s5 + $0x824] ss:$8 sps:$4 sm:$0xff]  }
 0x11d   : > { %5467 = vmatpush2.bf16.msra.mxu0 %v7557_v8  ;;  %v7635_v8 = vld [vmem:[%s8599_s5 + $0x924] ss:$8 sps:$4 sm:$0xff]  }
 0x11e   : > { %5508 = vmatpush2.bf16.msra.mxu1 %v7560_v9  ;;  %5468 = vmatprep.subr.bf16.mxu0 %v7565_v10  ;;  %v7630_v9 = vld [vmem:[%s8599_s5 + $0x820] ss:$8 sps:$4 sm:$0xff]  }
 0x11f   : > { %5509 = vmatprep.subr.bf16.mxu1 %v7568_v11  ;;  %v7633_v10 = vld [vmem:[%s8599_s5 + $0x920] ss:$8 sps:$4 sm:$0xff]   ;;  %v7638_v11 = vld [vmem:[%s8599_s5 + $0x814] ss:$8 sps:$4 sm:$0xff]  }
 0x121   : > { %5469 = vmatpush2.bf16.msra.mxu0 %v7563_v12  ;;  %v7641_v12 = vld [vmem:[%s8599_s5 + $0x914] ss:$8 sps:$4 sm:$0xff]  }
 0x122   : > { %5510 = vmatpush2.bf16.msra.mxu1 %v7566_v13  ;;  %5470 = vmatprep.subr.bf16.mxu0 %v7571_v14  ;;  %v7636_v13 = vld [vmem:[%s8599_s5 + $0x810] ss:$8 sps:$4 sm:$0xff]  }
 0x123   : > { %5511 = vmatprep.subr.bf16.mxu1 %v7574_v15  ;;  %v7639_v14 = vld [vmem:[%s8599_s5 + $0x910] ss:$8 sps:$4 sm:$0xff]   ;;  %v7644_v15 = vld [vmem:[%s8599_s5 + $0x804] ss:$8 sps:$4 sm:$0xff]  }
 0x125   : > { %5471 = vmatpush2.bf16.msra.mxu0 %v7569_v16  ;;  %v7647_v16 = vld [vmem:[%s8599_s5 + $0x904] ss:$8 sps:$4 sm:$0xff]  }
 0x126   : > { %5512 = vmatpush2.bf16.msra.mxu1 %v7572_v17  ;;  %5472 = vmatprep.subr.bf16.mxu0 %v7577_v18  ;;  %v7642_v17 = vld [vmem:[%s8599_s5 + $0x800] ss:$8 sps:$4 sm:$0xff]  }
 0x127   : > { %5513 = vmatprep.subr.bf16.mxu1 %v7580_v19  ;;  %v7645_v18 = vld [vmem:[%s8599_s5 + $0x900] ss:$8 sps:$4 sm:$0xff]   ;;  %v7650_v19 = vld [vmem:[%s8599_s5 + $0x8f4] ss:$8 sps:$4 sm:$0xff]  }
 0x129   : > { %5473 = vmatpush2.bf16.msra.mxu0 %v7575_v20  ;;  %v7653_v20 = vld [vmem:[%s8599_s5 + $0x9f4] ss:$8 sps:$4 sm:$0xff]  }
 0x12a   : > { %5514 = vmatpush2.bf16.msra.mxu1 %v7578_v21  ;;  %5474 = vmatprep.subr.bf16.mxu0 %v7583_v22  ;;  %v7648_v21 = vld [vmem:[%s8599_s5 + $0x8f0] ss:$8 sps:$4 sm:$0xff]  }
 0x12b   : > { %5515 = vmatprep.subr.bf16.mxu1 %v7586_v23  ;;  %v7651_v22 = vld [vmem:[%s8599_s5 + $0x9f0] ss:$8 sps:$4 sm:$0xff]   ;;  %v7656_v23 = vld [vmem:[%s8599_s5 + $0x8e4] ss:$8 sps:$4 sm:$0xff]  }
 0x12d   : > { %5475 = vmatpush2.bf16.msra.mxu0 %v7581_v24  ;;  %v7659_v24 = vld [vmem:[%s8599_s5 + $0x9e4] ss:$8 sps:$4 sm:$0xff]  }
 0x12e   : > { %5516 = vmatpush2.bf16.msra.mxu1 %v7584_v25  ;;  %5476 = vmatprep.subr.bf16.mxu0 %v7589_v26  ;;  %v7654_v25 = vld [vmem:[%s8599_s5 + $0x8e0] ss:$8 sps:$4 sm:$0xff]  }
 0x12f   : > { %5517 = vmatprep.subr.bf16.mxu1 %v7592_v28  ;;  %v7657_v26 = vld [vmem:[%s8599_s5 + $0x9e0] ss:$8 sps:$4 sm:$0xff]   ;;  %v7662_v28 = vld [vmem:[%s8599_s5 + $0x8d4] ss:$8 sps:$4 sm:$0xff]  }
 0x131   : > { %5477 = vmatpush2.bf16.msra.mxu0 %v7587_v29  ;;  %v7665_v29 = vld [vmem:[%s8599_s5 + $0x9d4] ss:$8 sps:$4 sm:$0xff]  }
 0x132   : > { %5518 = vmatpush2.bf16.msra.mxu1 %v7590_v32  ;;  %5478 = vmatprep.subr.bf16.mxu0 %v7595_v35  ;;  %v7663_v32 = vld [vmem:[%s8599_s5 + $0x9d0] ss:$8 sps:$4 sm:$0xff]   ;;  %v7668_v35 = vld [vmem:[%s8599_s5 + $0x8c4] ss:$8 sps:$4 sm:$0xff]  }
 0x133   : > { %5519 = vmatprep.subr.bf16.mxu1 %v7598_v36  ;;  %v7671_v36 = vld [vmem:[%s8599_s5 + $0x9c4] ss:$8 sps:$4 sm:$0xff]  }
 0x135   : > { %5479 = vmatpush2.bf16.msra.mxu0 %v7593_v38  ;;  %v7669_v38 = vld [vmem:[%s8599_s5 + $0x9c0] ss:$8 sps:$4 sm:$0xff]  }
 0x136   : > { %5520 = vmatpush2.bf16.msra.mxu1 %v7596_v39  ;;  %5530 = vmatprep.subr.bf16.mxu0 %v7601_v40  ;;  %v7674_v39 = vld [vmem:[%s8599_s5 + $0x8b4] ss:$8 sps:$4 sm:$0xff]  }
 0x137   : > { %5571 = vmatprep.subr.bf16.mxu1 %v7605_v41  ;;  %v7677_v40 = vld [vmem:[%s8599_s5 + $0x9b4] ss:$8 sps:$4 sm:$0xff]   ;;  %v7672_v41 = vld [vmem:[%s8599_s5 + $0x8b0] ss:$8 sps:$4 sm:$0xff]  }
 0x138   : > { %v5236_v48 = vpop.f32.mrf.mxu0  ;;  %5481 = vmatmul.mubr.bf16.vlgmr.msra.gmra.mxu0 %v8843_v33 }
 0x139   : > { %v5277_v49 = vpop.f32.mrf.mxu1  ;;  %5522 = vmatmul.mubr.bf16.vlgmr.msra.gmra.mxu1 %v8846_v34  ;;  %5531 = vmatpush1.bf16.msra.mxu0 %v7599_v44  ;;  %v7675_v44 = vld [vmem:[%s8599_s5 + $0x9b0] ss:$8 sps:$4 sm:$0xff]  }
 0x13a   : > { %v8936_v52 = vadd.f32 %v5277_v49, %v5236_v48  ;;  %5572 = vmatpush1.bf16.msra.mxu1 %v7603_v45  ;;  %v5238_v55 = vpop.f32.mrf.mxu0  ;;  %5532 = vmatprep.subr.bf16.mxu0 %v7608_v27  ;;  %v7680_v45 = vld [vmem:[%s8599_s5 + $0x8a4] ss:$8 sps:$4 sm:$0xff]   ;;  %v7689_v48 = vld [vmem:[%s8599_s5 + $0x994] ss:$8 sps:$4 sm:$0xff]   ;;  %v7684_v49 = vld [vmem:[%s8599_s5 + $0x890] ss:$8 sps:$4 sm:$0xff]  }
 0x13b   : > { %v5279_v56 = vpop.f32.mrf.mxu1  ;;  %5573 = vmatprep.subr.bf16.mxu1 %v7611_v31  ;;  %5562 = vmatprep.mubr.bf16.mxu0 %v1105_v46  ;;  %v7683_v27 = vld [vmem:[%s8599_s5 + $0x9a4] ss:$8 sps:$4 sm:$0xff]   ;;  %v7678_v31 = vld [vmem:[%s8599_s5 + $0x8a0] ss:$8 sps:$4 sm:$0xff]  }
 0x13c   : > { %v8941_v33 = vadd.f32 %v5279_v56, %v5238_v55  ;;  %5603 = vmatprep.mubr.bf16.mxu1 %v1106_v47  ;;  %v5240_v34 = vpop.f32.mrf.mxu0  ;;  %v7681_v46 = vld [vmem:[%s8599_s5 + $0x9a0] ss:$8 sps:$4 sm:$0xff]   ;;  %v7686_v47 = vld [vmem:[%s8599_s5 + $0x894] ss:$8 sps:$4 sm:$0xff]   ;;  %v7695_v55 = vld [vmem:[%s8599_s5 + $0x984] ss:$8 sps:$4 sm:$0xff]  }
 0x13d   : > { %v5281_v59 = vpop.f32.mrf.mxu1  ;;  %5533 = vmatpush1.bf16.msra.mxu0 %v7606_v51  ;;  %v217_v51 = vld [vmem:[%s8615_s22 + $0x28] sm:$0xff] }
 0x13e   : > { %5574 = vmatpush1.bf16.msra.mxu1 %v7609_v53  ;;  %v5241_v61 = vpop.f32.mrf.mxu0  ;;  %5534 = vmatprep.subr.bf16.mxu0 %v7614_v54  ;;  %v7687_v53 = vld [vmem:[%s8599_s5 + $0x990] ss:$8 sps:$4 sm:$0xff]   ;;  %v7692_v54 = vld [vmem:[%s8599_s5 + $0x884] ss:$8 sps:$4 sm:$0xff]   ;;  %v1107_v56 = vcombine.high %v217_v51, %v217_v51  ;;  %v7693_v34 = vld [vmem:[%s8599_s5 + $0x980] ss:$8 sps:$4 sm:$0xff]  }
 0x13f   : > { %5575 = vmatprep.subr.bf16.mxu1 %v7617_v57  ;;  %v5282_v0 = vpop.f32.mrf.mxu1  ;;  %v7690_v57 = vld [vmem:[%s8599_s5 + $0x880] ss:$8 sps:$4 sm:$0xff]   ;;  %v7702_v59 = vld [vmem:[%s8599_s5 + $0xb74] ss:$8 sps:$4 sm:$0xff]   ;;  %v9002_v61 = vrot.slane %v217_v51, %v8662_v50 }
 0x140   : > { %v7705_v0 = vld [vmem:[%s8599_s5 + $0xa64] ss:$8 sps:$4 sm:$0xff]   ;;  %v7759_v51 = vld [vmem:[%s8599_s5 + $0xad4] ss:$8 sps:$4 sm:$0xff]  }
 0x141   : > { %5535 = vmatpush1.bf16.msra.mxu0 %v7612_v58  ;;  %v7698_v58 = vld [vmem:[%s8599_s5 + $0xa74] ss:$8 sps:$4 sm:$0xff]  }
 0x142   : > { %5576 = vmatpush1.bf16.msra.mxu1 %v7615_v60  ;;  %5536 = vmatprep.subr.bf16.mxu0 %v7620_v62  ;;  %v7696_v60 = vld [vmem:[%s8599_s5 + $0xa70] ss:$8 sps:$4 sm:$0xff]   ;;  %v9005_v62 = vrot.slane %v1107_v56, %v8662_v50  ;;  %v7765_v56 = vld [vmem:[%s8599_s5 + $0xac4] ss:$8 sps:$4 sm:$0xff]  }
 0x143   : > { %5577 = vmatprep.subr.bf16.mxu1 %v7623_v63  ;;  %v7700_v63 = vld [vmem:[%s8599_s5 + $0xb70] ss:$8 sps:$4 sm:$0xff]  }
 0x145   : > { %5537 = vmatpush1.bf16.msra.mxu0 %v7618_v1  ;;  %v7708_v1 = vld [vmem:[%s8599_s5 + $0xb64] ss:$8 sps:$4 sm:$0xff]  }
 0x146   : > { %5578 = vmatpush1.bf16.msra.mxu1 %v7621_v2  ;;  %5538 = vmatprep.subr.bf16.mxu0 %v7626_v3  ;;  %v7703_v2 = vld [vmem:[%s8599_s5 + $0xa60] ss:$8 sps:$4 sm:$0xff]   ;;  %v1122_v3 = vcombine.high %v9002_v61, %v9002_v61 }
 0x147   : > { %5579 = vmatprep.subr.bf16.mxu1 %v7629_v4  ;;  %v1123_v4 = vcombine.high %v9005_v62, %v9005_v62 }
 0x149   : > { %5539 = vmatpush1.bf16.msra.mxu0 %v7624_v5 }
 0x14a   : > { %5580 = vmatpush1.bf16.msra.mxu1 %v7627_v6  ;;  %5540 = vmatprep.subr.bf16.mxu0 %v7632_v7  ;;  %v7706_v7 = vld [vmem:[%s8599_s5 + $0xb60] ss:$8 sps:$4 sm:$0xff]  }
 0x14b   : > { %5581 = vmatprep.subr.bf16.mxu1 %v7635_v8 }
 0x14d   : > { %5541 = vmatpush1.bf16.msra.mxu0 %v7630_v9  ;;  %v7711_v9 = vld [vmem:[%s8599_s5 + $0xa54] ss:$8 sps:$4 sm:$0xff]  }
 0x14e   : > { %5582 = vmatpush1.bf16.msra.mxu1 %v7633_v10  ;;  %5542 = vmatprep.subr.bf16.mxu0 %v7638_v11 }
 0x14f   : > { %5583 = vmatprep.subr.bf16.mxu1 %v7641_v12  ;;  %v7714_v12 = vld [vmem:[%s8599_s5 + $0xb54] ss:$8 sps:$4 sm:$0xff]  }
 0x151   : > { %5543 = vmatpush1.bf16.msra.mxu0 %v7636_v13 }
 0x152   : > { %5584 = vmatpush1.bf16.msra.mxu1 %v7639_v14  ;;  %5544 = vmatprep.subr.bf16.mxu0 %v7644_v15 }
 0x153   : > { %5585 = vmatprep.subr.bf16.mxu1 %v7647_v16  ;;  %v7712_v16 = vld [vmem:[%s8599_s5 + $0xb50] ss:$8 sps:$4 sm:$0xff]  }
 0x155   : > { %5545 = vmatpush1.bf16.msra.mxu0 %v7642_v17 }
 0x156   : > { %5586 = vmatpush1.bf16.msra.mxu1 %v7645_v18  ;;  %5546 = vmatprep.subr.bf16.mxu0 %v7650_v19  ;;  %v7720_v18 = vld [vmem:[%s8599_s5 + $0xb44] ss:$8 sps:$4 sm:$0xff]  }
 0x157   : > { %5587 = vmatprep.subr.bf16.mxu1 %v7653_v20  ;;  %v7715_v20 = vld [vmem:[%s8599_s5 + $0xa40] ss:$8 sps:$4 sm:$0xff]  }
 0x159   : > { %5547 = vmatpush2.bf16.msra.mxu0 %v7648_v21  ;;  %v7718_v21 = vld [vmem:[%s8599_s5 + $0xb40] ss:$8 sps:$4 sm:$0xff]  }
 0x15a   : > { %5588 = vmatpush2.bf16.msra.mxu1 %v7651_v22  ;;  %5548 = vmatprep.subr.bf16.mxu0 %v7656_v23  ;;  %v7723_v22 = vld [vmem:[%s8599_s5 + $0xa34] ss:$8 sps:$4 sm:$0xff]  }
 0x15b   : > { %5589 = vmatprep.subr.bf16.mxu1 %v7659_v24  ;;  %v7726_v23 = vld [vmem:[%s8599_s5 + $0xb34] ss:$8 sps:$4 sm:$0xff]   ;;  %v7721_v24 = vld [vmem:[%s8599_s5 + $0xa30] ss:$8 sps:$4 sm:$0xff]  }
 0x15d   : > { %5549 = vmatpush2.bf16.msra.mxu0 %v7654_v25  ;;  %v7724_v25 = vld [vmem:[%s8599_s5 + $0xb30] ss:$8 sps:$4 sm:$0xff]  }
 0x15e   : > { %5590 = vmatpush2.bf16.msra.mxu1 %v7657_v26  ;;  %5550 = vmatprep.subr.bf16.mxu0 %v7662_v28  ;;  %v7729_v26 = vld [vmem:[%s8599_s5 + $0xa24] ss:$8 sps:$4 sm:$0xff]  }
 0x15f   : > { %5591 = vmatprep.subr.bf16.mxu1 %v7665_v29  ;;  %v7732_v28 = vld [vmem:[%s8599_s5 + $0xb24] ss:$8 sps:$4 sm:$0xff]   ;;  %v7727_v29 = vld [vmem:[%s8599_s5 + $0xa20] ss:$8 sps:$4 sm:$0xff]  }
 0x161   : > { %5551 = vmatpush2.bf16.msra.mxu0 %v7660_v30  ;;  %v7730_v30 = vld [vmem:[%s8599_s5 + $0xb20] ss:$8 sps:$4 sm:$0xff]  }
 0x162   : > { %5592 = vmatpush2.bf16.msra.mxu1 %v7663_v32  ;;  %5552 = vmatprep.subr.bf16.mxu0 %v7668_v35  ;;  %v7735_v32 = vld [vmem:[%s8599_s5 + $0xa14] ss:$8 sps:$4 sm:$0xff]  }
 0x163   : > { %5593 = vmatprep.subr.bf16.mxu1 %v7671_v36  ;;  %v7738_v35 = vld [vmem:[%s8599_s5 + $0xb14] ss:$8 sps:$4 sm:$0xff]   ;;  %v7733_v36 = vld [vmem:[%s8599_s5 + $0xa10] ss:$8 sps:$4 sm:$0xff]  }
 0x165   : > { %5553 = vmatpush2.bf16.msra.mxu0 %v7666_v37  ;;  %v7736_v37 = vld [vmem:[%s8599_s5 + $0xb10] ss:$8 sps:$4 sm:$0xff]  }
 0x166   : > { %5594 = vmatpush2.bf16.msra.mxu1 %v7669_v38  ;;  %5554 = vmatprep.subr.bf16.mxu0 %v7674_v39  ;;  %v7741_v38 = vld [vmem:[%s8599_s5 + $0xa04] ss:$8 sps:$4 sm:$0xff]  }
 0x167   : > { %5595 = vmatprep.subr.bf16.mxu1 %v7677_v40  ;;  %v7744_v39 = vld [vmem:[%s8599_s5 + $0xb04] ss:$8 sps:$4 sm:$0xff]   ;;  %v7739_v40 = vld [vmem:[%s8599_s5 + $0xa00] ss:$8 sps:$4 sm:$0xff]  }
 0x169   : > { %5555 = vmatpush2.bf16.msra.mxu0 %v7672_v41  ;;  %v7742_v41 = vld [vmem:[%s8599_s5 + $0xb00] ss:$8 sps:$4 sm:$0xff]  }
 0x16a   : > { %5596 = vmatpush2.bf16.msra.mxu1 %v7675_v44  ;;  %5556 = vmatprep.subr.bf16.mxu0 %v7680_v45  ;;  %v7747_v44 = vld [vmem:[%s8599_s5 + $0xaf4] ss:$8 sps:$4 sm:$0xff]  }
 0x16b   : > { %5597 = vmatprep.subr.bf16.mxu1 %v7683_v27  ;;  %v7750_v45 = vld [vmem:[%s8599_s5 + $0xbf4] ss:$8 sps:$4 sm:$0xff]   ;;  %v7745_v27 = vld [vmem:[%s8599_s5 + $0xaf0] ss:$8 sps:$4 sm:$0xff]  }
 0x16d   : > { %5557 = vmatpush2.bf16.msra.mxu0 %v7678_v31  ;;  %v7748_v31 = vld [vmem:[%s8599_s5 + $0xbf0] ss:$8 sps:$4 sm:$0xff]  }
 0x16e   : > { %5598 = vmatpush2.bf16.msra.mxu1 %v7681_v46  ;;  %5558 = vmatprep.subr.bf16.mxu0 %v7686_v47  ;;  %v7753_v46 = vld [vmem:[%s8599_s5 + $0xae4] ss:$8 sps:$4 sm:$0xff]  }
 0x16f   : > { %5599 = vmatprep.subr.bf16.mxu1 %v7689_v48  ;;  %v7756_v47 = vld [vmem:[%s8599_s5 + $0xbe4] ss:$8 sps:$4 sm:$0xff]   ;;  %v7751_v48 = vld [vmem:[%s8599_s5 + $0xae0] ss:$8 sps:$4 sm:$0xff]  }
 0x171   : > { %5559 = vmatpush2.bf16.msra.mxu0 %v7684_v49  ;;  %v7754_v49 = vld [vmem:[%s8599_s5 + $0xbe0] ss:$8 sps:$4 sm:$0xff]  }
 0x172   : > { %5600 = vmatpush2.bf16.msra.mxu1 %v7687_v53  ;;  %5560 = vmatprep.subr.bf16.mxu0 %v7692_v54  ;;  %v7762_v53 = vld [vmem:[%s8599_s5 + $0xbd4] ss:$8 sps:$4 sm:$0xff]   ;;  %v7757_v54 = vld [vmem:[%s8599_s5 + $0xad0] ss:$8 sps:$4 sm:$0xff]  }
 0x173   : > { %5601 = vmatprep.subr.bf16.mxu1 %v7695_v55  ;;  %v7760_v55 = vld [vmem:[%s8599_s5 + $0xbd0] ss:$8 sps:$4 sm:$0xff]  }
 0x175   : > { %5561 = vmatpush2.bf16.msra.mxu0 %v7690_v57  ;;  %v7768_v57 = vld [vmem:[%s8599_s5 + $0xbc4] ss:$8 sps:$4 sm:$0xff]  }
 0x176   : > { %5602 = vmatpush2.bf16.msra.mxu1 %v7693_v34  ;;  %5612 = vmatprep.subr.bf16.mxu0 %v7698_v58  ;;  %v7763_v34 = vld [vmem:[%s8599_s5 + $0xac0] ss:$8 sps:$4 sm:$0xff]  }
 0x177   : > { %5653 = vmatprep.subr.bf16.mxu1 %v7702_v59  ;;  %v7766_v58 = vld [vmem:[%s8599_s5 + $0xbc0] ss:$8 sps:$4 sm:$0xff]   ;;  %v7771_v59 = vld [vmem:[%s8599_s5 + $0xab4] ss:$8 sps:$4 sm:$0xff]  }
 0x178   : > { %v5318_v5 = vpop.f32.mrf.mxu0  ;;  %5563 = vmatmul.mubr.bf16.vlgmr.msra.gmra.mxu0 %v8920_v42 }
 0x179   : > { %v5359_v6 = vpop.f32.mrf.mxu1  ;;  %5604 = vmatmul.mubr.bf16.vlgmr.msra.gmra.mxu1 %v8923_v43  ;;  %v5319_v8 = vadd.f32 %v5318_v5, %v8936_v52  ;;  %5613 = vmatpush1.bf16.msra.mxu0 %v7696_v60  ;;  %v7709_v52 = vld [vmem:[%s8599_s5 + $0xa50] ss:$8 sps:$4 sm:$0xff]   ;;  %v7774_v60 = vld [vmem:[%s8599_s5 + $0xbb4] ss:$8 sps:$4 sm:$0xff]  }
 0x17a   : > { %5654 = vmatpush1.bf16.msra.mxu1 %v7700_v63  ;;  %v5320_v10 = vpop.f32.mrf.mxu0  ;;  %5614 = vmatprep.subr.bf16.mxu0 %v7705_v0  ;;  %v7769_v63 = vld [vmem:[%s8599_s5 + $0xab0] ss:$8 sps:$4 sm:$0xff]   ;;  %v7783_v5 = vld [vmem:[%s8599_s5 + $0xa94] ss:$8 sps:$4 sm:$0xff]  }
 0x17b   : > { %v5361_v11 = vpop.f32.mrf.mxu1  ;;  %5655 = vmatprep.subr.bf16.mxu1 %v7708_v1  ;;  %v5321_v42 = vadd.f32 %v5320_v10, %v8941_v33  ;;  %v9022_v13 = vadd.f32 %v5359_v6, %v5319_v8  ;;  %5644 = vmatprep.mubr.bf16.mxu0 %v1122_v3  ;;  %v7717_v33 = vld [vmem:[%s8599_s5 + $0xa44] ss:$8 sps:$4 sm:$0xff]   ;;  %v7772_v0 = vld [vmem:[%s8599_s5 + $0xbb0] ss:$8 sps:$4 sm:$0xff]   ;;  %v7775_v3 = vld [vmem:[%s8599_s5 + $0xaa0] ss:$8 sps:$4 sm:$0xff]  }
 0x17c   : > { %5685 = vmatprep.mubr.bf16.mxu1 %v1123_v4  ;;  %v5322_v43 = vpop.f32.mrf.mxu0  ;;  %v7777_v1 = vld [vmem:[%s8599_s5 + $0xaa4] ss:$8 sps:$4 sm:$0xff]   ;;  %v7778_v4 = vld [vmem:[%s8599_s5 + $0xba0] ss:$8 sps:$4 sm:$0xff]   ;;  %v7786_v6 = vld [vmem:[%s8599_s5 + $0xb94] ss:$8 sps:$4 sm:$0xff]  }
 0x17d   : > { %v5363_v14 = vpop.f32.mrf.mxu1  ;;  %v9025_v15 = vadd.f32 %v5361_v11, %v5321_v42  ;;  %5615 = vmatpush1.bf16.msra.mxu0 %v7703_v2  ;;  %v7780_v2 = vld [vmem:[%s8599_s5 + $0xba4] ss:$8 sps:$4 sm:$0xff]   ;;  %v7787_v42 = vld [vmem:[%s8599_s5 + $0xa80] ss:$8 sps:$4 sm:$0xff]  }
 0x17e   : > { %5656 = vmatpush1.bf16.msra.mxu1 %v7706_v7  ;;  %v5323_v17 = vpop.f32.mrf.mxu0  ;;  %5616 = vmatprep.subr.bf16.mxu0 %v7711_v9  ;;  %v7781_v7 = vld [vmem:[%s8599_s5 + $0xa90] ss:$8 sps:$4 sm:$0xff]   ;;  %v218_v8 = vld [vmem:[%s8615_s22 + $0x30] sm:$0xff]  ;;  %v7799_v14 = vld [vmem:[%s8599_s5 + $0xd74] ss:$8 sps:$4 sm:$0xff]  }
 0x17f   : > { %5657 = vmatprep.subr.bf16.mxu1 %v7714_v12  ;;  %v5364_v19 = vpop.f32.mrf.mxu1  ;;  %v7784_v9 = vld [vmem:[%s8599_s5 + $0xb90] ss:$8 sps:$4 sm:$0xff]   ;;  %v7789_v10 = vld [vmem:[%s8599_s5 + $0xa84] ss:$8 sps:$4 sm:$0xff]   ;;  %v1124_v12 = vcombine.high %v218_v8, %v218_v8  ;;  %v7790_v43 = vld [vmem:[%s8599_s5 + $0xb80] ss:$8 sps:$4 sm:$0xff]   ;;  %v9085_v17 = vrot.slane %v218_v8, %v8662_v50 }
 0x180   : > { %v7792_v11 = vld [vmem:[%s8599_s5 + $0xb84] ss:$8 sps:$4 sm:$0xff]   ;;  %v7856_v8 = vld [vmem:[%s8599_s5 + $0xcd4] ss:$8 sps:$4 sm:$0xff]  }
 0x181   : > { %5617 = vmatpush1.bf16.msra.mxu0 %v7709_v52  ;;  %v7795_v52 = vld [vmem:[%s8599_s5 + $0xc74] ss:$8 sps:$4 sm:$0xff]   ;;  %v7802_v19 = vld [vmem:[%s8599_s5 + $0xc64] ss:$8 sps:$4 sm:$0xff]  }
 0x182   : > { %5658 = vmatpush1.bf16.msra.mxu1 %v7712_v16  ;;  %5618 = vmatprep.subr.bf16.mxu0 %v7717_v33  ;;  %v7793_v16 = vld [vmem:[%s8599_s5 + $0xc70] ss:$8 sps:$4 sm:$0xff]   ;;  %v9088_v33 = vrot.slane %v1124_v12, %v8662_v50  ;;  %v7862_v12 = vld [vmem:[%s8599_s5 + $0xcc4] ss:$8 sps:$4 sm:$0xff]  }
 0x183   : > { %5659 = vmatprep.subr.bf16.mxu1 %v7720_v18  ;;  %v7797_v18 = vld [vmem:[%s8599_s5 + $0xd70] ss:$8 sps:$4 sm:$0xff]  }
 0x185   : > { %5619 = vmatpush1.bf16.msra.mxu0 %v7715_v20  ;;  %v7805_v20 = vld [vmem:[%s8599_s5 + $0xd64] ss:$8 sps:$4 sm:$0xff]  }
 0x186   : > { %5660 = vmatpush1.bf16.msra.mxu1 %v7718_v21  ;;  %5620 = vmatprep.subr.bf16.mxu0 %v7723_v22  ;;  %v7800_v21 = vld [vmem:[%s8599_s5 + $0xc60] ss:$8 sps:$4 sm:$0xff]   ;;  %v1139_v22 = vcombine.high %v9085_v17, %v9085_v17 }
 0x187   : > { %5661 = vmatprep.subr.bf16.mxu1 %v7726_v23  ;;  %v1140_v23 = vcombine.high %v9088_v33, %v9088_v33 }
 0x189   : > { %5621 = vmatpush1.bf16.msra.mxu0 %v7721_v24 }
 0x18a   : > { %5662 = vmatpush1.bf16.msra.mxu1 %v7724_v25  ;;  %5622 = vmatprep.subr.bf16.mxu0 %v7729_v26  ;;  %v7803_v26 = vld [vmem:[%s8599_s5 + $0xd60] ss:$8 sps:$4 sm:$0xff]  }
 0x18b   : > { %5663 = vmatprep.subr.bf16.mxu1 %v7732_v28 }
 0x18d   : > { %5623 = vmatpush1.bf16.msra.mxu0 %v7727_v29  ;;  %v7808_v29 = vld [vmem:[%s8599_s5 + $0xc54] ss:$8 sps:$4 sm:$0xff]  }
 0x18e   : > { %5664 = vmatpush1.bf16.msra.mxu1 %v7730_v30  ;;  %5624 = vmatprep.subr.bf16.mxu0 %v7735_v32 }
 0x18f   : > { %5665 = vmatprep.subr.bf16.mxu1 %v7738_v35  ;;  %v7811_v35 = vld [vmem:[%s8599_s5 + $0xd54] ss:$8 sps:$4 sm:$0xff]  }
 0x191   : > { %5625 = vmatpush1.bf16.msra.mxu0 %v7733_v36 }
 0x192   : > { %5666 = vmatpush1.bf16.msra.mxu1 %v7736_v37  ;;  %5626 = vmatprep.subr.bf16.mxu0 %v7741_v38 }
 0x193   : > { %5667 = vmatprep.subr.bf16.mxu1 %v7744_v39  ;;  %v7809_v39 = vld [vmem:[%s8599_s5 + $0xd50] ss:$8 sps:$4 sm:$0xff]  }
 0x195   : > { %5627 = vmatpush1.bf16.msra.mxu0 %v7739_v40 }
 0x196   : > { %5668 = vmatpush1.bf16.msra.mxu1 %v7742_v41  ;;  %5628 = vmatprep.subr.bf16.mxu0 %v7747_v44  ;;  %v7817_v41 = vld [vmem:[%s8599_s5 + $0xd44] ss:$8 sps:$4 sm:$0xff]  }
 0x197   : > { %5669 = vmatprep.subr.bf16.mxu1 %v7750_v45  ;;  %v7812_v45 = vld [vmem:[%s8599_s5 + $0xc40] ss:$8 sps:$4 sm:$0xff]  }
 0x199   : > { %5629 = vmatpush2.bf16.msra.mxu0 %v7745_v27  ;;  %v7815_v27 = vld [vmem:[%s8599_s5 + $0xd40] ss:$8 sps:$4 sm:$0xff]  }
 0x19a   : > { %5670 = vmatpush2.bf16.msra.mxu1 %v7748_v31  ;;  %5630 = vmatprep.subr.bf16.mxu0 %v7753_v46  ;;  %v7820_v31 = vld [vmem:[%s8599_s5 + $0xc34] ss:$8 sps:$4 sm:$0xff]  }
 0x19b   : > { %5671 = vmatprep.subr.bf16.mxu1 %v7756_v47  ;;  %v7823_v46 = vld [vmem:[%s8599_s5 + $0xd34] ss:$8 sps:$4 sm:$0xff]   ;;  %v7818_v47 = vld [vmem:[%s8599_s5 + $0xc30] ss:$8 sps:$4 sm:$0xff]  }
 0x19d   : > { %5631 = vmatpush2.bf16.msra.mxu0 %v7751_v48  ;;  %v7821_v48 = vld [vmem:[%s8599_s5 + $0xd30] ss:$8 sps:$4 sm:$0xff]  }
 0x19e   : > { %5672 = vmatpush2.bf16.msra.mxu1 %v7754_v49  ;;  %5632 = vmatprep.subr.bf16.mxu0 %v7759_v51  ;;  %v7826_v49 = vld [vmem:[%s8599_s5 + $0xc24] ss:$8 sps:$4 sm:$0xff]  }
 0x19f   : > { %5673 = vmatprep.subr.bf16.mxu1 %v7762_v53  ;;  %v7829_v51 = vld [vmem:[%s8599_s5 + $0xd24] ss:$8 sps:$4 sm:$0xff]   ;;  %v7824_v53 = vld [vmem:[%s8599_s5 + $0xc20] ss:$8 sps:$4 sm:$0xff]  }
 0x1a1   : > { %5633 = vmatpush2.bf16.msra.mxu0 %v7757_v54  ;;  %v7827_v54 = vld [vmem:[%s8599_s5 + $0xd20] ss:$8 sps:$4 sm:$0xff]  }
 0x1a2   : > { %5674 = vmatpush2.bf16.msra.mxu1 %v7760_v55  ;;  %5634 = vmatprep.subr.bf16.mxu0 %v7765_v56  ;;  %v7832_v55 = vld [vmem:[%s8599_s5 + $0xc14] ss:$8 sps:$4 sm:$0xff]  }
 0x1a3   : > { %5675 = vmatprep.subr.bf16.mxu1 %v7768_v57  ;;  %v7835_v56 = vld [vmem:[%s8599_s5 + $0xd14] ss:$8 sps:$4 sm:$0xff]   ;;  %v7830_v57 = vld [vmem:[%s8599_s5 + $0xc10] ss:$8 sps:$4 sm:$0xff]  }
 0x1a5   : > { %5635 = vmatpush2.bf16.msra.mxu0 %v7763_v34  ;;  %v7833_v34 = vld [vmem:[%s8599_s5 + $0xd10] ss:$8 sps:$4 sm:$0xff]  }
 0x1a6   : > { %5676 = vmatpush2.bf16.msra.mxu1 %v7766_v58  ;;  %5636 = vmatprep.subr.bf16.mxu0 %v7771_v59  ;;  %v7838_v58 = vld [vmem:[%s8599_s5 + $0xc04] ss:$8 sps:$4 sm:$0xff]  }
 0x1a7   : > { %5677 = vmatprep.subr.bf16.mxu1 %v7774_v60  ;;  %v7841_v59 = vld [vmem:[%s8599_s5 + $0xd04] ss:$8 sps:$4 sm:$0xff]   ;;  %v7836_v60 = vld [vmem:[%s8599_s5 + $0xc00] ss:$8 sps:$4 sm:$0xff]  }
 0x1a9   : > { %5637 = vmatpush2.bf16.msra.mxu0 %v7769_v63  ;;  %v7839_v63 = vld [vmem:[%s8599_s5 + $0xd00] ss:$8 sps:$4 sm:$0xff]  }
 0x1aa   : > { %5678 = vmatpush2.bf16.msra.mxu1 %v7772_v0  ;;  %5638 = vmatprep.subr.bf16.mxu0 %v7777_v1  ;;  %v7844_v0 = vld [vmem:[%s8599_s5 + $0xcf4] ss:$8 sps:$4 sm:$0xff]  }
 0x1ab   : > { %5679 = vmatprep.subr.bf16.mxu1 %v7780_v2  ;;  %v7847_v1 = vld [vmem:[%s8599_s5 + $0xdf4] ss:$8 sps:$4 sm:$0xff]   ;;  %v7842_v2 = vld [vmem:[%s8599_s5 + $0xcf0] ss:$8 sps:$4 sm:$0xff]  }
 0x1ad   : > { %5639 = vmatpush2.bf16.msra.mxu0 %v7775_v3  ;;  %v7845_v3 = vld [vmem:[%s8599_s5 + $0xdf0] ss:$8 sps:$4 sm:$0xff]  }
 0x1ae   : > { %5680 = vmatpush2.bf16.msra.mxu1 %v7778_v4  ;;  %5640 = vmatprep.subr.bf16.mxu0 %v7783_v5  ;;  %v7850_v4 = vld [vmem:[%s8599_s5 + $0xce4] ss:$8 sps:$4 sm:$0xff]  }
 0x1af   : > { %5681 = vmatprep.subr.bf16.mxu1 %v7786_v6  ;;  %v7853_v5 = vld [vmem:[%s8599_s5 + $0xde4] ss:$8 sps:$4 sm:$0xff]   ;;  %v7848_v6 = vld [vmem:[%s8599_s5 + $0xce0] ss:$8 sps:$4 sm:$0xff]  }
 0x1b1   : > { %5641 = vmatpush2.bf16.msra.mxu0 %v7781_v7  ;;  %v7851_v7 = vld [vmem:[%s8599_s5 + $0xde0] ss:$8 sps:$4 sm:$0xff]  }
 0x1b2   : > { %5682 = vmatpush2.bf16.msra.mxu1 %v7784_v9  ;;  %5642 = vmatprep.subr.bf16.mxu0 %v7789_v10  ;;  %v7859_v9 = vld [vmem:[%s8599_s5 + $0xdd4] ss:$8 sps:$4 sm:$0xff]   ;;  %v7854_v10 = vld [vmem:[%s8599_s5 + $0xcd0] ss:$8 sps:$4 sm:$0xff]  }
 0x1b3   : > { %5683 = vmatprep.subr.bf16.mxu1 %v7792_v11  ;;  %v7857_v11 = vld [vmem:[%s8599_s5 + $0xdd0] ss:$8 sps:$4 sm:$0xff]  }
 0x1b5   : > { %5643 = vmatpush2.bf16.msra.mxu0 %v7787_v42  ;;  %v7865_v42 = vld [vmem:[%s8599_s5 + $0xdc4] ss:$8 sps:$4 sm:$0xff]  }
 0x1b6   : > { %5684 = vmatpush2.bf16.msra.mxu1 %v7790_v43  ;;  %5694 = vmatprep.subr.bf16.mxu0 %v7795_v52  ;;  %v7860_v43 = vld [vmem:[%s8599_s5 + $0xcc0] ss:$8 sps:$4 sm:$0xff]  }
 0x1b7   : > { %5735 = vmatprep.subr.bf16.mxu1 %v7799_v14  ;;  %v7863_v52 = vld [vmem:[%s8599_s5 + $0xdc0] ss:$8 sps:$4 sm:$0xff]   ;;  %v7868_v14 = vld [vmem:[%s8599_s5 + $0xcb4] ss:$8 sps:$4 sm:$0xff]  }
 0x1b8   : > { %v5400_v24 = vpop.f32.mrf.mxu0  ;;  %5645 = vmatmul.mubr.bf16.vlgmr.msra.gmra.mxu0 %v9002_v61 }
 0x1b9   : > { %v5441_v25 = vpop.f32.mrf.mxu1  ;;  %5686 = vmatmul.mubr.bf16.vlgmr.msra.gmra.mxu1 %v9005_v62  ;;  %v5401_v28 = vadd.f32 %v5400_v24, %v9022_v13  ;;  %5695 = vmatpush1.bf16.msra.mxu0 %v7793_v16  ;;  %v7806_v13 = vld [vmem:[%s8599_s5 + $0xc50] ss:$8 sps:$4 sm:$0xff]   ;;  %v7871_v16 = vld [vmem:[%s8599_s5 + $0xdb4] ss:$8 sps:$4 sm:$0xff]  }
 0x1ba   : > { %5736 = vmatpush1.bf16.msra.mxu1 %v7797_v18  ;;  %v5402_v30 = vpop.f32.mrf.mxu0  ;;  %5696 = vmatprep.subr.bf16.mxu0 %v7802_v19  ;;  %v7866_v18 = vld [vmem:[%s8599_s5 + $0xcb0] ss:$8 sps:$4 sm:$0xff]   ;;  %v7880_v24 = vld [vmem:[%s8599_s5 + $0xc94] ss:$8 sps:$4 sm:$0xff]  }
 0x1bb   : > { %v5443_v32 = vpop.f32.mrf.mxu1  ;;  %5737 = vmatprep.subr.bf16.mxu1 %v7805_v20  ;;  %v5403_v61 = vadd.f32 %v5402_v30, %v9025_v15  ;;  %v9105_v36 = vadd.f32 %v5441_v25, %v5401_v28  ;;  %5726 = vmatprep.mubr.bf16.mxu0 %v1139_v22  ;;  %v7814_v15 = vld [vmem:[%s8599_s5 + $0xc44] ss:$8 sps:$4 sm:$0xff]   ;;  %v7869_v19 = vld [vmem:[%s8599_s5 + $0xdb0] ss:$8 sps:$4 sm:$0xff]   ;;  %v7872_v22 = vld [vmem:[%s8599_s5 + $0xca0] ss:$8 sps:$4 sm:$0xff]  }
 0x1bc   : > { %5767 = vmatprep.mubr.bf16.mxu1 %v1140_v23  ;;  %v5404_v62 = vpop.f32.mrf.mxu0  ;;  %v7874_v20 = vld [vmem:[%s8599_s5 + $0xca4] ss:$8 sps:$4 sm:$0xff]   ;;  %v7875_v23 = vld [vmem:[%s8599_s5 + $0xda0] ss:$8 sps:$4 sm:$0xff]   ;;  %v7883_v25 = vld [vmem:[%s8599_s5 + $0xd94] ss:$8 sps:$4 sm:$0xff]  }
 0x1bd   : > { %v5445_v37 = vpop.f32.mrf.mxu1  ;;  %v9108_v38 = vadd.f32 %v5443_v32, %v5403_v61  ;;  %5697 = vmatpush1.bf16.msra.mxu0 %v7800_v21  ;;  %v7877_v21 = vld [vmem:[%s8599_s5 + $0xda4] ss:$8 sps:$4 sm:$0xff]   ;;  %v219_v28 = vld [vmem:[%s8615_s22 + $0x38] sm:$0xff]  ;;  %v7884_v61 = vld [vmem:[%s8599_s5 + $0xc80] ss:$8 sps:$4 sm:$0xff]  }
 0x1be   : > { %5738 = vmatpush1.bf16.msra.mxu1 %v7803_v26  ;;  %v5405_v40 = vpop.f32.mrf.mxu0  ;;  %5698 = vmatprep.subr.bf16.mxu0 %v7808_v29  ;;  %v7878_v26 = vld [vmem:[%s8599_s5 + $0xc90] ss:$8 sps:$4 sm:$0xff]   ;;  %v7886_v30 = vld [vmem:[%s8599_s5 + $0xc84] ss:$8 sps:$4 sm:$0xff]   ;;  %v7887_v62 = vld [vmem:[%s8599_s5 + $0xd80] ss:$8 sps:$4 sm:$0xff]  }
 0x1bf   : > { %5739 = vmatprep.subr.bf16.mxu1 %v7811_v35  ;;  %v5446_v44 = vpop.f32.mrf.mxu1  ;;  %v7881_v29 = vld [vmem:[%s8599_s5 + $0xd90] ss:$8 sps:$4 sm:$0xff]   ;;  %v7889_v32 = vld [vmem:[%s8599_s5 + $0xd84] ss:$8 sps:$4 sm:$0xff]   ;;  %v1141_v35 = vcombine.high %v219_v28, %v219_v28  ;;  %v7896_v37 = vld [vmem:[%s8599_s5 + $0xf74] ss:$8 sps:$4 sm:$0xff]   ;;  %v9168_v40 = vrot.slane %v219_v28, %v8662_v50 }
 0x1c0   : > { %v7899_v44 = vld [vmem:[%s8599_s5 + $0xe64] ss:$8 sps:$4 sm:$0xff]   ;;  %v7953_v28 = vld [vmem:[%s8599_s5 + $0xed4] ss:$8 sps:$4 sm:$0xff]  }
 0x1c1   : > { %5699 = vmatpush1.bf16.msra.mxu0 %v7806_v13  ;;  %v7892_v13 = vld [vmem:[%s8599_s5 + $0xe74] ss:$8 sps:$4 sm:$0xff]  }
 0x1c2   : > { %5740 = vmatpush1.bf16.msra.mxu1 %v7809_v39  ;;  %5700 = vmatprep.subr.bf16.mxu0 %v7814_v15  ;;  %v7890_v39 = vld [vmem:[%s8599_s5 + $0xe70] ss:$8 sps:$4 sm:$0xff]   ;;  %v9171_v15 = vrot.slane %v1141_v35, %v8662_v50  ;;  %v7959_v35 = vld [vmem:[%s8599_s5 + $0xec4] ss:$8 sps:$4 sm:$0xff]  }
 0x1c3   : > { %5741 = vmatprep.subr.bf16.mxu1 %v7817_v41  ;;  %v7894_v41 = vld [vmem:[%s8599_s5 + $0xf70] ss:$8 sps:$4 sm:$0xff]  }
 0x1c5   : > { %5701 = vmatpush1.bf16.msra.mxu0 %v7812_v45  ;;  %v7902_v45 = vld [vmem:[%s8599_s5 + $0xf64] ss:$8 sps:$4 sm:$0xff]  }
 0x1c6   : > { %5742 = vmatpush1.bf16.msra.mxu1 %v7815_v27  ;;  %5702 = vmatprep.subr.bf16.mxu0 %v7820_v31  ;;  %v7897_v27 = vld [vmem:[%s8599_s5 + $0xe60] ss:$8 sps:$4 sm:$0xff]   ;;  %v1156_v31 = vcombine.high %v9168_v40, %v9168_v40 }
 0x1c7   : > { %5743 = vmatprep.subr.bf16.mxu1 %v7823_v46  ;;  %v1157_v46 = vcombine.high %v9171_v15, %v9171_v15 }
 0x1c9   : > { %5703 = vmatpush1.bf16.msra.mxu0 %v7818_v47 }
 0x1ca   : > { %5744 = vmatpush1.bf16.msra.mxu1 %v7821_v48  ;;  %5704 = vmatprep.subr.bf16.mxu0 %v7826_v49  ;;  %v7900_v49 = vld [vmem:[%s8599_s5 + $0xf60] ss:$8 sps:$4 sm:$0xff]  }
 0x1cb   : > { %5745 = vmatprep.subr.bf16.mxu1 %v7829_v51 }
 0x1cd   : > { %5705 = vmatpush1.bf16.msra.mxu0 %v7824_v53  ;;  %v7905_v53 = vld [vmem:[%s8599_s5 + $0xe54] ss:$8 sps:$4 sm:$0xff]  }
 0x1ce   : > { %5746 = vmatpush1.bf16.msra.mxu1 %v7827_v54  ;;  %5706 = vmatprep.subr.bf16.mxu0 %v7832_v55 }
 0x1cf   : > { %5747 = vmatprep.subr.bf16.mxu1 %v7835_v56  ;;  %v7908_v56 = vld [vmem:[%s8599_s5 + $0xf54] ss:$8 sps:$4 sm:$0xff]  }
 0x1d1   : > { %5707 = vmatpush1.bf16.msra.mxu0 %v7830_v57 }
 0x1d2   : > { %5748 = vmatpush1.bf16.msra.mxu1 %v7833_v34  ;;  %5708 = vmatprep.subr.bf16.mxu0 %v7838_v58 }
 0x1d3   : > { %5749 = vmatprep.subr.bf16.mxu1 %v7841_v59  ;;  %v7906_v59 = vld [vmem:[%s8599_s5 + $0xf50] ss:$8 sps:$4 sm:$0xff]  }
 0x1d5   : > { %5709 = vmatpush1.bf16.msra.mxu0 %v7836_v60 }
 0x1d6   : > { %5750 = vmatpush1.bf16.msra.mxu1 %v7839_v63  ;;  %5710 = vmatprep.subr.bf16.mxu0 %v7844_v0  ;;  %v7914_v63 = vld [vmem:[%s8599_s5 + $0xf44] ss:$8 sps:$4 sm:$0xff]  }
 0x1d7   : > { %5751 = vmatprep.subr.bf16.mxu1 %v7847_v1  ;;  %v7909_v1 = vld [vmem:[%s8599_s5 + $0xe40] ss:$8 sps:$4 sm:$0xff]  }
 0x1d9   : > { %5711 = vmatpush2.bf16.msra.mxu0 %v7842_v2  ;;  %v7912_v2 = vld [vmem:[%s8599_s5 + $0xf40] ss:$8 sps:$4 sm:$0xff]  }
 0x1da   : > { %5752 = vmatpush2.bf16.msra.mxu1 %v7845_v3  ;;  %5712 = vmatprep.subr.bf16.mxu0 %v7850_v4  ;;  %v7917_v3 = vld [vmem:[%s8599_s5 + $0xe34] ss:$8 sps:$4 sm:$0xff]  }
 0x1db   : > { %5753 = vmatprep.subr.bf16.mxu1 %v7853_v5  ;;  %v7920_v4 = vld [vmem:[%s8599_s5 + $0xf34] ss:$8 sps:$4 sm:$0xff]   ;;  %v7915_v5 = vld [vmem:[%s8599_s5 + $0xe30] ss:$8 sps:$4 sm:$0xff]  }
 0x1dd   : > { %5713 = vmatpush2.bf16.msra.mxu0 %v7848_v6  ;;  %v7918_v6 = vld [vmem:[%s8599_s5 + $0xf30] ss:$8 sps:$4 sm:$0xff]  }
 0x1de   : > { %5754 = vmatpush2.bf16.msra.mxu1 %v7851_v7  ;;  %5714 = vmatprep.subr.bf16.mxu0 %v7856_v8  ;;  %v7923_v7 = vld [vmem:[%s8599_s5 + $0xe24] ss:$8 sps:$4 sm:$0xff]  }
 0x1df   : > { %5755 = vmatprep.subr.bf16.mxu1 %v7859_v9  ;;  %v7926_v8 = vld [vmem:[%s8599_s5 + $0xf24] ss:$8 sps:$4 sm:$0xff]   ;;  %v7921_v9 = vld [vmem:[%s8599_s5 + $0xe20] ss:$8 sps:$4 sm:$0xff]  }
 0x1e1   : > { %5715 = vmatpush2.bf16.msra.mxu0 %v7854_v10  ;;  %v7924_v10 = vld [vmem:[%s8599_s5 + $0xf20] ss:$8 sps:$4 sm:$0xff]  }
 0x1e2   : > { %5756 = vmatpush2.bf16.msra.mxu1 %v7857_v11  ;;  %5716 = vmatprep.subr.bf16.mxu0 %v7862_v12  ;;  %v7929_v11 = vld [vmem:[%s8599_s5 + $0xe14] ss:$8 sps:$4 sm:$0xff]  }
 0x1e3   : > { %5757 = vmatprep.subr.bf16.mxu1 %v7865_v42  ;;  %v7932_v12 = vld [vmem:[%s8599_s5 + $0xf14] ss:$8 sps:$4 sm:$0xff]   ;;  %v7927_v42 = vld [vmem:[%s8599_s5 + $0xe10] ss:$8 sps:$4 sm:$0xff]  }
 0x1e5   : > { %5717 = vmatpush2.bf16.msra.mxu0 %v7860_v43  ;;  %v7930_v43 = vld [vmem:[%s8599_s5 + $0xf10] ss:$8 sps:$4 sm:$0xff]  }
 0x1e6   : > { %5758 = vmatpush2.bf16.msra.mxu1 %v7863_v52  ;;  %5718 = vmatprep.subr.bf16.mxu0 %v7868_v14  ;;  %v7935_v52 = vld [vmem:[%s8599_s5 + $0xe04] ss:$8 sps:$4 sm:$0xff]  }
 0x1e7   : > { %5759 = vmatprep.subr.bf16.mxu1 %v7871_v16  ;;  %v7938_v14 = vld [vmem:[%s8599_s5 + $0xf04] ss:$8 sps:$4 sm:$0xff]   ;;  %v7933_v16 = vld [vmem:[%s8599_s5 + $0xe00] ss:$8 sps:$4 sm:$0xff]  }
 0x1e9   : > { %5719 = vmatpush2.bf16.msra.mxu0 %v7866_v18  ;;  %v7936_v18 = vld [vmem:[%s8599_s5 + $0xf00] ss:$8 sps:$4 sm:$0xff]  }
 0x1ea   : > { %5760 = vmatpush2.bf16.msra.mxu1 %v7869_v19  ;;  %5720 = vmatprep.subr.bf16.mxu0 %v7874_v20  ;;  %v7941_v19 = vld [vmem:[%s8599_s5 + $0xef4] ss:$8 sps:$4 sm:$0xff]  }
 0x1eb   : > { %5761 = vmatprep.subr.bf16.mxu1 %v7877_v21  ;;  %v7944_v20 = vld [vmem:[%s8599_s5 + $0xff4] ss:$8 sps:$4 sm:$0xff]   ;;  %v7939_v21 = vld [vmem:[%s8599_s5 + $0xef0] ss:$8 sps:$4 sm:$0xff]  }
 0x1ed   : > { %5721 = vmatpush2.bf16.msra.mxu0 %v7872_v22  ;;  %v7942_v22 = vld [vmem:[%s8599_s5 + $0xff0] ss:$8 sps:$4 sm:$0xff]  }
 0x1ee   : > { %5762 = vmatpush2.bf16.msra.mxu1 %v7875_v23  ;;  %5722 = vmatprep.subr.bf16.mxu0 %v7880_v24  ;;  %v7947_v23 = vld [vmem:[%s8599_s5 + $0xee4] ss:$8 sps:$4 sm:$0xff]  }
 0x1ef   : > { %5763 = vmatprep.subr.bf16.mxu1 %v7883_v25  ;;  %v7950_v24 = vld [vmem:[%s8599_s5 + $0xfe4] ss:$8 sps:$4 sm:$0xff]   ;;  %v7945_v25 = vld [vmem:[%s8599_s5 + $0xee0] ss:$8 sps:$4 sm:$0xff]  }
 0x1f1   : > { %5723 = vmatpush2.bf16.msra.mxu0 %v7878_v26  ;;  %v7948_v26 = vld [vmem:[%s8599_s5 + $0xfe0] ss:$8 sps:$4 sm:$0xff]  }
 0x1f2   : > { %5764 = vmatpush2.bf16.msra.mxu1 %v7881_v29  ;;  %5724 = vmatprep.subr.bf16.mxu0 %v7886_v30  ;;  %v7956_v29 = vld [vmem:[%s8599_s5 + $0xfd4] ss:$8 sps:$4 sm:$0xff]   ;;  %v7951_v30 = vld [vmem:[%s8599_s5 + $0xed0] ss:$8 sps:$4 sm:$0xff]  }
 0x1f3   : > { %5765 = vmatprep.subr.bf16.mxu1 %v7889_v32  ;;  %v7954_v32 = vld [vmem:[%s8599_s5 + $0xfd0] ss:$8 sps:$4 sm:$0xff]  }
 0x1f5   : > { %5725 = vmatpush2.bf16.msra.mxu0 %v7884_v61  ;;  %v7962_v61 = vld [vmem:[%s8599_s5 + $0xfc4] ss:$8 sps:$4 sm:$0xff]  }
 0x1f6   : > { %5766 = vmatpush2.bf16.msra.mxu1 %v7887_v62  ;;  %5776 = vmatprep.subr.bf16.mxu0 %v7892_v13  ;;  %v7957_v62 = vld [vmem:[%s8599_s5 + $0xec0] ss:$8 sps:$4 sm:$0xff]  }
 0x1f7   : > { %5817 = vmatprep.subr.bf16.mxu1 %v7896_v37  ;;  %v7960_v13 = vld [vmem:[%s8599_s5 + $0xfc0] ss:$8 sps:$4 sm:$0xff]   ;;  %v7965_v37 = vld [vmem:[%s8599_s5 + $0xeb4] ss:$8 sps:$4 sm:$0xff]  }
 0x1f8   : > { %v5482_v47 = vpop.f32.mrf.mxu0  ;;  %5727 = vmatmul.mubr.bf16.vlgmr.msra.gmra.mxu0 %v9085_v17 }
 0x1f9   : > { %v5523_v48 = vpop.f32.mrf.mxu1  ;;  %5768 = vmatmul.mubr.bf16.vlgmr.msra.gmra.mxu1 %v9088_v33  ;;  %v5483_v51 = vadd.f32 %v5482_v47, %v9105_v36  ;;  %5777 = vmatpush1.bf16.msra.mxu0 %v7890_v39  ;;  %v7903_v36 = vld [vmem:[%s8599_s5 + $0xe50] ss:$8 sps:$4 sm:$0xff]   ;;  %v7968_v39 = vld [vmem:[%s8599_s5 + $0xfb4] ss:$8 sps:$4 sm:$0xff]  }
 0x1fa   : > { %5818 = vmatpush1.bf16.msra.mxu1 %v7894_v41  ;;  %v5484_v54 = vpop.f32.mrf.mxu0  ;;  %5778 = vmatprep.subr.bf16.mxu0 %v7899_v44  ;;  %v7963_v41 = vld [vmem:[%s8599_s5 + $0xeb0] ss:$8 sps:$4 sm:$0xff]   ;;  %v7977_v47 = vld [vmem:[%s8599_s5 + $0xe94] ss:$8 sps:$4 sm:$0xff]  }
 0x1fb   : > { %v5525_v55 = vpop.f32.mrf.mxu1  ;;  %5819 = vmatprep.subr.bf16.mxu1 %v7902_v45  ;;  %v5485_v17 = vadd.f32 %v5484_v54, %v9108_v38  ;;  %v9188_v57 = vadd.f32 %v5523_v48, %v5483_v51  ;;  %5808 = vmatprep.mubr.bf16.mxu0 %v1156_v31  ;;  %v7911_v38 = vld [vmem:[%s8599_s5 + $0xe44] ss:$8 sps:$4 sm:$0xff]   ;;  %v7966_v44 = vld [vmem:[%s8599_s5 + $0xfb0] ss:$8 sps:$4 sm:$0xff]   ;;  %v7969_v31 = vld [vmem:[%s8599_s5 + $0xea0] ss:$8 sps:$4 sm:$0xff]  }
 0x1fc   : > { %5849 = vmatprep.mubr.bf16.mxu1 %v1157_v46  ;;  %v5486_v33 = vpop.f32.mrf.mxu0  ;;  %v7971_v45 = vld [vmem:[%s8599_s5 + $0xea4] ss:$8 sps:$4 sm:$0xff]   ;;  %v7972_v46 = vld [vmem:[%s8599_s5 + $0xfa0] ss:$8 sps:$4 sm:$0xff]   ;;  %v7980_v48 = vld [vmem:[%s8599_s5 + $0xf94] ss:$8 sps:$4 sm:$0xff]  }
 0x1fd   : > { %v5527_v34 = vpop.f32.mrf.mxu1  ;;  %v9191_v58 = vadd.f32 %v5525_v55, %v5485_v17  ;;  %5779 = vmatpush1.bf16.msra.mxu0 %v7897_v27  ;;  %v7974_v27 = vld [vmem:[%s8599_s5 + $0xfa4] ss:$8 sps:$4 sm:$0xff]   ;;  %v7975_v51 = vld [vmem:[%s8599_s5 + $0xe90] ss:$8 sps:$4 sm:$0xff]   ;;  %v7981_v17 = vld [vmem:[%s8599_s5 + $0xe80] ss:$8 sps:$4 sm:$0xff]  }
 0x1fe   : > { %5820 = vmatpush1.bf16.msra.mxu1 %v7900_v49  ;;  %v5487_v60 = vpop.f32.mrf.mxu0  ;;  %5780 = vmatprep.subr.bf16.mxu0 %v7905_v53  ;;  %v220_v49 = vld [vmem:[%s8615_s22 + $0x40] sm:$0xff]  ;;  %v7983_v54 = vld [vmem:[%s8599_s5 + $0xe84] ss:$8 sps:$4 sm:$0xff]   ;;  %v7984_v33 = vld [vmem:[%s8599_s5 + $0xf80] ss:$8 sps:$4 sm:$0xff]  }
 0x1ff   : > { %5821 = vmatprep.subr.bf16.mxu1 %v7908_v56  ;;  %v5528_v0 = vpop.f32.mrf.mxu1  ;;  %v7978_v53 = vld [vmem:[%s8599_s5 + $0xf90] ss:$8 sps:$4 sm:$0xff]   ;;  %v7986_v55 = vld [vmem:[%s8599_s5 + $0xf84] ss:$8 sps:$4 sm:$0xff]   ;;  %v1158_v56 = vcombine.high %v220_v49, %v220_v49  ;;  %v7993_v34 = vld [vmem:[%s8599_s5 + $0x1174] ss:$8 sps:$4 sm:$0xff]  }
 0x200   : > { %v7996_v0 = vld [vmem:[%s8599_s5 + $0x1064] ss:$8 sps:$4 sm:$0xff]  }
 0x201   : > { %5781 = vmatpush1.bf16.msra.mxu0 %v7903_v36  ;;  %v7989_v36 = vld [vmem:[%s8599_s5 + $0x1074] ss:$8 sps:$4 sm:$0xff]   ;;  %v9253_v60 = vrot.slane %v1158_v56, %v8662_v50  ;;  %v8056_v56 = vld [vmem:[%s8599_s5 + $0x10c4] ss:$8 sps:$4 sm:$0xff]  }
 0x202   : > { %5822 = vmatpush1.bf16.msra.mxu1 %v7906_v59  ;;  %5782 = vmatprep.subr.bf16.mxu0 %v7911_v38  ;;  %v9250_v59 = vrot.slane %v220_v49, %v8662_v50  ;;  %v7987_v38 = vld [vmem:[%s8599_s5 + $0x1070] ss:$8 sps:$4 sm:$0xff]   ;;  %v8045_v49 = vld [vmem:[%s8599_s5 + $0x11e0] ss:$8 sps:$4 sm:$0xff]  }
 0x203   : > { %5823 = vmatprep.subr.bf16.mxu1 %v7914_v63  ;;  %v7991_v63 = vld [vmem:[%s8599_s5 + $0x1170] ss:$8 sps:$4 sm:$0xff]  }
 0x205   : > { %5783 = vmatpush1.bf16.msra.mxu0 %v7909_v1  ;;  %v7999_v1 = vld [vmem:[%s8599_s5 + $0x1164] ss:$8 sps:$4 sm:$0xff]  }
 0x206   : > { %5824 = vmatpush1.bf16.msra.mxu1 %v7912_v2  ;;  %5784 = vmatprep.subr.bf16.mxu0 %v7917_v3  ;;  %v1173_v2 = vcombine.high %v9250_v59, %v9250_v59  ;;  %v1174_v3 = vcombine.high %v9253_v60, %v9253_v60 }
 0x207   : > { %5825 = vmatprep.subr.bf16.mxu1 %v7920_v4 }
 0x209   : > { %5785 = vmatpush1.bf16.msra.mxu0 %v7915_v5 }
 0x20a   : > { %5826 = vmatpush1.bf16.msra.mxu1 %v7918_v6  ;;  %5786 = vmatprep.subr.bf16.mxu0 %v7923_v7  ;;  %v7994_v7 = vld [vmem:[%s8599_s5 + $0x1060] ss:$8 sps:$4 sm:$0xff]  }
 0x20b   : > { %5827 = vmatprep.subr.bf16.mxu1 %v7926_v8  ;;  %v7997_v8 = vld [vmem:[%s8599_s5 + $0x1160] ss:$8 sps:$4 sm:$0xff]  }
 0x20d   : > { %5787 = vmatpush1.bf16.msra.mxu0 %v7921_v9 }
 0x20e   : > { %5828 = vmatpush1.bf16.msra.mxu1 %v7924_v10  ;;  %5788 = vmatprep.subr.bf16.mxu0 %v7929_v11  ;;  %v8002_v11 = vld [vmem:[%s8599_s5 + $0x1054] ss:$8 sps:$4 sm:$0xff]  }
 0x20f   : > { %5829 = vmatprep.subr.bf16.mxu1 %v7932_v12  ;;  %v8005_v12 = vld [vmem:[%s8599_s5 + $0x1154] ss:$8 sps:$4 sm:$0xff]  }
 0x211   : > { %5789 = vmatpush1.bf16.msra.mxu0 %v7927_v42 }
 0x212   : > { %5830 = vmatpush1.bf16.msra.mxu1 %v7930_v43  ;;  %5790 = vmatprep.subr.bf16.mxu0 %v7935_v52  ;;  %v8000_v52 = vld [vmem:[%s8599_s5 + $0x1050] ss:$8 sps:$4 sm:$0xff]  }
 0x213   : > { %5831 = vmatprep.subr.bf16.mxu1 %v7938_v14  ;;  %v8003_v14 = vld [vmem:[%s8599_s5 + $0x1150] ss:$8 sps:$4 sm:$0xff]  }
 0x215   : > { %5791 = vmatpush1.bf16.msra.mxu0 %v7933_v16 }
 0x216   : > { %5832 = vmatpush1.bf16.msra.mxu1 %v7936_v18  ;;  %5792 = vmatprep.subr.bf16.mxu0 %v7941_v19  ;;  %v8011_v18 = vld [vmem:[%s8599_s5 + $0x1144] ss:$8 sps:$4 sm:$0xff]  }
 0x217   : > { %5833 = vmatprep.subr.bf16.mxu1 %v7944_v20  ;;  %v8006_v20 = vld [vmem:[%s8599_s5 + $0x1040] ss:$8 sps:$4 sm:$0xff]  }
 0x219   : > { %5793 = vmatpush2.bf16.msra.mxu0 %v7939_v21  ;;  %v8009_v21 = vld [vmem:[%s8599_s5 + $0x1140] ss:$8 sps:$4 sm:$0xff]  }
 0x21a   : > { %5834 = vmatpush2.bf16.msra.mxu1 %v7942_v22  ;;  %5794 = vmatprep.subr.bf16.mxu0 %v7947_v23  ;;  %v8014_v22 = vld [vmem:[%s8599_s5 + $0x1034] ss:$8 sps:$4 sm:$0xff]  }
 0x21b   : > { %5835 = vmatprep.subr.bf16.mxu1 %v7950_v24  ;;  %v8017_v23 = vld [vmem:[%s8599_s5 + $0x1134] ss:$8 sps:$4 sm:$0xff]   ;;  %v8012_v24 = vld [vmem:[%s8599_s5 + $0x1030] ss:$8 sps:$4 sm:$0xff]  }
 0x21d   : > { %5795 = vmatpush2.bf16.msra.mxu0 %v7945_v25  ;;  %v8015_v25 = vld [vmem:[%s8599_s5 + $0x1130] ss:$8 sps:$4 sm:$0xff]  }
 0x21e   : > { %5836 = vmatpush2.bf16.msra.mxu1 %v7948_v26  ;;  %5796 = vmatprep.subr.bf16.mxu0 %v7953_v28  ;;  %v8020_v26 = vld [vmem:[%s8599_s5 + $0x1024] ss:$8 sps:$4 sm:$0xff]  }
 0x21f   : > { %5837 = vmatprep.subr.bf16.mxu1 %v7956_v29  ;;  %v8023_v28 = vld [vmem:[%s8599_s5 + $0x1124] ss:$8 sps:$4 sm:$0xff]   ;;  %v8018_v29 = vld [vmem:[%s8599_s5 + $0x1020] ss:$8 sps:$4 sm:$0xff]  }
 0x221   : > { %5797 = vmatpush2.bf16.msra.mxu0 %v7951_v30  ;;  %v8021_v30 = vld [vmem:[%s8599_s5 + $0x1120] ss:$8 sps:$4 sm:$0xff]  }
 0x222   : > { %5838 = vmatpush2.bf16.msra.mxu1 %v7954_v32  ;;  %5798 = vmatprep.subr.bf16.mxu0 %v7959_v35  ;;  %v8026_v32 = vld [vmem:[%s8599_s5 + $0x1014] ss:$8 sps:$4 sm:$0xff]  }
 0x223   : > { %5839 = vmatprep.subr.bf16.mxu1 %v7962_v61  ;;  %v8029_v35 = vld [vmem:[%s8599_s5 + $0x1114] ss:$8 sps:$4 sm:$0xff]   ;;  %v8024_v61 = vld [vmem:[%s8599_s5 + $0x1010] ss:$8 sps:$4 sm:$0xff]  }
 0x225   : > { %5799 = vmatpush2.bf16.msra.mxu0 %v7957_v62  ;;  %v8027_v62 = vld [vmem:[%s8599_s5 + $0x1110] ss:$8 sps:$4 sm:$0xff]  }
 0x226   : > { %5840 = vmatpush2.bf16.msra.mxu1 %v7960_v13  ;;  %5800 = vmatprep.subr.bf16.mxu0 %v7965_v37  ;;  %v8032_v13 = vld [vmem:[%s8599_s5 + $0x1004] ss:$8 sps:$4 sm:$0xff]  }
 0x227   : > { %5841 = vmatprep.subr.bf16.mxu1 %v7968_v39  ;;  %v8035_v37 = vld [vmem:[%s8599_s5 + $0x1104] ss:$8 sps:$4 sm:$0xff]   ;;  %v8030_v39 = vld [vmem:[%s8599_s5 + $0x1000] ss:$8 sps:$4 sm:$0xff]  }
 0x229   : > { %5801 = vmatpush2.bf16.msra.mxu0 %v7963_v41  ;;  %v8033_v41 = vld [vmem:[%s8599_s5 + $0x1100] ss:$8 sps:$4 sm:$0xff]  }
 0x22a   : > { %5842 = vmatpush2.bf16.msra.mxu1 %v7966_v44  ;;  %5802 = vmatprep.subr.bf16.mxu0 %v7971_v45  ;;  %v8038_v44 = vld [vmem:[%s8599_s5 + $0x10f4] ss:$8 sps:$4 sm:$0xff]  }
 0x22b   : > { %5843 = vmatprep.subr.bf16.mxu1 %v7974_v27  ;;  %v8041_v45 = vld [vmem:[%s8599_s5 + $0x11f4] ss:$8 sps:$4 sm:$0xff]   ;;  %v8036_v27 = vld [vmem:[%s8599_s5 + $0x10f0] ss:$8 sps:$4 sm:$0xff]  }
 0x22d   : > { %5803 = vmatpush2.bf16.msra.mxu0 %v7969_v31  ;;  %v8039_v31 = vld [vmem:[%s8599_s5 + $0x11f0] ss:$8 sps:$4 sm:$0xff]  }
 0x22e   : > { %5844 = vmatpush2.bf16.msra.mxu1 %v7972_v46  ;;  %5804 = vmatprep.subr.bf16.mxu0 %v7977_v47  ;;  %v8044_v46 = vld [vmem:[%s8599_s5 + $0x10e4] ss:$8 sps:$4 sm:$0xff]  }
 0x22f   : > { %5845 = vmatprep.subr.bf16.mxu1 %v7980_v48  ;;  %v8047_v47 = vld [vmem:[%s8599_s5 + $0x11e4] ss:$8 sps:$4 sm:$0xff]   ;;  %v8042_v48 = vld [vmem:[%s8599_s5 + $0x10e0] ss:$8 sps:$4 sm:$0xff]  }
 0x231   : > { %5805 = vmatpush2.bf16.msra.mxu0 %v7975_v51  ;;  %v8050_v51 = vld [vmem:[%s8599_s5 + $0x10d4] ss:$8 sps:$4 sm:$0xff]  }
 0x232   : > { %5846 = vmatpush2.bf16.msra.mxu1 %v7978_v53  ;;  %5806 = vmatprep.subr.bf16.mxu0 %v7983_v54  ;;  %v8053_v53 = vld [vmem:[%s8599_s5 + $0x11d4] ss:$8 sps:$4 sm:$0xff]   ;;  %v8048_v54 = vld [vmem:[%s8599_s5 + $0x10d0] ss:$8 sps:$4 sm:$0xff]  }
 0x233   : > { %5847 = vmatprep.subr.bf16.mxu1 %v7986_v55  ;;  %v8051_v55 = vld [vmem:[%s8599_s5 + $0x11d0] ss:$8 sps:$4 sm:$0xff]  }
 0x235   : > { %5807 = vmatpush2.bf16.msra.mxu0 %v7981_v17  ;;  %v8059_v17 = vld [vmem:[%s8599_s5 + $0x11c4] ss:$8 sps:$4 sm:$0xff]  }
 0x236   : > { %5848 = vmatpush2.bf16.msra.mxu1 %v7984_v33  ;;  %5858 = vmatprep.subr.bf16.mxu0 %v7989_v36  ;;  %v8054_v33 = vld [vmem:[%s8599_s5 + $0x10c0] ss:$8 sps:$4 sm:$0xff]  }
 0x237   : > { %5899 = vmatprep.subr.bf16.mxu1 %v7993_v34  ;;  %v8057_v36 = vld [vmem:[%s8599_s5 + $0x11c0] ss:$8 sps:$4 sm:$0xff]   ;;  %v8062_v34 = vld [vmem:[%s8599_s5 + $0x10b4] ss:$8 sps:$4 sm:$0xff]  }
 0x238   : > { %v5564_v4 = vpop.f32.mrf.mxu0  ;;  %5809 = vmatmul.mubr.bf16.vlgmr.msra.gmra.mxu0 %v9168_v40 }
 0x239   : > { %v5605_v5 = vpop.f32.mrf.mxu1  ;;  %5850 = vmatmul.mubr.bf16.vlgmr.msra.gmra.mxu1 %v9171_v15  ;;  %v5565_v6 = vadd.f32 %v5564_v4, %v9188_v57  ;;  %5859 = vmatpush1.bf16.msra.mxu0 %v7987_v38  ;;  %v8065_v38 = vld [vmem:[%s8599_s5 + $0x11b4] ss:$8 sps:$4 sm:$0xff]   ;;  %v8069_v4 = vld [vmem:[%s8599_s5 + $0x11a0] ss:$8 sps:$4 sm:$0xff]  }
 0x23a   : > { %5900 = vmatpush1.bf16.msra.mxu1 %v7991_v63  ;;  %v5566_v9 = vpop.f32.mrf.mxu0  ;;  %5860 = vmatprep.subr.bf16.mxu0 %v7996_v0  ;;  %v8060_v63 = vld [vmem:[%s8599_s5 + $0x10b0] ss:$8 sps:$4 sm:$0xff]  }
 0x23b   : > { %v5607_v10 = vpop.f32.mrf.mxu1  ;;  %5901 = vmatprep.subr.bf16.mxu1 %v7999_v1  ;;  %v5567_v40 = vadd.f32 %v5566_v9, %v9191_v58  ;;  %v9271_v42 = vadd.f32 %v5605_v5, %v5565_v6  ;;  %5890 = vmatprep.mubr.bf16.mxu0 %v1173_v2  ;;  %v8008_v58 = vld [vmem:[%s8599_s5 + $0x1044] ss:$8 sps:$4 sm:$0xff]   ;;  %v8063_v0 = vld [vmem:[%s8599_s5 + $0x11b0] ss:$8 sps:$4 sm:$0xff]   ;;  %v8074_v5 = vld [vmem:[%s8599_s5 + $0x1094] ss:$8 sps:$4 sm:$0xff]  }
 0x23c   : > { %5931 = vmatprep.mubr.bf16.mxu1 %v1174_v3  ;;  %v5568_v15 = vpop.f32.mrf.mxu0  ;;  %v8068_v1 = vld [vmem:[%s8599_s5 + $0x10a4] ss:$8 sps:$4 sm:$0xff]   ;;  %v8066_v3 = vld [vmem:[%s8599_s5 + $0x10a0] ss:$8 sps:$4 sm:$0xff]   ;;  %v8077_v6 = vld [vmem:[%s8599_s5 + $0x1194] ss:$8 sps:$4 sm:$0xff]  }
 0x23d   : > { %v5609_v57 = vpop.f32.mrf.mxu1  ;;  %v9273_v43 = vadd.f32 %v5607_v10, %v5567_v40  ;;  %5861 = vmatpush1.bf16.msra.mxu0 %v7994_v7  ;;  %v8071_v2 = vld [vmem:[%s8599_s5 + $0x11a4] ss:$8 sps:$4 sm:$0xff]   ;;  %v8075_v9 = vld [vmem:[%s8599_s5 + $0x1190] ss:$8 sps:$4 sm:$0xff]   ;;  %v8078_v40 = vld [vmem:[%s8599_s5 + $0x1080] ss:$8 sps:$4 sm:$0xff]  }
 0x23e   : > { %5902 = vmatpush1.bf16.msra.mxu1 %v7997_v8  ;;  %v5569_v16 = vpop.f32.mrf.mxu0  ;;  %5862 = vmatprep.subr.bf16.mxu0 %v8002_v11  ;;  %v221_v7 = vld [vmem:[%s8615_s22 + $0x48] sm:$0xff]  ;;  %v8072_v8 = vld [vmem:[%s8599_s5 + $0x1090] ss:$8 sps:$4 sm:$0xff]   ;;  %v8086_v57 = vld [vmem:[%s8599_s5 + $0x1274] ss:$8 sps:$4 sm:$0xff]  }
 0x23f   : > { %5903 = vmatprep.subr.bf16.mxu1 %v8005_v12  ;;  %v5610_v19 = vpop.f32.mrf.mxu1  ;;  %v8080_v10 = vld [vmem:[%s8599_s5 + $0x1084] ss:$8 sps:$4 sm:$0xff]   ;;  %v1175_v12 = vcombine.high %v221_v7, %v221_v7  ;;  %v8081_v15 = vld [vmem:[%s8599_s5 + $0x1180] ss:$8 sps:$4 sm:$0xff]  }
 0x240   : > { %v8083_v11 = vld [vmem:[%s8599_s5 + $0x1184] ss:$8 sps:$4 sm:$0xff]  }
 0x241   : > { %5863 = vmatpush1.bf16.msra.mxu0 %v8000_v52  ;;  %v8090_v52 = vld [vmem:[%s8599_s5 + $0x1374] ss:$8 sps:$4 sm:$0xff]   ;;  %v9336_v16 = vrot.slane %v1175_v12, %v8662_v50  ;;  %v8093_v19 = vld [vmem:[%s8599_s5 + $0x1264] ss:$8 sps:$4 sm:$0xff]  }
 0x242   : > { %5904 = vmatpush1.bf16.msra.mxu1 %v8003_v14  ;;  %5864 = vmatprep.subr.bf16.mxu0 %v8008_v58  ;;  %v9333_v14 = vrot.slane %v221_v7, %v8662_v50  ;;  %v8084_v58 = vld [vmem:[%s8599_s5 + $0x1270] ss:$8 sps:$4 sm:$0xff]   ;;  %v8142_v7 = vld [vmem:[%s8599_s5 + $0x13e0] ss:$8 sps:$4 sm:$0xff]   ;;  %v8153_v12 = vld [vmem:[%s8599_s5 + $0x12c4] ss:$8 sps:$4 sm:$0xff]  }
 0x243   : > { %5905 = vmatprep.subr.bf16.mxu1 %v8011_v18  ;;  %v8088_v18 = vld [vmem:[%s8599_s5 + $0x1370] ss:$8 sps:$4 sm:$0xff]  }
 0x245   : > { %5865 = vmatpush1.bf16.msra.mxu0 %v8006_v20  ;;  %v8096_v20 = vld [vmem:[%s8599_s5 + $0x1364] ss:$8 sps:$4 sm:$0xff]  }
 0x246   : > { %5906 = vmatpush1.bf16.msra.mxu1 %v8009_v21  ;;  %5866 = vmatprep.subr.bf16.mxu0 %v8014_v22  ;;  %v1190_v21 = vcombine.high %v9333_v14, %v9333_v14  ;;  %v1191_v22 = vcombine.high %v9336_v16, %v9336_v16 }
 0x247   : > { %5907 = vmatprep.subr.bf16.mxu1 %v8017_v23 }
 0x249   : > { %5867 = vmatpush1.bf16.msra.mxu0 %v8012_v24 }
 0x24a   : > { %5908 = vmatpush1.bf16.msra.mxu1 %v8015_v25  ;;  %5868 = vmatprep.subr.bf16.mxu0 %v8020_v26  ;;  %v8091_v26 = vld [vmem:[%s8599_s5 + $0x1260] ss:$8 sps:$4 sm:$0xff]  }
 0x24b   : > { %5909 = vmatprep.subr.bf16.mxu1 %v8023_v28  ;;  %v8094_v28 = vld [vmem:[%s8599_s5 + $0x1360] ss:$8 sps:$4 sm:$0xff]  }
 0x24d   : > { %5869 = vmatpush1.bf16.msra.mxu0 %v8018_v29 }
 0x24e   : > { %5910 = vmatpush1.bf16.msra.mxu1 %v8021_v30  ;;  %5870 = vmatprep.subr.bf16.mxu0 %v8026_v32  ;;  %v8099_v32 = vld [vmem:[%s8599_s5 + $0x1254] ss:$8 sps:$4 sm:$0xff]  }
 0x24f   : > { %5911 = vmatprep.subr.bf16.mxu1 %v8029_v35  ;;  %v8102_v35 = vld [vmem:[%s8599_s5 + $0x1354] ss:$8 sps:$4 sm:$0xff]  }
 0x251   : > { %5871 = vmatpush1.bf16.msra.mxu0 %v8024_v61 }
 0x252   : > { %5912 = vmatpush1.bf16.msra.mxu1 %v8027_v62  ;;  %5872 = vmatprep.subr.bf16.mxu0 %v8032_v13  ;;  %v8097_v13 = vld [vmem:[%s8599_s5 + $0x1250] ss:$8 sps:$4 sm:$0xff]  }
 0x253   : > { %5913 = vmatprep.subr.bf16.mxu1 %v8035_v37  ;;  %v8100_v37 = vld [vmem:[%s8599_s5 + $0x1350] ss:$8 sps:$4 sm:$0xff]  }
 0x255   : > { %5873 = vmatpush1.bf16.msra.mxu0 %v8030_v39 }
 0x256   : > { %5914 = vmatpush1.bf16.msra.mxu1 %v8033_v41  ;;  %5874 = vmatprep.subr.bf16.mxu0 %v8038_v44  ;;  %v8108_v41 = vld [vmem:[%s8599_s5 + $0x1344] ss:$8 sps:$4 sm:$0xff]  }
 0x257   : > { %5915 = vmatprep.subr.bf16.mxu1 %v8041_v45  ;;  %v8103_v45 = vld [vmem:[%s8599_s5 + $0x1240] ss:$8 sps:$4 sm:$0xff]  }
 0x259   : > { %5875 = vmatpush2.bf16.msra.mxu0 %v8036_v27  ;;  %v8106_v27 = vld [vmem:[%s8599_s5 + $0x1340] ss:$8 sps:$4 sm:$0xff]  }
 0x25a   : > { %5916 = vmatpush2.bf16.msra.mxu1 %v8039_v31  ;;  %5876 = vmatprep.subr.bf16.mxu0 %v8044_v46  ;;  %v8111_v31 = vld [vmem:[%s8599_s5 + $0x1234] ss:$8 sps:$4 sm:$0xff]  }
 0x25b   : > { %5917 = vmatprep.subr.bf16.mxu1 %v8047_v47  ;;  %v8114_v46 = vld [vmem:[%s8599_s5 + $0x1334] ss:$8 sps:$4 sm:$0xff]   ;;  %v8109_v47 = vld [vmem:[%s8599_s5 + $0x1230] ss:$8 sps:$4 sm:$0xff]  }
 0x25d   : > { %5877 = vmatpush2.bf16.msra.mxu0 %v8042_v48  ;;  %v8112_v48 = vld [vmem:[%s8599_s5 + $0x1330] ss:$8 sps:$4 sm:$0xff]  }
 0x25e   : > { %5918 = vmatpush2.bf16.msra.mxu1 %v8045_v49  ;;  %5878 = vmatprep.subr.bf16.mxu0 %v8050_v51  ;;  %v8117_v49 = vld [vmem:[%s8599_s5 + $0x1224] ss:$8 sps:$4 sm:$0xff]  }
 0x25f   : > { %5919 = vmatprep.subr.bf16.mxu1 %v8053_v53  ;;  %v8120_v51 = vld [vmem:[%s8599_s5 + $0x1324] ss:$8 sps:$4 sm:$0xff]   ;;  %v8115_v53 = vld [vmem:[%s8599_s5 + $0x1220] ss:$8 sps:$4 sm:$0xff]  }
 0x261   : > { %5879 = vmatpush2.bf16.msra.mxu0 %v8048_v54  ;;  %v8118_v54 = vld [vmem:[%s8599_s5 + $0x1320] ss:$8 sps:$4 sm:$0xff]  }
 0x262   : > { %5920 = vmatpush2.bf16.msra.mxu1 %v8051_v55  ;;  %5880 = vmatprep.subr.bf16.mxu0 %v8056_v56  ;;  %v8123_v55 = vld [vmem:[%s8599_s5 + $0x1214] ss:$8 sps:$4 sm:$0xff]  }
 0x263   : > { %5921 = vmatprep.subr.bf16.mxu1 %v8059_v17  ;;  %v8126_v56 = vld [vmem:[%s8599_s5 + $0x1314] ss:$8 sps:$4 sm:$0xff]   ;;  %v8121_v17 = vld [vmem:[%s8599_s5 + $0x1210] ss:$8 sps:$4 sm:$0xff]  }
 0x265   : > { %5881 = vmatpush2.bf16.msra.mxu0 %v8054_v33  ;;  %v8124_v33 = vld [vmem:[%s8599_s5 + $0x1310] ss:$8 sps:$4 sm:$0xff]  }
 0x266   : > { %5922 = vmatpush2.bf16.msra.mxu1 %v8057_v36  ;;  %5882 = vmatprep.subr.bf16.mxu0 %v8062_v34  ;;  %v8129_v36 = vld [vmem:[%s8599_s5 + $0x1204] ss:$8 sps:$4 sm:$0xff]  }
 0x267   : > { %5923 = vmatprep.subr.bf16.mxu1 %v8065_v38  ;;  %v8132_v34 = vld [vmem:[%s8599_s5 + $0x1304] ss:$8 sps:$4 sm:$0xff]   ;;  %v8127_v38 = vld [vmem:[%s8599_s5 + $0x1200] ss:$8 sps:$4 sm:$0xff]  }
 0x269   : > { %5883 = vmatpush2.bf16.msra.mxu0 %v8060_v63  ;;  %v8130_v63 = vld [vmem:[%s8599_s5 + $0x1300] ss:$8 sps:$4 sm:$0xff]  }
 0x26a   : > { %5924 = vmatpush2.bf16.msra.mxu1 %v8063_v0  ;;  %5884 = vmatprep.subr.bf16.mxu0 %v8068_v1  ;;  %v8135_v0 = vld [vmem:[%s8599_s5 + $0x12f4] ss:$8 sps:$4 sm:$0xff]  }
 0x26b   : > { %5925 = vmatprep.subr.bf16.mxu1 %v8071_v2  ;;  %v8138_v1 = vld [vmem:[%s8599_s5 + $0x13f4] ss:$8 sps:$4 sm:$0xff]   ;;  %v8133_v2 = vld [vmem:[%s8599_s5 + $0x12f0] ss:$8 sps:$4 sm:$0xff]  }
 0x26d   : > { %5885 = vmatpush2.bf16.msra.mxu0 %v8066_v3  ;;  %v8136_v3 = vld [vmem:[%s8599_s5 + $0x13f0] ss:$8 sps:$4 sm:$0xff]  }
 0x26e   : > { %5926 = vmatpush2.bf16.msra.mxu1 %v8069_v4  ;;  %5886 = vmatprep.subr.bf16.mxu0 %v8074_v5  ;;  %v8141_v4 = vld [vmem:[%s8599_s5 + $0x12e4] ss:$8 sps:$4 sm:$0xff]  }
 0x26f   : > { %5927 = vmatprep.subr.bf16.mxu1 %v8077_v6  ;;  %v8144_v5 = vld [vmem:[%s8599_s5 + $0x13e4] ss:$8 sps:$4 sm:$0xff]   ;;  %v8139_v6 = vld [vmem:[%s8599_s5 + $0x12e0] ss:$8 sps:$4 sm:$0xff]  }
 0x271   : > { %5887 = vmatpush2.bf16.msra.mxu0 %v8072_v8  ;;  %v8147_v8 = vld [vmem:[%s8599_s5 + $0x12d4] ss:$8 sps:$4 sm:$0xff]  }
 0x272   : > { %5928 = vmatpush2.bf16.msra.mxu1 %v8075_v9  ;;  %5888 = vmatprep.subr.bf16.mxu0 %v8080_v10  ;;  %v8150_v9 = vld [vmem:[%s8599_s5 + $0x13d4] ss:$8 sps:$4 sm:$0xff]   ;;  %v8145_v10 = vld [vmem:[%s8599_s5 + $0x12d0] ss:$8 sps:$4 sm:$0xff]  }
 0x273   : > { %5929 = vmatprep.subr.bf16.mxu1 %v8083_v11  ;;  %v8148_v11 = vld [vmem:[%s8599_s5 + $0x13d0] ss:$8 sps:$4 sm:$0xff]  }
 0x275   : > { %5889 = vmatpush2.bf16.msra.mxu0 %v8078_v40  ;;  %v8156_v40 = vld [vmem:[%s8599_s5 + $0x13c4] ss:$8 sps:$4 sm:$0xff]  }
 0x276   : > { %5930 = vmatpush2.bf16.msra.mxu1 %v8081_v15  ;;  %5940 = vmatprep.subr.bf16.mxu0 %v8086_v57  ;;  %v8151_v15 = vld [vmem:[%s8599_s5 + $0x12c0] ss:$8 sps:$4 sm:$0xff]  }
 0x277   : > { %5981 = vmatprep.subr.bf16.mxu1 %v8090_v52  ;;  %v8154_v57 = vld [vmem:[%s8599_s5 + $0x13c0] ss:$8 sps:$4 sm:$0xff]   ;;  %v8159_v52 = vld [vmem:[%s8599_s5 + $0x12b4] ss:$8 sps:$4 sm:$0xff]  }
 0x278   : > { %v5646_v23 = vpop.f32.mrf.mxu0  ;;  %5891 = vmatmul.mubr.bf16.vlgmr.msra.gmra.mxu0 %v9250_v59 }
 0x279   : > { %v5687_v24 = vpop.f32.mrf.mxu1  ;;  %5932 = vmatmul.mubr.bf16.vlgmr.msra.gmra.mxu1 %v9253_v60  ;;  %v5647_v25 = vadd.f32 %v5646_v23, %v9271_v42  ;;  %5941 = vmatpush1.bf16.msra.mxu0 %v8084_v58  ;;  %v8162_v58 = vld [vmem:[%s8599_s5 + $0x13b4] ss:$8 sps:$4 sm:$0xff]   ;;  %v8166_v23 = vld [vmem:[%s8599_s5 + $0x13a0] ss:$8 sps:$4 sm:$0xff]  }
 0x27a   : > { %5982 = vmatpush1.bf16.msra.mxu1 %v8088_v18  ;;  %v5648_v29 = vpop.f32.mrf.mxu0  ;;  %5942 = vmatprep.subr.bf16.mxu0 %v8093_v19  ;;  %v8157_v18 = vld [vmem:[%s8599_s5 + $0x12b0] ss:$8 sps:$4 sm:$0xff]  }
 0x27b   : > { %v5689_v30 = vpop.f32.mrf.mxu1  ;;  %5983 = vmatprep.subr.bf16.mxu1 %v8096_v20  ;;  %v5649_v59 = vadd.f32 %v5648_v29, %v9273_v43  ;;  %v9354_v61 = vadd.f32 %v5687_v24, %v5647_v25  ;;  %5972 = vmatprep.mubr.bf16.mxu0 %v1190_v21  ;;  %v8105_v43 = vld [vmem:[%s8599_s5 + $0x1244] ss:$8 sps:$4 sm:$0xff]   ;;  %v8160_v19 = vld [vmem:[%s8599_s5 + $0x13b0] ss:$8 sps:$4 sm:$0xff]   ;;  %v8171_v24 = vld [vmem:[%s8599_s5 + $0x1294] ss:$8 sps:$4 sm:$0xff]  }
 0x27c   : > { %6013 = vmatprep.mubr.bf16.mxu1 %v1191_v22  ;;  %v5650_v60 = vpop.f32.mrf.mxu0  ;;  %v8165_v20 = vld [vmem:[%s8599_s5 + $0x12a4] ss:$8 sps:$4 sm:$0xff]   ;;  %v8163_v22 = vld [vmem:[%s8599_s5 + $0x12a0] ss:$8 sps:$4 sm:$0xff]   ;;  %v8174_v25 = vld [vmem:[%s8599_s5 + $0x1394] ss:$8 sps:$4 sm:$0xff]  }
 0x27d   : > { %v5691_v42 = vpop.f32.mrf.mxu1  ;;  %v9356_v62 = vadd.f32 %v5689_v30, %v5649_v59  ;;  %5943 = vmatpush1.bf16.msra.mxu0 %v8091_v26  ;;  %v8168_v21 = vld [vmem:[%s8599_s5 + $0x13a4] ss:$8 sps:$4 sm:$0xff]   ;;  %v8172_v29 = vld [vmem:[%s8599_s5 + $0x1390] ss:$8 sps:$4 sm:$0xff]   ;;  %v8175_v59 = vld [vmem:[%s8599_s5 + $0x1280] ss:$8 sps:$4 sm:$0xff]  }
 0x27e   : > { %5984 = vmatpush1.bf16.msra.mxu1 %v8094_v28  ;;  %v5651_v39 = vpop.f32.mrf.mxu0  ;;  %5944 = vmatprep.subr.bf16.mxu0 %v8099_v32  ;;  %v222_v26 = vld [vmem:[%s8615_s22 + $0x50] sm:$0xff]  ;;  %v8169_v28 = vld [vmem:[%s8599_s5 + $0x1290] ss:$8 sps:$4 sm:$0xff]   ;;  %v8183_v42 = vld [vmem:[%s8599_s5 + $0x1474] ss:$8 sps:$4 sm:$0xff]  }
 0x27f   : > { %5985 = vmatprep.subr.bf16.mxu1 %v8102_v35  ;;  %v5692_v44 = vpop.f32.mrf.mxu1  ;;  %v8177_v30 = vld [vmem:[%s8599_s5 + $0x1284] ss:$8 sps:$4 sm:$0xff]   ;;  %v1192_v35 = vcombine.high %v222_v26, %v222_v26  ;;  %v8178_v60 = vld [vmem:[%s8599_s5 + $0x1380] ss:$8 sps:$4 sm:$0xff]  }
 0x280   : > { %v8180_v32 = vld [vmem:[%s8599_s5 + $0x1384] ss:$8 sps:$4 sm:$0xff]  }
 0x281   : > { %5945 = vmatpush1.bf16.msra.mxu0 %v8097_v13  ;;  %v8187_v13 = vld [vmem:[%s8599_s5 + $0x1574] ss:$8 sps:$4 sm:$0xff]   ;;  %v9419_v39 = vrot.slane %v1192_v35, %v8662_v50  ;;  %v8190_v44 = vld [vmem:[%s8599_s5 + $0x1464] ss:$8 sps:$4 sm:$0xff]  }
 0x282   : > { %5986 = vmatpush1.bf16.msra.mxu1 %v8100_v37  ;;  %5946 = vmatprep.subr.bf16.mxu0 %v8105_v43  ;;  %v9416_v37 = vrot.slane %v222_v26, %v8662_v50  ;;  %v8181_v43 = vld [vmem:[%s8599_s5 + $0x1470] ss:$8 sps:$4 sm:$0xff]   ;;  %v8239_v26 = vld [vmem:[%s8599_s5 + $0x15e0] ss:$8 sps:$4 sm:$0xff]   ;;  %v8250_v35 = vld [vmem:[%s8599_s5 + $0x14c4] ss:$8 sps:$4 sm:$0xff]  }
 0x283   : > { %5987 = vmatprep.subr.bf16.mxu1 %v8108_v41  ;;  %v8185_v41 = vld [vmem:[%s8599_s5 + $0x1570] ss:$8 sps:$4 sm:$0xff]  }
 0x285   : > { %5947 = vmatpush1.bf16.msra.mxu0 %v8103_v45  ;;  %v8193_v45 = vld [vmem:[%s8599_s5 + $0x1564] ss:$8 sps:$4 sm:$0xff]  }
 0x286   : > { %5988 = vmatpush1.bf16.msra.mxu1 %v8106_v27  ;;  %5948 = vmatprep.subr.bf16.mxu0 %v8111_v31  ;;  %v1207_v27 = vcombine.high %v9416_v37, %v9416_v37  ;;  %v1208_v31 = vcombine.high %v9419_v39, %v9419_v39 }
 0x287   : > { %5989 = vmatprep.subr.bf16.mxu1 %v8114_v46 }
 0x289   : > { %5949 = vmatpush1.bf16.msra.mxu0 %v8109_v47 }
 0x28a   : > { %5990 = vmatpush1.bf16.msra.mxu1 %v8112_v48  ;;  %5950 = vmatprep.subr.bf16.mxu0 %v8117_v49  ;;  %v8188_v49 = vld [vmem:[%s8599_s5 + $0x1460] ss:$8 sps:$4 sm:$0xff]  }
 0x28b   : > { %5991 = vmatprep.subr.bf16.mxu1 %v8120_v51  ;;  %v8191_v51 = vld [vmem:[%s8599_s5 + $0x1560] ss:$8 sps:$4 sm:$0xff]  }
 0x28d   : > { %5951 = vmatpush1.bf16.msra.mxu0 %v8115_v53 }
 0x28e   : > { %5992 = vmatpush1.bf16.msra.mxu1 %v8118_v54  ;;  %5952 = vmatprep.subr.bf16.mxu0 %v8123_v55  ;;  %v8196_v55 = vld [vmem:[%s8599_s5 + $0x1454] ss:$8 sps:$4 sm:$0xff]  }
 0x28f   : > { %5993 = vmatprep.subr.bf16.mxu1 %v8126_v56  ;;  %v8199_v56 = vld [vmem:[%s8599_s5 + $0x1554] ss:$8 sps:$4 sm:$0xff]  }
 0x291   : > { %5953 = vmatpush1.bf16.msra.mxu0 %v8121_v17 }
 0x292   : > { %5994 = vmatpush1.bf16.msra.mxu1 %v8124_v33  ;;  %5954 = vmatprep.subr.bf16.mxu0 %v8129_v36  ;;  %v8194_v36 = vld [vmem:[%s8599_s5 + $0x1450] ss:$8 sps:$4 sm:$0xff]  }
 0x293   : > { %5995 = vmatprep.subr.bf16.mxu1 %v8132_v34  ;;  %v8197_v34 = vld [vmem:[%s8599_s5 + $0x1550] ss:$8 sps:$4 sm:$0xff]  }
 0x295   : > { %5955 = vmatpush1.bf16.msra.mxu0 %v8127_v38 }
 0x296   : > { %5996 = vmatpush1.bf16.msra.mxu1 %v8130_v63  ;;  %5956 = vmatprep.subr.bf16.mxu0 %v8135_v0  ;;  %v8205_v63 = vld [vmem:[%s8599_s5 + $0x1544] ss:$8 sps:$4 sm:$0xff]  }
 0x297   : > { %5997 = vmatprep.subr.bf16.mxu1 %v8138_v1  ;;  %v8200_v1 = vld [vmem:[%s8599_s5 + $0x1440] ss:$8 sps:$4 sm:$0xff]  }
 0x299   : > { %5957 = vmatpush2.bf16.msra.mxu0 %v8133_v2  ;;  %v8203_v2 = vld [vmem:[%s8599_s5 + $0x1540] ss:$8 sps:$4 sm:$0xff]  }
 0x29a   : > { %5998 = vmatpush2.bf16.msra.mxu1 %v8136_v3  ;;  %5958 = vmatprep.subr.bf16.mxu0 %v8141_v4  ;;  %v8208_v3 = vld [vmem:[%s8599_s5 + $0x1434] ss:$8 sps:$4 sm:$0xff]  }
 0x29b   : > { %5999 = vmatprep.subr.bf16.mxu1 %v8144_v5  ;;  %v8211_v4 = vld [vmem:[%s8599_s5 + $0x1534] ss:$8 sps:$4 sm:$0xff]   ;;  %v8206_v5 = vld [vmem:[%s8599_s5 + $0x1430] ss:$8 sps:$4 sm:$0xff]  }
 0x29d   : > { %5959 = vmatpush2.bf16.msra.mxu0 %v8139_v6  ;;  %v8209_v6 = vld [vmem:[%s8599_s5 + $0x1530] ss:$8 sps:$4 sm:$0xff]  }
 0x29e   : > { %6000 = vmatpush2.bf16.msra.mxu1 %v8142_v7  ;;  %5960 = vmatprep.subr.bf16.mxu0 %v8147_v8  ;;  %v8214_v7 = vld [vmem:[%s8599_s5 + $0x1424] ss:$8 sps:$4 sm:$0xff]  }
 0x29f   : > { %6001 = vmatprep.subr.bf16.mxu1 %v8150_v9  ;;  %v8217_v8 = vld [vmem:[%s8599_s5 + $0x1524] ss:$8 sps:$4 sm:$0xff]   ;;  %v8212_v9 = vld [vmem:[%s8599_s5 + $0x1420] ss:$8 sps:$4 sm:$0xff]  }
 0x2a1   : > { %5961 = vmatpush2.bf16.msra.mxu0 %v8145_v10  ;;  %v8215_v10 = vld [vmem:[%s8599_s5 + $0x1520] ss:$8 sps:$4 sm:$0xff]  }
 0x2a2   : > { %6002 = vmatpush2.bf16.msra.mxu1 %v8148_v11  ;;  %5962 = vmatprep.subr.bf16.mxu0 %v8153_v12  ;;  %v8220_v11 = vld [vmem:[%s8599_s5 + $0x1414] ss:$8 sps:$4 sm:$0xff]  }
 0x2a3   : > { %6003 = vmatprep.subr.bf16.mxu1 %v8156_v40  ;;  %v8223_v12 = vld [vmem:[%s8599_s5 + $0x1514] ss:$8 sps:$4 sm:$0xff]   ;;  %v8218_v40 = vld [vmem:[%s8599_s5 + $0x1410] ss:$8 sps:$4 sm:$0xff]  }
 0x2a5   : > { %5963 = vmatpush2.bf16.msra.mxu0 %v8151_v15  ;;  %v8221_v15 = vld [vmem:[%s8599_s5 + $0x1510] ss:$8 sps:$4 sm:$0xff]  }
 0x2a6   : > { %6004 = vmatpush2.bf16.msra.mxu1 %v8154_v57  ;;  %5964 = vmatprep.subr.bf16.mxu0 %v8159_v52  ;;  %v8226_v57 = vld [vmem:[%s8599_s5 + $0x1404] ss:$8 sps:$4 sm:$0xff]  }
 0x2a7   : > { %6005 = vmatprep.subr.bf16.mxu1 %v8162_v58  ;;  %v8229_v52 = vld [vmem:[%s8599_s5 + $0x1504] ss:$8 sps:$4 sm:$0xff]   ;;  %v8224_v58 = vld [vmem:[%s8599_s5 + $0x1400] ss:$8 sps:$4 sm:$0xff]  }
 0x2a9   : > { %5965 = vmatpush2.bf16.msra.mxu0 %v8157_v18  ;;  %v8227_v18 = vld [vmem:[%s8599_s5 + $0x1500] ss:$8 sps:$4 sm:$0xff]  }
 0x2aa   : > { %6006 = vmatpush2.bf16.msra.mxu1 %v8160_v19  ;;  %5966 = vmatprep.subr.bf16.mxu0 %v8165_v20  ;;  %v8232_v19 = vld [vmem:[%s8599_s5 + $0x14f4] ss:$8 sps:$4 sm:$0xff]  }
 0x2ab   : > { %6007 = vmatprep.subr.bf16.mxu1 %v8168_v21  ;;  %v8235_v20 = vld [vmem:[%s8599_s5 + $0x15f4] ss:$8 sps:$4 sm:$0xff]   ;;  %v8230_v21 = vld [vmem:[%s8599_s5 + $0x14f0] ss:$8 sps:$4 sm:$0xff]  }
 0x2ad   : > { %5967 = vmatpush2.bf16.msra.mxu0 %v8163_v22  ;;  %v8233_v22 = vld [vmem:[%s8599_s5 + $0x15f0] ss:$8 sps:$4 sm:$0xff]  }
 0x2ae   : > { %6008 = vmatpush2.bf16.msra.mxu1 %v8166_v23  ;;  %5968 = vmatprep.subr.bf16.mxu0 %v8171_v24  ;;  %v8238_v23 = vld [vmem:[%s8599_s5 + $0x14e4] ss:$8 sps:$4 sm:$0xff]  }
 0x2af   : > { %6009 = vmatprep.subr.bf16.mxu1 %v8174_v25  ;;  %v8241_v24 = vld [vmem:[%s8599_s5 + $0x15e4] ss:$8 sps:$4 sm:$0xff]   ;;  %v8236_v25 = vld [vmem:[%s8599_s5 + $0x14e0] ss:$8 sps:$4 sm:$0xff]  }
 0x2b1   : > { %5969 = vmatpush2.bf16.msra.mxu0 %v8169_v28  ;;  %v8244_v28 = vld [vmem:[%s8599_s5 + $0x14d4] ss:$8 sps:$4 sm:$0xff]  }
 0x2b2   : > { %6010 = vmatpush2.bf16.msra.mxu1 %v8172_v29  ;;  %5970 = vmatprep.subr.bf16.mxu0 %v8177_v30  ;;  %v8247_v29 = vld [vmem:[%s8599_s5 + $0x15d4] ss:$8 sps:$4 sm:$0xff]   ;;  %v8242_v30 = vld [vmem:[%s8599_s5 + $0x14d0] ss:$8 sps:$4 sm:$0xff]  }
 0x2b3   : > { %6011 = vmatprep.subr.bf16.mxu1 %v8180_v32  ;;  %v8245_v32 = vld [vmem:[%s8599_s5 + $0x15d0] ss:$8 sps:$4 sm:$0xff]  }
 0x2b5   : > { %5971 = vmatpush2.bf16.msra.mxu0 %v8175_v59  ;;  %v8253_v59 = vld [vmem:[%s8599_s5 + $0x15c4] ss:$8 sps:$4 sm:$0xff]  }
 0x2b6   : > { %6012 = vmatpush2.bf16.msra.mxu1 %v8178_v60  ;;  %6022 = vmatprep.subr.bf16.mxu0 %v8183_v42  ;;  %v8248_v60 = vld [vmem:[%s8599_s5 + $0x14c0] ss:$8 sps:$4 sm:$0xff]  }
 0x2b7   : > { %6063 = vmatprep.subr.bf16.mxu1 %v8187_v13  ;;  %v8251_v42 = vld [vmem:[%s8599_s5 + $0x15c0] ss:$8 sps:$4 sm:$0xff]   ;;  %v8256_v13 = vld [vmem:[%s8599_s5 + $0x14b4] ss:$8 sps:$4 sm:$0xff]  }
 0x2b8   : > { %v5728_v46 = vpop.f32.mrf.mxu0  ;;  %5973 = vmatmul.mubr.bf16.vlgmr.msra.gmra.mxu0 %v9333_v14 }
 0x2b9   : > { %v5769_v47 = vpop.f32.mrf.mxu1  ;;  %6014 = vmatmul.mubr.bf16.vlgmr.msra.gmra.mxu1 %v9336_v16  ;;  %v5729_v48 = vadd.f32 %v5728_v46, %v9354_v61  ;;  %6023 = vmatpush1.bf16.msra.mxu0 %v8181_v43  ;;  %v8259_v43 = vld [vmem:[%s8599_s5 + $0x15b4] ss:$8 sps:$4 sm:$0xff]   ;;  %v8263_v46 = vld [vmem:[%s8599_s5 + $0x15a0] ss:$8 sps:$4 sm:$0xff]  }
 0x2ba   : > { %6064 = vmatpush1.bf16.msra.mxu1 %v8185_v41  ;;  %v5730_v53 = vpop.f32.mrf.mxu0  ;;  %6024 = vmatprep.subr.bf16.mxu0 %v8190_v44  ;;  %v8254_v41 = vld [vmem:[%s8599_s5 + $0x14b0] ss:$8 sps:$4 sm:$0xff]  }
 0x2bb   : > { %v5771_v54 = vpop.f32.mrf.mxu1  ;;  %6065 = vmatprep.subr.bf16.mxu1 %v8193_v45  ;;  %v5731_v14 = vadd.f32 %v5730_v53, %v9356_v62  ;;  %v9437_v17 = vadd.f32 %v5769_v47, %v5729_v48  ;;  %6054 = vmatprep.mubr.bf16.mxu0 %v1207_v27  ;;  %v8202_v62 = vld [vmem:[%s8599_s5 + $0x1444] ss:$8 sps:$4 sm:$0xff]   ;;  %v8257_v44 = vld [vmem:[%s8599_s5 + $0x15b0] ss:$8 sps:$4 sm:$0xff]   ;;  %v8268_v47 = vld [vmem:[%s8599_s5 + $0x1494] ss:$8 sps:$4 sm:$0xff]  }
 0x2bc   : > { %6095 = vmatprep.mubr.bf16.mxu1 %v1208_v31  ;;  %v5732_v16 = vpop.f32.mrf.mxu0  ;;  %v8262_v45 = vld [vmem:[%s8599_s5 + $0x14a4] ss:$8 sps:$4 sm:$0xff]   ;;  %v8260_v31 = vld [vmem:[%s8599_s5 + $0x14a0] ss:$8 sps:$4 sm:$0xff]   ;;  %v8271_v48 = vld [vmem:[%s8599_s5 + $0x1594] ss:$8 sps:$4 sm:$0xff]  }
 0x2bd   : > { %v5773_v61 = vpop.f32.mrf.mxu1  ;;  %v9439_v33 = vadd.f32 %v5771_v54, %v5731_v14  ;;  %6025 = vmatpush1.bf16.msra.mxu0 %v8188_v49  ;;  %v8265_v27 = vld [vmem:[%s8599_s5 + $0x15a4] ss:$8 sps:$4 sm:$0xff]   ;;  %v223_v49 = vld [vmem:[%s8615_s22 + $0x58] sm:$0xff]  ;;  %v8272_v14 = vld [vmem:[%s8599_s5 + $0x1480] ss:$8 sps:$4 sm:$0xff]  }
 0x2be   : > { %6066 = vmatpush1.bf16.msra.mxu1 %v8191_v51  ;;  %v5733_v38 = vpop.f32.mrf.mxu0  ;;  %6026 = vmatprep.subr.bf16.mxu0 %v8196_v55  ;;  %v8266_v51 = vld [vmem:[%s8599_s5 + $0x1490] ss:$8 sps:$4 sm:$0xff]   ;;  %v8274_v54 = vld [vmem:[%s8599_s5 + $0x1484] ss:$8 sps:$4 sm:$0xff]   ;;  %v8275_v16 = vld [vmem:[%s8599_s5 + $0x1580] ss:$8 sps:$4 sm:$0xff]  }
 0x2bf   : > { %6067 = vmatprep.subr.bf16.mxu1 %v8199_v56  ;;  %v5774_v0 = vpop.f32.mrf.mxu1  ;;  %v8269_v53 = vld [vmem:[%s8599_s5 + $0x1590] ss:$8 sps:$4 sm:$0xff]   ;;  %v8277_v55 = vld [vmem:[%s8599_s5 + $0x1584] ss:$8 sps:$4 sm:$0xff]   ;;  %v1209_v56 = vcombine.high %v223_v49, %v223_v49  ;;  %v8280_v61 = vld [vmem:[%s8599_s5 + $0x1674] ss:$8 sps:$4 sm:$0xff]  }
 0x2c0   : > { %v8287_v0 = vld [vmem:[%s8599_s5 + $0x1664] ss:$8 sps:$4 sm:$0xff]  }
 0x2c1   : > { %6027 = vmatpush1.bf16.msra.mxu0 %v8194_v36  ;;  %v8284_v36 = vld [vmem:[%s8599_s5 + $0x1774] ss:$8 sps:$4 sm:$0xff]   ;;  %v9502_v38 = vrot.slane %v1209_v56, %v8662_v50  ;;  %v8350_v56 = vld [vmem:[%s8599_s5 + $0x17c4] ss:$8 sps:$4 sm:$0xff]  }
 0x2c2   : > { %6068 = vmatpush1.bf16.msra.mxu1 %v8197_v34  ;;  %6028 = vmatprep.subr.bf16.mxu0 %v8202_v62  ;;  %v9499_v34 = vrot.slane %v223_v49, %v8662_v50  ;;  %v8278_v62 = vld [vmem:[%s8599_s5 + $0x1670] ss:$8 sps:$4 sm:$0xff]   ;;  %v8341_v49 = vld [vmem:[%s8599_s5 + $0x16d4] ss:$8 sps:$4 sm:$0xff]  }
 0x2c3   : > { %6069 = vmatprep.subr.bf16.mxu1 %v8205_v63  ;;  %v8282_v63 = vld [vmem:[%s8599_s5 + $0x1770] ss:$8 sps:$4 sm:$0xff]  }
 0x2c5   : > { %6029 = vmatpush1.bf16.msra.mxu0 %v8200_v1  ;;  %v8290_v1 = vld [vmem:[%s8599_s5 + $0x1764] ss:$8 sps:$4 sm:$0xff]  }
 0x2c6   : > { %6070 = vmatpush1.bf16.msra.mxu1 %v8203_v2  ;;  %6030 = vmatprep.subr.bf16.mxu0 %v8208_v3  ;;  %v1224_v2 = vcombine.high %v9499_v34, %v9499_v34  ;;  %v1225_v3 = vcombine.high %v9502_v38, %v9502_v38 }
 0x2c7   : > { %6071 = vmatprep.subr.bf16.mxu1 %v8211_v4 }
 0x2c9   : > { %6031 = vmatpush1.bf16.msra.mxu0 %v8206_v5 }
 0x2ca   : > { %6072 = vmatpush1.bf16.msra.mxu1 %v8209_v6  ;;  %6032 = vmatprep.subr.bf16.mxu0 %v8214_v7  ;;  %v8285_v6 = vld [vmem:[%s8599_s5 + $0x1660] ss:$8 sps:$4 sm:$0xff]  }
 0x2cb   : > { %6073 = vmatprep.subr.bf16.mxu1 %v8217_v8  ;;  %v8288_v7 = vld [vmem:[%s8599_s5 + $0x1760] ss:$8 sps:$4 sm:$0xff]  }
 0x2cd   : > { %6033 = vmatpush1.bf16.msra.mxu0 %v8212_v9 }
 0x2ce   : > { %6074 = vmatpush1.bf16.msra.mxu1 %v8215_v10  ;;  %6034 = vmatprep.subr.bf16.mxu0 %v8220_v11  ;;  %v8293_v10 = vld [vmem:[%s8599_s5 + $0x1654] ss:$8 sps:$4 sm:$0xff]  }
 0x2cf   : > { %6075 = vmatprep.subr.bf16.mxu1 %v8223_v12  ;;  %v8296_v11 = vld [vmem:[%s8599_s5 + $0x1754] ss:$8 sps:$4 sm:$0xff]  }
 0x2d1   : > { %6035 = vmatpush1.bf16.msra.mxu0 %v8218_v40 }
 0x2d2   : > { %6076 = vmatpush1.bf16.msra.mxu1 %v8221_v15  ;;  %6036 = vmatprep.subr.bf16.mxu0 %v8226_v57  ;;  %v8291_v15 = vld [vmem:[%s8599_s5 + $0x1650] ss:$8 sps:$4 sm:$0xff]  }
 0x2d3   : > { %6077 = vmatprep.subr.bf16.mxu1 %v8229_v52  ;;  %v8294_v57 = vld [vmem:[%s8599_s5 + $0x1750] ss:$8 sps:$4 sm:$0xff]  }
 0x2d5   : > { %6037 = vmatpush1.bf16.msra.mxu0 %v8224_v58  ;;  %v8302_v58 = vld [vmem:[%s8599_s5 + $0x1744] ss:$8 sps:$4 sm:$0xff]  }
 0x2d6   : > { %6078 = vmatpush1.bf16.msra.mxu1 %v8227_v18  ;;  %6038 = vmatprep.subr.bf16.mxu0 %v8232_v19  ;;  %v8297_v19 = vld [vmem:[%s8599_s5 + $0x1640] ss:$8 sps:$4 sm:$0xff]  }
 0x2d7   : > { %6079 = vmatprep.subr.bf16.mxu1 %v8235_v20  ;;  %v8300_v20 = vld [vmem:[%s8599_s5 + $0x1740] ss:$8 sps:$4 sm:$0xff]  }
 0x2d9   : > { %6039 = vmatpush2.bf16.msra.mxu0 %v8230_v21  ;;  %v8305_v21 = vld [vmem:[%s8599_s5 + $0x1634] ss:$8 sps:$4 sm:$0xff]  }
 0x2da   : > { %6080 = vmatpush2.bf16.msra.mxu1 %v8233_v22  ;;  %6040 = vmatprep.subr.bf16.mxu0 %v8238_v23  ;;  %v8308_v22 = vld [vmem:[%s8599_s5 + $0x1734] ss:$8 sps:$4 sm:$0xff]   ;;  %v8303_v23 = vld [vmem:[%s8599_s5 + $0x1630] ss:$8 sps:$4 sm:$0xff]  }
 0x2db   : > { %6081 = vmatprep.subr.bf16.mxu1 %v8241_v24  ;;  %v8306_v24 = vld [vmem:[%s8599_s5 + $0x1730] ss:$8 sps:$4 sm:$0xff]  }
 0x2dd   : > { %6041 = vmatpush2.bf16.msra.mxu0 %v8236_v25  ;;  %v8311_v25 = vld [vmem:[%s8599_s5 + $0x1624] ss:$8 sps:$4 sm:$0xff]  }
 0x2de   : > { %6082 = vmatpush2.bf16.msra.mxu1 %v8239_v26  ;;  %6042 = vmatprep.subr.bf16.mxu0 %v8244_v28  ;;  %v8314_v26 = vld [vmem:[%s8599_s5 + $0x1724] ss:$8 sps:$4 sm:$0xff]   ;;  %v8309_v28 = vld [vmem:[%s8599_s5 + $0x1620] ss:$8 sps:$4 sm:$0xff]  }
 0x2df   : > { %6083 = vmatprep.subr.bf16.mxu1 %v8247_v29  ;;  %v8312_v29 = vld [vmem:[%s8599_s5 + $0x1720] ss:$8 sps:$4 sm:$0xff]  }
 0x2e1   : > { %6043 = vmatpush2.bf16.msra.mxu0 %v8242_v30  ;;  %v8317_v30 = vld [vmem:[%s8599_s5 + $0x1614] ss:$8 sps:$4 sm:$0xff]  }
 0x2e2   : > { %6084 = vmatpush2.bf16.msra.mxu1 %v8245_v32  ;;  %6044 = vmatprep.subr.bf16.mxu0 %v8250_v35  ;;  %v8320_v32 = vld [vmem:[%s8599_s5 + $0x1714] ss:$8 sps:$4 sm:$0xff]   ;;  %v8315_v35 = vld [vmem:[%s8599_s5 + $0x1610] ss:$8 sps:$4 sm:$0xff]  }
 0x2e3   : > { %6085 = vmatprep.subr.bf16.mxu1 %v8253_v59  ;;  %v8318_v59 = vld [vmem:[%s8599_s5 + $0x1710] ss:$8 sps:$4 sm:$0xff]  }
 0x2e5   : > { %6045 = vmatpush2.bf16.msra.mxu0 %v8248_v60  ;;  %v8323_v60 = vld [vmem:[%s8599_s5 + $0x1604] ss:$8 sps:$4 sm:$0xff]  }
 0x2e6   : > { %6086 = vmatpush2.bf16.msra.mxu1 %v8251_v42  ;;  %6046 = vmatprep.subr.bf16.mxu0 %v8256_v13  ;;  %v8326_v42 = vld [vmem:[%s8599_s5 + $0x1704] ss:$8 sps:$4 sm:$0xff]   ;;  %v8321_v13 = vld [vmem:[%s8599_s5 + $0x1600] ss:$8 sps:$4 sm:$0xff]  }
 0x2e7   : > { %6087 = vmatprep.subr.bf16.mxu1 %v8259_v43  ;;  %v8324_v43 = vld [vmem:[%s8599_s5 + $0x1700] ss:$8 sps:$4 sm:$0xff]  }
 0x2e9   : > { %6047 = vmatpush2.bf16.msra.mxu0 %v8254_v41  ;;  %v8329_v41 = vld [vmem:[%s8599_s5 + $0x16f4] ss:$8 sps:$4 sm:$0xff]  }
 0x2ea   : > { %6088 = vmatpush2.bf16.msra.mxu1 %v8257_v44  ;;  %6048 = vmatprep.subr.bf16.mxu0 %v8262_v45  ;;  %v8332_v44 = vld [vmem:[%s8599_s5 + $0x17f4] ss:$8 sps:$4 sm:$0xff]   ;;  %v8327_v45 = vld [vmem:[%s8599_s5 + $0x16f0] ss:$8 sps:$4 sm:$0xff]  }
 0x2eb   : > { %6089 = vmatprep.subr.bf16.mxu1 %v8265_v27  ;;  %v8330_v27 = vld [vmem:[%s8599_s5 + $0x17f0] ss:$8 sps:$4 sm:$0xff]  }
 0x2ed   : > { %6049 = vmatpush2.bf16.msra.mxu0 %v8260_v31  ;;  %v8335_v31 = vld [vmem:[%s8599_s5 + $0x16e4] ss:$8 sps:$4 sm:$0xff]  }
 0x2ee   : > { %6090 = vmatpush2.bf16.msra.mxu1 %v8263_v46  ;;  %6050 = vmatprep.subr.bf16.mxu0 %v8268_v47  ;;  %v8338_v46 = vld [vmem:[%s8599_s5 + $0x17e4] ss:$8 sps:$4 sm:$0xff]   ;;  %v8333_v47 = vld [vmem:[%s8599_s5 + $0x16e0] ss:$8 sps:$4 sm:$0xff]  }
 0x2ef   : > { %6091 = vmatprep.subr.bf16.mxu1 %v8271_v48  ;;  %v8336_v48 = vld [vmem:[%s8599_s5 + $0x17e0] ss:$8 sps:$4 sm:$0xff]  }
 0x2f1   : > { %6051 = vmatpush2.bf16.msra.mxu0 %v8266_v51  ;;  %v8344_v51 = vld [vmem:[%s8599_s5 + $0x17d4] ss:$8 sps:$4 sm:$0xff]  }
 0x2f2   : > { %6092 = vmatpush2.bf16.msra.mxu1 %v8269_v53  ;;  %6052 = vmatprep.subr.bf16.mxu0 %v8274_v54  ;;  %v8339_v53 = vld [vmem:[%s8599_s5 + $0x16d0] ss:$8 sps:$4 sm:$0xff]  }
 0x2f3   : > { %6093 = vmatprep.subr.bf16.mxu1 %v8277_v55  ;;  %v8342_v54 = vld [vmem:[%s8599_s5 + $0x17d0] ss:$8 sps:$4 sm:$0xff]   ;;  %v8347_v55 = vld [vmem:[%s8599_s5 + $0x16c4] ss:$8 sps:$4 sm:$0xff]  }
 0x2f5   : > { %6053 = vmatpush2.bf16.msra.mxu0 %v8272_v14  ;;  %v8345_v14 = vld [vmem:[%s8599_s5 + $0x16c0] ss:$8 sps:$4 sm:$0xff]  }
 0x2f6   : > { %6094 = vmatpush2.bf16.msra.mxu1 %v8275_v16  ;;  %6104 = vmatprep.subr.bf16.mxu0 %v8280_v61  ;;  %v8348_v16 = vld [vmem:[%s8599_s5 + $0x17c0] ss:$8 sps:$4 sm:$0xff]   ;;  %v8353_v61 = vld [vmem:[%s8599_s5 + $0x16b4] ss:$8 sps:$4 sm:$0xff]  }
 0x2f7   : > { %6145 = vmatprep.subr.bf16.mxu1 %v8284_v36  ;;  %v8356_v36 = vld [vmem:[%s8599_s5 + $0x17b4] ss:$8 sps:$4 sm:$0xff]  }
 0x2f8   : > { %v5810_v50 = vpop.f32.mrf.mxu0  ;;  %6055 = vmatmul.mubr.bf16.vlgmr.msra.gmra.mxu0 %v9416_v37 }
 0x2f9   : > { %v5851_v4 = vpop.f32.mrf.mxu1  ;;  %6096 = vmatmul.mubr.bf16.vlgmr.msra.gmra.mxu1 %v9419_v39  ;;  %v5811_v5 = vadd.f32 %v5810_v50, %v9437_v17  ;;  %6105 = vmatpush1.bf16.msra.mxu0 %v8278_v62  ;;  %v8351_v62 = vld [vmem:[%s8599_s5 + $0x16b0] ss:$8 sps:$4 sm:$0xff]   ;;  %v8365_v50 = vld [vmem:[%s8599_s5 + $0x1694] ss:$8 sps:$4 sm:$0xff]  }
 0x2fa   : > { %6146 = vmatpush1.bf16.msra.mxu1 %v8282_v63  ;;  %v5812_v8 = vpop.f32.mrf.mxu0  ;;  %6106 = vmatprep.subr.bf16.mxu0 %v8287_v0  ;;  %v8354_v63 = vld [vmem:[%s8599_s5 + $0x17b0] ss:$8 sps:$4 sm:$0xff]   ;;  %v8359_v0 = vld [vmem:[%s8599_s5 + $0x16a4] ss:$8 sps:$4 sm:$0xff]  }
 0x2fb   : > { %v5853_v9 = vpop.f32.mrf.mxu1  ;;  %6147 = vmatprep.subr.bf16.mxu1 %v8290_v1  ;;  %v5813_v37 = vadd.f32 %v5812_v8, %v9439_v33  ;;  %v9520_v12 = vadd.f32 %v5851_v4, %v5811_v5  ;;  %6136 = vmatprep.mubr.bf16.mxu0 %v1224_v2  ;;  %v8299_v33 = vld [vmem:[%s8599_s5 + $0x1644] ss:$8 sps:$4 sm:$0xff]   ;;  %v8357_v2 = vld [vmem:[%s8599_s5 + $0x16a0] ss:$8 sps:$4 sm:$0xff]   ;;  %v8368_v4 = vld [vmem:[%s8599_s5 + $0x1794] ss:$8 sps:$4 sm:$0xff]  }
 0x2fc   : > { %6177 = vmatprep.mubr.bf16.mxu1 %v1225_v3  ;;  %v5814_v39 = vpop.f32.mrf.mxu0  ;;  %v8362_v1 = vld [vmem:[%s8599_s5 + $0x17a4] ss:$8 sps:$4 sm:$0xff]   ;;  %v8360_v3 = vld [vmem:[%s8599_s5 + $0x17a0] ss:$8 sps:$4 sm:$0xff]   ;;  %v8363_v5 = vld [vmem:[%s8599_s5 + $0x1690] ss:$8 sps:$4 sm:$0xff]  }
 0x2fd   : > { %v5855_v17 = vpop.f32.mrf.mxu1  ;;  %v9522_v40 = vadd.f32 %v5853_v9, %v5813_v37  ;;  %6107 = vmatpush1.bf16.msra.mxu0 %v8285_v6  ;;  %v8366_v6 = vld [vmem:[%s8599_s5 + $0x1790] ss:$8 sps:$4 sm:$0xff]   ;;  %v8374_v8 = vld [vmem:[%s8599_s5 + $0x1784] ss:$8 sps:$4 sm:$0xff]   ;;  %v8369_v9 = vld [vmem:[%s8599_s5 + $0x1680] ss:$8 sps:$4 sm:$0xff]  }
 0x2fe   : > { %6148 = vmatpush1.bf16.msra.mxu1 %v8288_v7  ;;  %v5815_v52 = vpop.f32.mrf.mxu0  ;;  %6108 = vmatprep.subr.bf16.mxu0 %v8293_v10  ;;  %v8371_v7 = vld [vmem:[%s8599_s5 + $0x1684] ss:$8 sps:$4 sm:$0xff]   ;;  %v8372_v10 = vld [vmem:[%s8599_s5 + $0x1780] ss:$8 sps:$4 sm:$0xff]   ;;  %v8375_v37 = vld [vmem:[%s8599_s5 + $0x1870] ss:$8 sps:$4 sm:$0xff]  }
 0x2ff   : > { %6149 = vmatprep.subr.bf16.mxu1 %v8296_v11  ;;  %v5856_v18 = vpop.f32.mrf.mxu1  ;;  %v8377_v11 = vld [vmem:[%s8599_s5 + $0x1874] ss:$8 sps:$4 sm:$0xff]   ;;  %v8381_v39 = vld [vmem:[%s8599_s5 + $0x1864] ss:$8 sps:$4 sm:$0xff]   ;;  %v8379_v52 = vld [vmem:[%s8599_s5 + $0x1860] ss:$8 sps:$4 sm:$0xff]  }
 0x301   : > { %6109 = vmatpush1.bf16.msra.mxu0 %v8291_v15 }
 0x302   : > { %6150 = vmatpush1.bf16.msra.mxu1 %v8294_v57  ;;  %6110 = vmatprep.subr.bf16.mxu0 %v8299_v33  ;;  %v8501_v33 = vmov 0  }
 0x303   : > { %6151 = vmatprep.subr.bf16.mxu1 %v8302_v58 }
 0x305   : > { %6111 = vmatpush1.bf16.msra.mxu0 %v8297_v19  ;;  %v8384_v19 = vld [vmem:[%s8599_s5 + $0x1854] ss:$8 sps:$4 sm:$0xff]  }
 0x306   : > { %6152 = vmatpush1.bf16.msra.mxu1 %v8300_v20  ;;  %6112 = vmatprep.subr.bf16.mxu0 %v8305_v21 }
 0x307   : > { %6153 = vmatprep.subr.bf16.mxu1 %v8308_v22 }
 0x309   : > { %6113 = vmatpush1.bf16.msra.mxu0 %v8303_v23 }
 0x30a   : > { %6154 = vmatpush1.bf16.msra.mxu1 %v8306_v24  ;;  %6114 = vmatprep.subr.bf16.mxu0 %v8311_v25  ;;  %v8387_v24 = vld [vmem:[%s8599_s5 + $0x1844] ss:$8 sps:$4 sm:$0xff]  }
 0x30b   : > { %6155 = vmatprep.subr.bf16.mxu1 %v8314_v26  ;;  %v8385_v26 = vld [vmem:[%s8599_s5 + $0x1840] ss:$8 sps:$4 sm:$0xff]  }
 0x30d   : > { %6115 = vmatpush1.bf16.msra.mxu0 %v8309_v28  ;;  %v8388_v28 = vld [vmem:[%s8599_s5 + $0x1830] ss:$8 sps:$4 sm:$0xff]  }
 0x30e   : > { %6156 = vmatpush1.bf16.msra.mxu1 %v8312_v29  ;;  %6116 = vmatprep.subr.bf16.mxu0 %v8317_v30  ;;  %v8393_v29 = vld [vmem:[%s8599_s5 + $0x1824] ss:$8 sps:$4 sm:$0xff]   ;;  %v8391_v30 = vld [vmem:[%s8599_s5 + $0x1820] ss:$8 sps:$4 sm:$0xff]  }
 0x30f   : > { %6157 = vmatprep.subr.bf16.mxu1 %v8320_v32  ;;  %v8396_v32 = vld [vmem:[%s8599_s5 + $0x1814] ss:$8 sps:$4 sm:$0xff]  }
 0x311   : > { %6117 = vmatpush1.bf16.msra.mxu0 %v8315_v35  ;;  %v8394_v35 = vld [vmem:[%s8599_s5 + $0x1810] ss:$8 sps:$4 sm:$0xff]  }
 0x312   : > { %6158 = vmatpush1.bf16.msra.mxu1 %v8318_v59  ;;  %6118 = vmatprep.subr.bf16.mxu0 %v8323_v60  ;;  %v8399_v59 = vld [vmem:[%s8599_s5 + $0x1804] ss:$8 sps:$4 sm:$0xff]   ;;  %v8397_v60 = vld [vmem:[%s8599_s5 + $0x1800] ss:$8 sps:$4 sm:$0xff]  }
 0x313   : > { %6159 = vmatprep.subr.bf16.mxu1 %v8326_v42  ;;  %v6344_v42 = vld.sshfl [vmem:[%s8615_s22 + $0x60] sm:$0x3 pattern:$0x76325410] }
 0x315   : > { %6119 = vmatpush1.bf16.msra.mxu0 %v8321_v13 }
 0x316   : > { %6160 = vmatpush1.bf16.msra.mxu1 %v8324_v43  ;;  %6120 = vmatprep.subr.bf16.mxu0 %v8329_v41 }
 0x317   : > { %6161 = vmatprep.subr.bf16.mxu1 %v8332_v44 }
 0x319   : > { %6121 = vmatpush2.bf16.msra.mxu0 %v8327_v45 }
 0x31a   : > { %6162 = vmatpush2.bf16.msra.mxu1 %v8330_v27  ;;  %6122 = vmatprep.subr.bf16.mxu0 %v8335_v31 }
 0x31b   : > { %6163 = vmatprep.subr.bf16.mxu1 %v8338_v46 }
 0x31d   : > { %6123 = vmatpush2.bf16.msra.mxu0 %v8333_v47 }
 0x31e   : > { %6164 = vmatpush2.bf16.msra.mxu1 %v8336_v48  ;;  %6124 = vmatprep.subr.bf16.mxu0 %v8341_v49 }
 0x31f   : > { %6165 = vmatprep.subr.bf16.mxu1 %v8344_v51 }
 0x321   : > { %6125 = vmatpush2.bf16.msra.mxu0 %v8339_v53 }
 0x322   : > { %6166 = vmatpush2.bf16.msra.mxu1 %v8342_v54  ;;  %6126 = vmatprep.subr.bf16.mxu0 %v8347_v55 }
 0x323   : > { %6167 = vmatprep.subr.bf16.mxu1 %v8350_v56 }
 0x325   : > { %6127 = vmatpush2.bf16.msra.mxu0 %v8345_v14 }
 0x326   : > { %6168 = vmatpush2.bf16.msra.mxu1 %v8348_v16  ;;  %6128 = vmatprep.subr.bf16.mxu0 %v8353_v61 }
 0x327   : > { %6169 = vmatprep.subr.bf16.mxu1 %v8356_v36 }
 0x329   : > { %6129 = vmatpush2.bf16.msra.mxu0 %v8351_v62 }
 0x32a   : > { %6170 = vmatpush2.bf16.msra.mxu1 %v8354_v63  ;;  %6130 = vmatprep.subr.bf16.mxu0 %v8359_v0 }
 0x32b   : > { %6171 = vmatprep.subr.bf16.mxu1 %v8362_v1 }
 0x32d   : > { %6131 = vmatpush2.bf16.msra.mxu0 %v8357_v2 }
 0x32e   : > { %6172 = vmatpush2.bf16.msra.mxu1 %v8360_v3  ;;  %6132 = vmatprep.subr.bf16.mxu0 %v8365_v50 }
 0x32f   : > { %6173 = vmatprep.subr.bf16.mxu1 %v8368_v4 }
 0x331   : > { %6133 = vmatpush2.bf16.msra.mxu0 %v8363_v5 }
 0x332   : > { %6174 = vmatpush2.bf16.msra.mxu1 %v8366_v6  ;;  %6134 = vmatprep.subr.bf16.mxu0 %v8371_v7 }
 0x333   : > { %6175 = vmatprep.subr.bf16.mxu1 %v8374_v8 }
 0x335   : > { %6135 = vmatpush2.bf16.msra.mxu0 %v8369_v9 }
 0x336   : > { %6176 = vmatpush2.bf16.msra.mxu1 %v8372_v10  ;;  %6186 = vmatprep.subr.bf16.mxu0 %v8377_v11 }
 0x338   : > { %v5892_v17 = vpop.f32.mrf.mxu0  ;;  %6137 = vmatmul.mubr.bf16.vlgmr.msra.gmra.mxu0 %v9499_v34 }
 0x339   : > { %v5933_v15 = vpop.f32.mrf.mxu1  ;;  %6178 = vmatmul.mubr.bf16.vlgmr.msra.gmra.mxu1 %v9502_v38  ;;  %v5893_v57 = vadd.f32 %v5892_v17, %v9520_v12  ;;  %6187 = vmatpush1.bf16.msra.mxu0 %v8375_v37  ;;  %v8382_v12 = vld [vmem:[%s8599_s5 + $0x1850] ss:$8 sps:$4 sm:$0xff]  }
 0x33a   : > { %6218 = vmatprep.mubr.bf16.mxu0 %v8501_v33  ;;  %v5894_v58 = vpop.f32.mrf.mxu0  ;;  %6188 = vmatprep.subr.bf16.mxu0 %v8381_v39 }
 0x33b   : > { %v5935_v18 = vpop.f32.mrf.mxu1  ;;  %v5895_v20 = vadd.f32 %v5894_v58, %v9522_v40  ;;  %v5934_v34 = vadd.f32 %v5933_v15, %v5893_v57  ;;  %v8390_v40 = vld [vmem:[%s8599_s5 + $0x1834] ss:$8 sps:$4 sm:$0xff]  }
 0x33c   : > { %v5896_v21 = vpop.f32.mrf.mxu0 }
 0x33d   : > { %v5937_v38 = vpop.f32.mrf.mxu1  ;;  %v5936_v22 = vadd.f32 %v5935_v18, %v5895_v20  ;;  %6189 = vmatpush1.bf16.msra.mxu0 %v8379_v52  ;;  %v211_v52 = vld [vmem:[#allocation2] sm:$0xff] }
 0x33e   : > { %v5897_v23 = vpop.f32.mrf.mxu0  ;;  %6190 = vmatprep.subr.bf16.mxu0 %v8384_v19 }
 0x33f   : > { %v5938_v25 = vpop.f32.mrf.mxu1 }
 0x341   : > { %6191 = vmatpush1.bf16.msra.mxu0 %v8382_v12 }
 0x342   : > { %6192 = vmatprep.subr.bf16.mxu0 %v8387_v24 }
 0x345   : > { %6193 = vmatpush1.bf16.msra.mxu0 %v8385_v26 }
 0x346   : > { %6194 = vmatprep.subr.bf16.mxu0 %v8390_v40 }
 0x349   : > { %6195 = vmatpush1.bf16.msra.mxu0 %v8388_v28 }
 0x34a   : > { %6196 = vmatprep.subr.bf16.mxu0 %v8393_v29 }
 0x34d   : > { %6197 = vmatpush1.bf16.msra.mxu0 %v8391_v30 }
 0x34e   : > { %6198 = vmatprep.subr.bf16.mxu0 %v8396_v32 }
 0x351   : > { %6199 = vmatpush1.bf16.msra.mxu0 %v8394_v35 }
 0x352   : > { %6200 = vmatprep.subr.bf16.mxu0 %v8399_v59 }
 0x355   : > { %6201 = vmatpush1.bf16.msra.mxu0 %v8397_v60 }
 0x358   : > { %6219 = vmatmul.mubr.bf16.vlgmr.msra.gmra.mxu0 %v6344_v42 }
 0x378   : > { %v5974_v13 = vpop.f32.mrf.mxu0 }
 0x379   : > { %v6015_v43 = vpop.f32.mrf.mxu1  ;;  %v5975_v41 = vadd.f32 %v5974_v13, %v5934_v34 }
 0x37a   : > { %v5976_v44 = vpop.f32.mrf.mxu0 }
 0x37b   : > { %v6017_v45 = vpop.f32.mrf.mxu1  ;;  %v5977_v27 = vadd.f32 %v5976_v44, %v5936_v22  ;;  %v6016_v31 = vadd.f32 %v6015_v43, %v5975_v41 }
 0x37c   : > { %v5978_v46 = vpop.f32.mrf.mxu0 }
 0x37d   : > { %v6019_v47 = vpop.f32.mrf.mxu1  ;;  %v6018_v48 = vadd.f32 %v6017_v45, %v5977_v27 }
 0x37e   : > { %v5979_v49 = vpop.f32.mrf.mxu0 }
 0x37f   : > { %v6020_v51 = vpop.f32.mrf.mxu1 }
 0x3b8   : > { %v6056_v53 = vpop.f32.mrf.mxu0 }
 0x3b9   : > { %v6097_v54 = vpop.f32.mrf.mxu1  ;;  %v6057_v55 = vadd.f32 %v6056_v53, %v6016_v31 }
 0x3ba   : > { %v6058_v56 = vpop.f32.mrf.mxu0 }
 0x3bb   : > { %v6099_v14 = vpop.f32.mrf.mxu1  ;;  %v6059_v16 = vadd.f32 %v6058_v56, %v6018_v48  ;;  %v6098_v61 = vadd.f32 %v6097_v54, %v6057_v55 }
 0x3bc   : > { %v6060_v36 = vpop.f32.mrf.mxu0 }
 0x3bd   : > { %v6101_v62 = vpop.f32.mrf.mxu1  ;;  %v6100_v63 = vadd.f32 %v6099_v14, %v6059_v16 }
 0x3be   : > { %v6061_v0 = vpop.f32.mrf.mxu0 }
 0x3bf   : > { %v6102_v1 = vpop.f32.mrf.mxu1 }
 0x3f8   : > { %v6138_v2 = vpop.f32.mrf.mxu0 }
 0x3f9   : > { %v6179_v3 = vpop.f32.mrf.mxu1  ;;  %v6139_v9 = vadd.f32 %v6138_v2, %v6098_v61 }
 0x3fa   : > { %v6140_v50 = vpop.f32.mrf.mxu0 }
 0x3fb   : > { %v6181_v4 = vpop.f32.mrf.mxu1  ;;  %v6141_v10 = vadd.f32 %v6140_v50, %v6100_v63  ;;  %v6180_v37 = vadd.f32 %v6179_v3, %v6139_v9 }
 0x3fc   : > { %v6142_v5 = vpop.f32.mrf.mxu0 }
 0x3fd   : > { %v6183_v6 = vpop.f32.mrf.mxu1  ;;  %v6182_v39 = vadd.f32 %v6181_v4, %v6141_v10 }
 0x3fe   : > { %v6143_v7 = vpop.f32.mrf.mxu0 }
 0x3ff   : > { %v6184_v8 = vpop.f32.mrf.mxu1 }
 0x418   : > { %v6220_v11 = vpop.f32.mrf.mxu0 }
 0x419   : > { %v6221_v15 = vadd.f32 %v6220_v11, %v6180_v37 }
 0x41a   : > { %v6222_v17 = vpop.f32.mrf.mxu0 }
 0x41b   : > { %v6223_v57 = vadd.f32 %v6222_v17, %v6182_v39 }
 0x41c   : > { %v6224_v33 = vpop.f32.mrf.mxu0 }
 0x41d   : > { %v6229_v58 = vcombine.low %v6221_v15, %v6223_v57  ;;  %6236 = sbr.rel (%p7129_p11) target bundleno = 1066 (0x42a), region = 40 }
 0x41e   : > { %v6225_v18 = vpop.f32.mrf.mxu0 }
 0x41f   : > { %v6231_v19 = vadd.f32 %v6229_v58, %v211_v52 }
 0x421   : > { %6232 = vst [vmem:[#allocation2] sm:$0xff] %v6231_v19 }
 0x428   : > { %v6237_v20 = vld [vmem:[#allocation2] sm:$0xff] }
 0x429   : > { %6238 = vst [vmem:[%s8610_s17] sm:$0xff] %v6237_v20 }
 0x42a PF: > { %s15_s16 = sadd.s32 1, %s8494_s16   ;;  %s9630_s9 = smov %s8470_s10 }
 0x42b   : > { %p12_p12 = scmp.ge.s32.totalorder %s15_s16, 14   ;;  %s9631_s10 = smov %s8474_s11 }
 0x42c   : > { %s9632_s11 = smov %s8583_s28  ;;  %s9633_s12 = smov %s8486_s14 }
 0x42d   : > { %s9634_s13 = smov %s8490_s15  ;;  %s9635_s14 = smov %s9638_s18 }
 0x42e   : > { %s9636_s15 = smov %s9642_s19  ;;  %14 = sbr.rel (!%p12_p12) target bundleno = 5 (0x5), region = 79 }
 0x433   :  { %6261 = vsyncpa [#allocation4], 1 }
 0x434   :  { %6263 = vsyncpa [#allocation4 + $0x1], 1 }

</bundles_post_ra>
